<compile_context>
chip_gen: v7x
topology: tpu7x:2x2x1
jax: 0.10.0
libtpu: 0.0.40
codegen_flags: <defaults>
</compile_context>

<pallas_src>
import functools
import math

import jax
import jax.numpy as jnp
from jax.experimental import pallas as pl
from jax.experimental.pallas import tpu as pltpu


# -----------------------------------------------------------------------------
# Fused decoder-layer kernel (grid = (B // block_b,))
# -----------------------------------------------------------------------------
def _decoder_layer_kernel(
    x_ref, enc_ref, tgt_bias_ref, src_bias_ref,
    wqkv1_ref, bqkv1_ref, wo1_ref, bo1_ref,                  # self-attention
    wq2_ref, bq2_ref, wkv2_ref, bkv2_ref, wo2_ref, bo2_ref,  # cross-attention
    w1_ref, b1_ref, w2_ref, b2_ref,                          # feed-forward
    g1_ref, be1_ref, g2_ref, be2_ref, g3_ref, be3_ref,       # layer norms
    out_ref, *, num_heads, d_true, eps):
    bt, sq, dp = x_ref.shape
    sk = enc_ref.shape[1]
    d_kp = dp // num_heads
    inv_d = 1.0 / d_true

    def bf16(t):
        return t.astype(jnp.bfloat16)

    def mm(a, w_ref, b_ref):
        # bf16 MXU operands, f32 accumulation, f32 bias add.
        return jnp.dot(bf16(a), w_ref[...],
                       preferred_element_type=jnp.float32) + b_ref[...]

    def split_heads(t, s):
        # (bt*s, dp) -> (bt*H, s, d_kp): heads moved to a leading batch axis
        return (t.reshape(bt, s, num_heads, d_kp)
                 .transpose(0, 2, 1, 3)
                 .reshape(bt * num_heads, s, d_kp))

    def merge_heads(t, s):
        # (bt*H, s, d_kp) -> (bt*s, dp)
        return (t.reshape(bt, num_heads, s, d_kp)
                 .transpose(0, 2, 1, 3)
                 .reshape(bt * s, dp))

    def attention(q, k, v, bias, s_q, s_k, wo_ref, bo_ref):
        # 1/sqrt(d_k) already folded into the Q projection (wrapper).
        qh = split_heads(q, s_q)
        kh = split_heads(k, s_k)
        vh = split_heads(v, s_k)
        s = jnp.einsum('gqd,gkd->gqk', bf16(qh), bf16(kh),
                       preferred_element_type=jnp.float32)
        s = s + bias[None, :, :]
        s = s - jnp.max(s, axis=-1, keepdims=True)
        p = jnp.exp(s)
        p = p * pl.reciprocal(jnp.sum(p, axis=-1, keepdims=True), approx=True)
        pv = jnp.einsum('gqk,gkd->gqd', bf16(p), bf16(vh),
                        preferred_element_type=jnp.float32)
        ctx = merge_heads(pv, s_q)
        return mm(ctx, wo_ref, bo_ref)      # ONE full-K output projection

    def add_layernorm(x, y, g_ref, b_ref):
        # Padded feature lanes of x and y are exactly zero, so true-D sums
        # (and E[x^2]-mu^2) give the exact un-padded statistics; zero-padded
        # gamma/beta keep the padded lanes zero for the next sub-layer.
        s = x + y
        mu = jnp.sum(s, axis=-1, keepdims=True) * inv_d
        var = jnp.sum(s * s, axis=-1, keepdims=True) * inv_d - mu * mu
        return (s - mu) * jax.lax.rsqrt(var + eps) * g_ref[...] + b_ref[...]

    x = x_ref[...].reshape(bt * sq, dp)
    enc = enc_ref[...].reshape(bt * sk, dp)
    neg_tgt = tgt_bias_ref[...]
    neg_src = src_bias_ref[...]

    # --- self-attention (fused QKV projection) + add & norm ------------------
    # TODO(synk): nn.Dropout is stochastic; implemented as identity (eval mode).
    qkv = mm(x, wqkv1_ref, bqkv1_ref)
    a = attention(qkv[:, :dp], qkv[:, dp:2 * dp], qkv[:, 2 * dp:],
                  neg_tgt, sq, sq, wo1_ref, bo1_ref)
    x = add_layernorm(x, a, g1_ref, be1_ref)

    # --- cross-attention (fused KV projection) + add & norm ------------------
    q = mm(x, wq2_ref, bq2_ref)
    kv = mm(enc, wkv2_ref, bkv2_ref)
    a = attention(q, kv[:, :dp], kv[:, dp:],
                  neg_src, sq, sk, wo2_ref, bo2_ref)
    x = add_layernorm(x, a, g2_ref, be2_ref)

    # --- position-wise feed-forward + add & norm -----------------------------
    h = jnp.maximum(mm(x, w1_ref, b1_ref), 0.0)
    f = mm(h, w2_ref, b2_ref)
    x = add_layernorm(x, f, g3_ref, be3_ref)

    out_ref[...] = x.reshape(bt, sq, dp)


# -----------------------------------------------------------------------------
# pallas_call wrapper: padding / head re-packing / bf16 cast / BlockSpecs
# -----------------------------------------------------------------------------
def _round_up(n, m):
    return (n + m - 1) // m * m


def decoder_layer_pallas(x, enc_output, src_mask, tgt_mask, params, num_heads,
                         eps=1e-5, block_b=None):
    B, Sq, D = x.shape
    Sk = enc_output.shape[1]
    d_k = D // num_heads
    d_ff = params["ffn"]["w1"].shape[1]

    # Lane-dense padded dims (multiples of 128; Dp also divisible by num_heads).
    Dp = _round_up(D, 128)
    while Dp % num_heads:
        Dp += 128
    d_kp = Dp // num_heads
    Fp = _round_up(d_ff, 128)

    if block_b is None:
        block_b = B                 # whole batch per grid step (max M rows)
    assert B % block_b == 0
    grid = (B // block_b,)

    scale = 1.0 / math.sqrt(d_k)

    def pad2(w, rows, cols):
        return jnp.pad(w, ((0, rows - w.shape[0]), (0, cols - w.shape[1])))

    def repack_head_cols(w, b, s=1.0):
        # (D_in, D) cols grouped per head -> (Dp, H*d_kp) with per-head padding.
        wr = (w * s).reshape(w.shape[0], num_heads, d_k)
        wr = jnp.pad(wr, ((0, Dp - w.shape[0]), (0, 0), (0, d_kp - d_k)))
        br = (b * s).reshape(num_heads, d_k)
        br = jnp.pad(br, ((0, 0), (0, d_kp - d_k)))
        return wr.reshape(Dp, Dp), br.reshape(1, Dp)

    def repack_head_rows(w, b):
        # (D, D_out) rows grouped per head -> (H*d_kp, Dp) with per-head padding.
        wr = w.reshape(num_heads, d_k, w.shape[1])
        wr = jnp.pad(wr, ((0, 0), (0, d_kp - d_k), (0, Dp - w.shape[1])))
        return wr.reshape(Dp, Dp), pad2(b, 1, Dp)

    sa, ca, ffn = params["self_attn"], params["cross_attn"], params["ffn"]

    wq1, bq1 = repack_head_cols(sa["wq"], sa["bq"], scale)   # scale folded in
    wk1, bk1 = repack_head_cols(sa["wk"], sa["bk"])
    wv1, bv1 = repack_head_cols(sa["wv"], sa["bv"])
    wqkv1 = jnp.concatenate([wq1, wk1, wv1], axis=1)         # (Dp, 3Dp)
    bqkv1 = jnp.concatenate([bq1, bk1, bv1], axis=1)
    wo1, bo1 = repack_head_rows(sa["wo"], sa["bo"])

    wq2, bq2 = repack_head_cols(ca["wq"], ca["bq"], scale)
    wk2, bk2 = repack_head_cols(ca["wk"], ca["bk"])
    wv2, bv2 = repack_head_cols(ca["wv"], ca["bv"])
    wkv2 = jnp.concatenate([wk2, wv2], axis=1)                # (Dp, 2Dp)
    bkv2 = jnp.concatenate([bk2, bv2], axis=1)
    wo2, bo2 = repack_head_rows(ca["wo"], ca["bo"])

    w1 = pad2(ffn["w1"], Dp, Fp); b1 = pad2(ffn["b1"], 1, Fp)
    w2 = pad2(ffn["w2"], Fp, Dp); b2 = pad2(ffn["b2"], 1, Dp)

    g1 = pad2(params["ln1_g"], 1, Dp); be1 = pad2(params["ln1_b"], 1, Dp)
    g2 = pad2(params["ln2_g"], 1, Dp); be2 = pad2(params["ln2_b"], 1, Dp)
    g3 = pad2(params["ln3_g"], 1, Dp); be3 = pad2(params["ln3_b"], 1, Dp)

    # Cast matmul weights to bf16 (halves DMA bytes / VMEM); biases stay f32.
    tob = lambda w: w.astype(jnp.bfloat16)
    wqkv1, wo1, wq2, wkv2, wo2, w1, w2 = map(
        tob, (wqkv1, wo1, wq2, wkv2, wo2, w1, w2))

    # Pad activations to lane-dense feature dim.
    x_p = jnp.pad(x, ((0, 0), (0, 0), (0, Dp - D)))
    enc_p = jnp.pad(enc_output, ((0, 0), (0, 0), (0, Dp - D)))

    # Mask -> additive bias (hoisted out of the kernel entirely).
    neg_tgt = jnp.where(tgt_mask == 0, -1e9, 0.0).astype(jnp.float32)
    neg_src = jnp.where(src_mask == 0, -1e9, 0.0).astype(jnp.float32)

    operands = [x_p, enc_p, neg_tgt, neg_src,
                wqkv1, bqkv1, wo1, bo1,
                wq2, bq2, wkv2, bkv2, wo2, bo2,
                w1, b1, w2, b2,
                g1, be1, g2, be2, g3, be3]

    def act_spec(s, d):
        return pl.BlockSpec((block_b, s, d), lambda i: (i, 0, 0))

    def full_spec(a):
        shp = a.shape
        return pl.BlockSpec(shp, lambda i: (0,) * len(shp))

    in_specs = ([act_spec(Sq, Dp), act_spec(Sk, Dp)]
                + [full_spec(a) for a in operands[2:]])

    # Explicit scoped-VMEM limit sized from the actual resident blocks.
    blk_bytes = (block_b * Sq * Dp * 4            # x block
                 + block_b * Sk * Dp * 4          # enc block
                 + block_b * Sq * Dp * 4          # out block
                 + sum(int(a.size) * a.dtype.itemsize for a in operands[2:]))
    vmem_limit = int(min(64 * 2**20, max(16 * 2**20, 2 * blk_bytes + 4 * 2**20)))

    kernel = functools.partial(_decoder_layer_kernel,
                               num_heads=num_heads, d_true=D, eps=eps)

    out = pl.pallas_call(
        kernel,
        out_shape=jax.ShapeDtypeStruct((B, Sq, Dp), jnp.float32),
        grid=grid,
        in_specs=in_specs,
        out_specs=act_spec(Sq, Dp),
        compiler_params=pltpu.CompilerParams(
            dimension_semantics=("parallel",),
            vmem_limit_bytes=vmem_limit),
    )(*operands)
    return out[:, :, :D]


# -----------------------------------------------------------------------------
# Plain-JAX reference (f32, for correctness check)
# -----------------------------------------------------------------------------
def _mha_ref(xq, xkv, mask, p, num_heads):
    B, Sq, D = xq.shape
    Sk = xkv.shape[1]
    d_k = D // num_heads
    q = xq @ p["wq"] + p["bq"]
    k = xkv @ p["wk"] + p["bk"]
    v = xkv @ p["wv"] + p["bv"]
    q = q.reshape(B, Sq, num_heads, d_k).transpose(0, 2, 1, 3)
    k = k.reshape(B, Sk, num_heads, d_k).transpose(0, 2, 1, 3)
    v = v.reshape(B, Sk, num_heads, d_k).transpose(0, 2, 1, 3)
    scores = jnp.einsum("bhqd,bhkd->bhqk", q, k) / math.sqrt(d_k)
    scores = jnp.where(mask[None, None] == 0, -1e9, scores)
    probs = jax.nn.softmax(scores, axis=-1)
    attn = jnp.einsum("bhqk,bhkd->bhqd", probs, v)
    attn = attn.transpose(0, 2, 1, 3).reshape(B, Sq, D)
    return attn @ p["wo"] + p["bo"]


def _add_ln_ref(x, y, g, b, eps=1e-5):
    s = x + y
    mu = jnp.mean(s, axis=-1, keepdims=True)
    var = jnp.mean(jnp.square(s - mu), axis=-1, keepdims=True)
    return (s - mu) * jax.lax.rsqrt(var + eps) * g + b


def _decoder_layer_ref(x, enc, src_mask, tgt_mask, params, num_heads):
    a = _mha_ref(x, x, tgt_mask, params["self_attn"], num_heads)
    x = _add_ln_ref(x, a, params["ln1_g"], params["ln1_b"])
    a = _mha_ref(x, enc, src_mask, params["cross_attn"], num_heads)
    x = _add_ln_ref(x, a, params["ln2_g"], params["ln2_b"])
    p = params["ffn"]
    f = jnp.maximum(x @ p["w1"] + p["b1"], 0.0) @ p["w2"] + p["b2"]
    x = _add_ln_ref(x, f, params["ln3_g"], params["ln3_b"])
    return x


# -----------------------------------------------------------------------------
# Parameter init + driver
# -----------------------------------------------------------------------------
def _init_mha_params(key, d_model):
    ks = jax.random.split(key, 8)
    n = lambda k, s: (0.05 * jax.random.normal(k, s, jnp.float32))
    return dict(
        wq=n(ks[0], (d_model, d_model)), bq=n(ks[1], (1, d_model)),
        wk=n(ks[2], (d_model, d_model)), bk=n(ks[3], (1, d_model)),
        wv=n(ks[4], (d_model, d_model)), bv=n(ks[5], (1, d_model)),
        wo=n(ks[6], (d_model, d_model)), bo=n(ks[7], (1, d_model)),
    )


def _init_params(key, d_model, d_ff):
    ks = jax.random.split(key, 6)
    n = lambda k, s: (0.05 * jax.random.normal(k, s, jnp.float32))
    return dict(
        self_attn=_init_mha_params(ks[0], d_model),
        cross_attn=_init_mha_params(ks[1], d_model),
        ffn=dict(w1=n(ks[2], (d_model, d_ff)), b1=n(ks[3], (1, d_ff)),
                 w2=n(ks[4], (d_ff, d_model)), b2=n(ks[5], (1, d_model))),
        ln1_g=jnp.ones((1, d_model), jnp.float32), ln1_b=jnp.zeros((1, d_model), jnp.float32),
        ln2_g=jnp.ones((1, d_model), jnp.float32), ln2_b=jnp.zeros((1, d_model), jnp.float32),
        ln3_g=jnp.ones((1, d_model), jnp.float32), ln3_b=jnp.zeros((1, d_model), jnp.float32),
    )


if __name__ == "__main__":
    B, S, S_ENC = 2, 8, 8
    D_MODEL, NUM_HEADS, D_FF = 32, 4, 64

    key = jax.random.PRNGKey(0)
    k_x, k_enc, k_par = jax.random.split(key, 3)
    x = jax.random.normal(k_x, (B, S, D_MODEL), jnp.float32)
    enc_output = jax.random.normal(k_enc, (B, S_ENC, D_MODEL), jnp.float32)
    tgt_mask = jnp.tril(jnp.ones((S, S), jnp.float32))        # causal
    src_mask = jnp.ones((S, S_ENC), jnp.float32)              # no masking
    params = _init_params(k_par, D_MODEL, D_FF)

    out = decoder_layer_pallas(x, enc_output, src_mask, tgt_mask, params, NUM_HEADS)
    out = jax.block_until_ready(out)

    ref = _decoder_layer_ref(x, enc_output, src_mask, tgt_mask, params, NUM_HEADS)
    assert out.shape == (B, S, D_MODEL)
    # bf16 MXU operands + approximate reciprocal => compare at bf16 fidelity.
    err = float(jnp.max(jnp.abs(out - ref)))
    assert err < 5e-2, f"mismatch vs reference: max abs err {err}"
    print("KERNEL_OK")
</pallas_src>

<mosaic_0001>
module attributes {stable_mosaic.version = 11 : i64} {
  func.func @_decoder_layer_kernel(%arg0: i32, %arg1: memref<2x8x128xf32, #tpu.memory_space<vmem>>, %arg2: memref<2x8x128xf32, #tpu.memory_space<vmem>>, %arg3: memref<8x8xf32, #tpu.memory_space<vmem>>, %arg4: memref<8x8xf32, #tpu.memory_space<vmem>>, %arg5: memref<128x384xbf16, #tpu.memory_space<vmem>>, %arg6: memref<1x384xf32, #tpu.memory_space<vmem>>, %arg7: memref<128x128xbf16, #tpu.memory_space<vmem>>, %arg8: memref<1x128xf32, #tpu.memory_space<vmem>>, %arg9: memref<128x128xbf16, #tpu.memory_space<vmem>>, %arg10: memref<1x128xf32, #tpu.memory_space<vmem>>, %arg11: memref<128x256xbf16, #tpu.memory_space<vmem>>, %arg12: memref<1x256xf32, #tpu.memory_space<vmem>>, %arg13: memref<128x128xbf16, #tpu.memory_space<vmem>>, %arg14: memref<1x128xf32, #tpu.memory_space<vmem>>, %arg15: memref<128x128xbf16, #tpu.memory_space<vmem>>, %arg16: memref<1x128xf32, #tpu.memory_space<vmem>>, %arg17: memref<128x128xbf16, #tpu.memory_space<vmem>>, %arg18: memref<1x128xf32, #tpu.memory_space<vmem>>, %arg19: memref<1x128xf32, #tpu.memory_space<vmem>>, %arg20: memref<1x128xf32, #tpu.memory_space<vmem>>, %arg21: memref<1x128xf32, #tpu.memory_space<vmem>>, %arg22: memref<1x128xf32, #tpu.memory_space<vmem>>, %arg23: memref<1x128xf32, #tpu.memory_space<vmem>>, %arg24: memref<1x128xf32, #tpu.memory_space<vmem>>, %arg25: memref<2x8x128xf32, #tpu.memory_space<vmem>>) attributes {dimension_semantics = [#tpu.dimension_semantics<parallel>], iteration_bounds = array<i64: 1>, scalar_prefetch = 0 : i64, scratch_operands = 0 : i64, tpu.core_type = #tpu.core_type<tc>, window_params = [{transform_indices = @transform_0, window_bounds = array<i64: 2, 8, 128>}, {transform_indices = @transform_1, window_bounds = array<i64: 2, 8, 128>}, {pipeline_mode = #tpu.pipeline_mode<synchronous>, transform_indices = @transform_2, window_bounds = array<i64: 8, 8>}, {pipeline_mode = #tpu.pipeline_mode<synchronous>, transform_indices = @transform_3, window_bounds = array<i64: 8, 8>}, {pipeline_mode = #tpu.pipeline_mode<synchronous>, transform_indices = @transform_4, window_bounds = array<i64: 128, 384>}, {pipeline_mode = #tpu.pipeline_mode<synchronous>, transform_indices = @transform_5, window_bounds = array<i64: 1, 384>}, {pipeline_mode = #tpu.pipeline_mode<synchronous>, transform_indices = @transform_6, window_bounds = array<i64: 128, 128>}, {pipeline_mode = #tpu.pipeline_mode<synchronous>, transform_indices = @transform_7, window_bounds = array<i64: 1, 128>}, {pipeline_mode = #tpu.pipeline_mode<synchronous>, transform_indices = @transform_8, window_bounds = array<i64: 128, 128>}, {pipeline_mode = #tpu.pipeline_mode<synchronous>, transform_indices = @transform_9, window_bounds = array<i64: 1, 128>}, {pipeline_mode = #tpu.pipeline_mode<synchronous>, transform_indices = @transform_10, window_bounds = array<i64: 128, 256>}, {pipeline_mode = #tpu.pipeline_mode<synchronous>, transform_indices = @transform_11, window_bounds = array<i64: 1, 256>}, {pipeline_mode = #tpu.pipeline_mode<synchronous>, transform_indices = @transform_12, window_bounds = array<i64: 128, 128>}, {pipeline_mode = #tpu.pipeline_mode<synchronous>, transform_indices = @transform_13, window_bounds = array<i64: 1, 128>}, {pipeline_mode = #tpu.pipeline_mode<synchronous>, transform_indices = @transform_14, window_bounds = array<i64: 128, 128>}, {pipeline_mode = #tpu.pipeline_mode<synchronous>, transform_indices = @transform_15, window_bounds = array<i64: 1, 128>}, {pipeline_mode = #tpu.pipeline_mode<synchronous>, transform_indices = @transform_16, window_bounds = array<i64: 128, 128>}, {pipeline_mode = #tpu.pipeline_mode<synchronous>, transform_indices = @transform_17, window_bounds = array<i64: 1, 128>}, {pipeline_mode = #tpu.pipeline_mode<synchronous>, transform_indices = @transform_18, window_bounds = array<i64: 1, 128>}, {pipeline_mode = #tpu.pipeline_mode<synchronous>, transform_indices = @transform_19, window_bounds = array<i64: 1, 128>}, {pipeline_mode = #tpu.pipeline_mode<synchronous>, transform_indices = @transform_20, window_bounds = array<i64: 1, 128>}, {pipeline_mode = #tpu.pipeline_mode<synchronous>, transform_indices = @transform_21, window_bounds = array<i64: 1, 128>}, {pipeline_mode = #tpu.pipeline_mode<synchronous>, transform_indices = @transform_22, window_bounds = array<i64: 1, 128>}, {pipeline_mode = #tpu.pipeline_mode<synchronous>, transform_indices = @transform_23, window_bounds = array<i64: 1, 128>}, {transform_indices = @transform_24, window_bounds = array<i64: 2, 8, 128>}]} {
    %c0 = arith.constant 0 : index
    %c0_0 = arith.constant 0 : index
    %c0_1 = arith.constant 0 : index
    %0 = vector.load %arg1[%c0, %c0_0, %c0_1] : memref<2x8x128xf32, #tpu.memory_space<vmem>>, vector<2x8x128xf32>
    %1 = vector.shape_cast %0 : vector<2x8x128xf32> to vector<16x128xf32>
    %c0_2 = arith.constant 0 : index
    %c0_3 = arith.constant 0 : index
    %c0_4 = arith.constant 0 : index
    %2 = vector.load %arg2[%c0_2, %c0_3, %c0_4] : memref<2x8x128xf32, #tpu.memory_space<vmem>>, vector<2x8x128xf32>
    %3 = vector.shape_cast %2 : vector<2x8x128xf32> to vector<16x128xf32>
    %c0_5 = arith.constant 0 : index
    %c0_6 = arith.constant 0 : index
    %4 = vector.load %arg3[%c0_5, %c0_6] : memref<8x8xf32, #tpu.memory_space<vmem>>, vector<8x8xf32>
    %c0_7 = arith.constant 0 : index
    %c0_8 = arith.constant 0 : index
    %5 = vector.load %arg4[%c0_7, %c0_8] : memref<8x8xf32, #tpu.memory_space<vmem>>, vector<8x8xf32>
    %6 = arith.truncf %1 : vector<16x128xf32> to vector<16x128xbf16>
    %c0_9 = arith.constant 0 : index
    %c0_10 = arith.constant 0 : index
    %7 = vector.load %arg5[%c0_9, %c0_10] : memref<128x384xbf16, #tpu.memory_space<vmem>>, vector<128x384xbf16>
    %cst = arith.constant dense<0.000000e+00> : vector<16x384xf32>
    %8 = tpu.matmul %6, %7, %cst {dimension_numbers = #tpu.dot_dimension_numbers<[1], [0], [0], [1], [0, 0, 1, 1], [], []>} : vector<16x128xbf16>, vector<128x384xbf16>, vector<16x384xf32> -> vector<16x384xf32>
    %c0_11 = arith.constant 0 : index
    %c0_12 = arith.constant 0 : index
    %9 = vector.load %arg6[%c0_11, %c0_12] : memref<1x384xf32, #tpu.memory_space<vmem>>, vector<1x384xf32>
    %10 = vector.broadcast %9 : vector<1x384xf32> to vector<16x384xf32>
    %11 = arith.addf %8, %10 : vector<16x384xf32>
    %12 = vector.extract_strided_slice %11 {offsets = [0, 0], sizes = [16, 128], strides = [1, 1]} : vector<16x384xf32> to vector<16x128xf32>
    %13 = vector.extract_strided_slice %11 {offsets = [0, 128], sizes = [16, 128], strides = [1, 1]} : vector<16x384xf32> to vector<16x128xf32>
    %14 = vector.extract_strided_slice %11 {offsets = [0, 256], sizes = [16, 128], strides = [1, 1]} : vector<16x384xf32> to vector<16x128xf32>
    %15 = vector.shape_cast %12 : vector<16x128xf32> to vector<2x8x4x32xf32>
    %16 = tpu.transpose %15, [0, 2, 1, 3] : vector<2x8x4x32xf32> -> vector<2x4x8x32xf32>
    %17 = vector.shape_cast %16 : vector<2x4x8x32xf32> to vector<8x8x32xf32>
    %18 = vector.shape_cast %13 : vector<16x128xf32> to vector<2x8x4x32xf32>
    %19 = tpu.transpose %18, [0, 2, 1, 3] : vector<2x8x4x32xf32> -> vector<2x4x8x32xf32>
    %20 = vector.shape_cast %19 : vector<2x4x8x32xf32> to vector<8x8x32xf32>
    %21 = vector.shape_cast %14 : vector<16x128xf32> to vector<2x8x4x32xf32>
    %22 = tpu.transpose %21, [0, 2, 1, 3] : vector<2x8x4x32xf32> -> vector<2x4x8x32xf32>
    %23 = vector.shape_cast %22 : vector<2x4x8x32xf32> to vector<8x8x32xf32>
    %24 = arith.truncf %17 : vector<8x8x32xf32> to vector<8x8x32xbf16>
    %25 = arith.truncf %20 : vector<8x8x32xf32> to vector<8x8x32xbf16>
    "tpu.trace_start"() <{level = 10 : i32, message = "gqd,gkd->gqk"}> : () -> ()
    %cst_13 = arith.constant dense<0.000000e+00> : vector<8x8x8xf32>
    %26 = tpu.matmul %24, %25, %cst_13 {dimension_numbers = #tpu.dot_dimension_numbers<[2], [2], [1], [1], [0, 0, 0, 1, 1, 1], [0], [0]>} : vector<8x8x32xbf16>, vector<8x8x32xbf16>, vector<8x8x8xf32> -> vector<8x8x8xf32>
    "tpu.trace_stop"() : () -> ()
    %27 = vector.shape_cast %4 : vector<8x8xf32> to vector<1x8x8xf32>
    %28 = vector.broadcast %27 : vector<1x8x8xf32> to vector<8x8x8xf32>
    %29 = arith.addf %26, %28 : vector<8x8x8xf32>
    %cst_14 = arith.constant dense<0xFF800000> : vector<8x8xf32>
    %30 = vector.multi_reduction <maximumf>, %29, %cst_14 [2] : vector<8x8x8xf32> to vector<8x8xf32>
    %31 = vector.shape_cast %30 : vector<8x8xf32> to vector<8x8x1xf32>
    %32 = vector.broadcast %31 : vector<8x8x1xf32> to vector<8x8x8xf32>
    %33 = arith.subf %29, %32 : vector<8x8x8xf32>
    %34 = math.exp %33 : vector<8x8x8xf32>
    %cst_15 = arith.constant dense<0.000000e+00> : vector<8x8xf32>
    %35 = vector.multi_reduction <add>, %34, %cst_15 [2] : vector<8x8x8xf32> to vector<8x8xf32>
    %36 = vector.shape_cast %35 : vector<8x8xf32> to vector<8x8x1xf32>
    %37 = tpu.reciprocal %36 {approx = true} : vector<8x8x1xf32> -> vector<8x8x1xf32>
    %38 = vector.broadcast %37 : vector<8x8x1xf32> to vector<8x8x8xf32>
    %39 = arith.mulf %34, %38 : vector<8x8x8xf32>
    %40 = arith.truncf %39 : vector<8x8x8xf32> to vector<8x8x8xbf16>
    %41 = arith.truncf %23 : vector<8x8x32xf32> to vector<8x8x32xbf16>
    "tpu.trace_start"() <{level = 10 : i32, message = "gqk,gkd->gqd"}> : () -> ()
    %cst_16 = arith.constant dense<0.000000e+00> : vector<8x8x32xf32>
    %42 = tpu.matmul %40, %41, %cst_16 {dimension_numbers = #tpu.dot_dimension_numbers<[2], [1], [1], [2], [0, 0, 0, 1, 1, 2], [0], [0]>} : vector<8x8x8xbf16>, vector<8x8x32xbf16>, vector<8x8x32xf32> -> vector<8x8x32xf32>
    "tpu.trace_stop"() : () -> ()
    %43 = vector.shape_cast %42 : vector<8x8x32xf32> to vector<2x4x8x32xf32>
    %44 = tpu.transpose %43, [0, 2, 1, 3] : vector<2x4x8x32xf32> -> vector<2x8x4x32xf32>
    %45 = vector.shape_cast %44 : vector<2x8x4x32xf32> to vector<16x128xf32>
    %46 = arith.truncf %45 : vector<16x128xf32> to vector<16x128xbf16>
    %c0_17 = arith.constant 0 : index
    %c0_18 = arith.constant 0 : index
    %47 = vector.load %arg7[%c0_17, %c0_18] : memref<128x128xbf16, #tpu.memory_space<vmem>>, vector<128x128xbf16>
    %cst_19 = arith.constant dense<0.000000e+00> : vector<16x128xf32>
    %48 = tpu.matmul %46, %47, %cst_19 {dimension_numbers = #tpu.dot_dimension_numbers<[1], [0], [0], [1], [0, 0, 1, 1], [], []>} : vector<16x128xbf16>, vector<128x128xbf16>, vector<16x128xf32> -> vector<16x128xf32>
    %c0_20 = arith.constant 0 : index
    %c0_21 = arith.constant 0 : index
    %49 = vector.load %arg8[%c0_20, %c0_21] : memref<1x128xf32, #tpu.memory_space<vmem>>, vector<1x128xf32>
    %50 = vector.broadcast %49 : vector<1x128xf32> to vector<16x128xf32>
    %51 = arith.addf %48, %50 : vector<16x128xf32>
    %52 = arith.addf %1, %51 : vector<16x128xf32>
    %cst_22 = arith.constant dense<0.000000e+00> : vector<16xf32>
    %53 = vector.multi_reduction <add>, %52, %cst_22 [1] : vector<16x128xf32> to vector<16xf32>
    %54 = vector.shape_cast %53 : vector<16xf32> to vector<16x1xf32>
    %cst_23 = arith.constant 3.125000e-02 : f32
    %55 = vector.broadcast %cst_23 : f32 to vector<16x1xf32>
    %56 = arith.mulf %54, %55 : vector<16x1xf32>
    %57 = arith.mulf %52, %52 : vector<16x128xf32>
    %cst_24 = arith.constant dense<0.000000e+00> : vector<16xf32>
    %58 = vector.multi_reduction <add>, %57, %cst_24 [1] : vector<16x128xf32> to vector<16xf32>
    %59 = vector.shape_cast %58 : vector<16xf32> to vector<16x1xf32>
    %cst_25 = arith.constant 3.125000e-02 : f32
    %60 = vector.broadcast %cst_25 : f32 to vector<16x1xf32>
    %61 = arith.mulf %59, %60 : vector<16x1xf32>
    %62 = arith.mulf %56, %56 : vector<16x1xf32>
    %63 = arith.subf %61, %62 : vector<16x1xf32>
    %64 = vector.broadcast %56 : vector<16x1xf32> to vector<16x128xf32>
    %65 = arith.subf %52, %64 : vector<16x128xf32>
    %cst_26 = arith.constant 9.99999974E-6 : f32
    %66 = vector.broadcast %cst_26 : f32 to vector<16x1xf32>
    %67 = arith.addf %63, %66 : vector<16x1xf32>
    %68 = math.rsqrt %67 : vector<16x1xf32>
    %69 = vector.broadcast %68 : vector<16x1xf32> to vector<16x128xf32>
    %70 = arith.mulf %65, %69 : vector<16x128xf32>
    %c0_27 = arith.constant 0 : index
    %c0_28 = arith.constant 0 : index
    %71 = vector.load %arg19[%c0_27, %c0_28] : memref<1x128xf32, #tpu.memory_space<vmem>>, vector<1x128xf32>
    %72 = vector.broadcast %71 : vector<1x128xf32> to vector<16x128xf32>
    %73 = arith.mulf %70, %72 : vector<16x128xf32>
    %c0_29 = arith.constant 0 : index
    %c0_30 = arith.constant 0 : index
    %74 = vector.load %arg20[%c0_29, %c0_30] : memref<1x128xf32, #tpu.memory_space<vmem>>, vector<1x128xf32>
    %75 = vector.broadcast %74 : vector<1x128xf32> to vector<16x128xf32>
    %76 = arith.addf %73, %75 : vector<16x128xf32>
    %77 = arith.truncf %76 : vector<16x128xf32> to vector<16x128xbf16>
    %c0_31 = arith.constant 0 : index
    %c0_32 = arith.constant 0 : index
    %78 = vector.load %arg9[%c0_31, %c0_32] : memref<128x128xbf16, #tpu.memory_space<vmem>>, vector<128x128xbf16>
    %cst_33 = arith.constant dense<0.000000e+00> : vector<16x128xf32>
    %79 = tpu.matmul %77, %78, %cst_33 {dimension_numbers = #tpu.dot_dimension_numbers<[1], [0], [0], [1], [0, 0, 1, 1], [], []>} : vector<16x128xbf16>, vector<128x128xbf16>, vector<16x128xf32> -> vector<16x128xf32>
    %c0_34 = arith.constant 0 : index
    %c0_35 = arith.constant 0 : index
    %80 = vector.load %arg10[%c0_34, %c0_35] : memref<1x128xf32, #tpu.memory_space<vmem>>, vector<1x128xf32>
    %81 = vector.broadcast %80 : vector<1x128xf32> to vector<16x128xf32>
    %82 = arith.addf %79, %81 : vector<16x128xf32>
    %83 = arith.truncf %3 : vector<16x128xf32> to vector<16x128xbf16>
    %c0_36 = arith.constant 0 : index
    %c0_37 = arith.constant 0 : index
    %84 = vector.load %arg11[%c0_36, %c0_37] : memref<128x256xbf16, #tpu.memory_space<vmem>>, vector<128x256xbf16>
    %cst_38 = arith.constant dense<0.000000e+00> : vector<16x256xf32>
    %85 = tpu.matmul %83, %84, %cst_38 {dimension_numbers = #tpu.dot_dimension_numbers<[1], [0], [0], [1], [0, 0, 1, 1], [], []>} : vector<16x128xbf16>, vector<128x256xbf16>, vector<16x256xf32> -> vector<16x256xf32>
    %c0_39 = arith.constant 0 : index
    %c0_40 = arith.constant 0 : index
    %86 = vector.load %arg12[%c0_39, %c0_40] : memref<1x256xf32, #tpu.memory_space<vmem>>, vector<1x256xf32>
    %87 = vector.broadcast %86 : vector<1x256xf32> to vector<16x256xf32>
    %88 = arith.addf %85, %87 : vector<16x256xf32>
    %89 = vector.extract_strided_slice %88 {offsets = [0, 0], sizes = [16, 128], strides = [1, 1]} : vector<16x256xf32> to vector<16x128xf32>
    %90 = vector.extract_strided_slice %88 {offsets = [0, 128], sizes = [16, 128], strides = [1, 1]} : vector<16x256xf32> to vector<16x128xf32>
    %91 = vector.shape_cast %82 : vector<16x128xf32> to vector<2x8x4x32xf32>
    %92 = tpu.transpose %91, [0, 2, 1, 3] : vector<2x8x4x32xf32> -> vector<2x4x8x32xf32>
    %93 = vector.shape_cast %92 : vector<2x4x8x32xf32> to vector<8x8x32xf32>
    %94 = vector.shape_cast %89 : vector<16x128xf32> to vector<2x8x4x32xf32>
    %95 = tpu.transpose %94, [0, 2, 1, 3] : vector<2x8x4x32xf32> -> vector<2x4x8x32xf32>
    %96 = vector.shape_cast %95 : vector<2x4x8x32xf32> to vector<8x8x32xf32>
    %97 = vector.shape_cast %90 : vector<16x128xf32> to vector<2x8x4x32xf32>
    %98 = tpu.transpose %97, [0, 2, 1, 3] : vector<2x8x4x32xf32> -> vector<2x4x8x32xf32>
    %99 = vector.shape_cast %98 : vector<2x4x8x32xf32> to vector<8x8x32xf32>
    %100 = arith.truncf %93 : vector<8x8x32xf32> to vector<8x8x32xbf16>
    %101 = arith.truncf %96 : vector<8x8x32xf32> to vector<8x8x32xbf16>
    "tpu.trace_start"() <{level = 10 : i32, message = "gqd,gkd->gqk"}> : () -> ()
    %cst_41 = arith.constant dense<0.000000e+00> : vector<8x8x8xf32>
    %102 = tpu.matmul %100, %101, %cst_41 {dimension_numbers = #tpu.dot_dimension_numbers<[2], [2], [1], [1], [0, 0, 0, 1, 1, 1], [0], [0]>} : vector<8x8x32xbf16>, vector<8x8x32xbf16>, vector<8x8x8xf32> -> vector<8x8x8xf32>
    "tpu.trace_stop"() : () -> ()
    %103 = vector.shape_cast %5 : vector<8x8xf32> to vector<1x8x8xf32>
    %104 = vector.broadcast %103 : vector<1x8x8xf32> to vector<8x8x8xf32>
    %105 = arith.addf %102, %104 : vector<8x8x8xf32>
    %cst_42 = arith.constant dense<0xFF800000> : vector<8x8xf32>
    %106 = vector.multi_reduction <maximumf>, %105, %cst_42 [2] : vector<8x8x8xf32> to vector<8x8xf32>
    %107 = vector.shape_cast %106 : vector<8x8xf32> to vector<8x8x1xf32>
    %108 = vector.broadcast %107 : vector<8x8x1xf32> to vector<8x8x8xf32>
    %109 = arith.subf %105, %108 : vector<8x8x8xf32>
    %110 = math.exp %109 : vector<8x8x8xf32>
    %cst_43 = arith.constant dense<0.000000e+00> : vector<8x8xf32>
    %111 = vector.multi_reduction <add>, %110, %cst_43 [2] : vector<8x8x8xf32> to vector<8x8xf32>
    %112 = vector.shape_cast %111 : vector<8x8xf32> to vector<8x8x1xf32>
    %113 = tpu.reciprocal %112 {approx = true} : vector<8x8x1xf32> -> vector<8x8x1xf32>
    %114 = vector.broadcast %113 : vector<8x8x1xf32> to vector<8x8x8xf32>
    %115 = arith.mulf %110, %114 : vector<8x8x8xf32>
    %116 = arith.truncf %115 : vector<8x8x8xf32> to vector<8x8x8xbf16>
    %117 = arith.truncf %99 : vector<8x8x32xf32> to vector<8x8x32xbf16>
    "tpu.trace_start"() <{level = 10 : i32, message = "gqk,gkd->gqd"}> : () -> ()
    %cst_44 = arith.constant dense<0.000000e+00> : vector<8x8x32xf32>
    %118 = tpu.matmul %116, %117, %cst_44 {dimension_numbers = #tpu.dot_dimension_numbers<[2], [1], [1], [2], [0, 0, 0, 1, 1, 2], [0], [0]>} : vector<8x8x8xbf16>, vector<8x8x32xbf16>, vector<8x8x32xf32> -> vector<8x8x32xf32>
    "tpu.trace_stop"() : () -> ()
    %119 = vector.shape_cast %118 : vector<8x8x32xf32> to vector<2x4x8x32xf32>
    %120 = tpu.transpose %119, [0, 2, 1, 3] : vector<2x4x8x32xf32> -> vector<2x8x4x32xf32>
    %121 = vector.shape_cast %120 : vector<2x8x4x32xf32> to vector<16x128xf32>
    %122 = arith.truncf %121 : vector<16x128xf32> to vector<16x128xbf16>
    %c0_45 = arith.constant 0 : index
    %c0_46 = arith.constant 0 : index
    %123 = vector.load %arg13[%c0_45, %c0_46] : memref<128x128xbf16, #tpu.memory_space<vmem>>, vector<128x128xbf16>
    %cst_47 = arith.constant dense<0.000000e+00> : vector<16x128xf32>
    %124 = tpu.matmul %122, %123, %cst_47 {dimension_numbers = #tpu.dot_dimension_numbers<[1], [0], [0], [1], [0, 0, 1, 1], [], []>} : vector<16x128xbf16>, vector<128x128xbf16>, vector<16x128xf32> -> vector<16x128xf32>
    %c0_48 = arith.constant 0 : index
    %c0_49 = arith.constant 0 : index
    %125 = vector.load %arg14[%c0_48, %c0_49] : memref<1x128xf32, #tpu.memory_space<vmem>>, vector<1x128xf32>
    %126 = vector.broadcast %125 : vector<1x128xf32> to vector<16x128xf32>
    %127 = arith.addf %124, %126 : vector<16x128xf32>
    %128 = arith.addf %76, %127 : vector<16x128xf32>
    %cst_50 = arith.constant dense<0.000000e+00> : vector<16xf32>
    %129 = vector.multi_reduction <add>, %128, %cst_50 [1] : vector<16x128xf32> to vector<16xf32>
    %130 = vector.shape_cast %129 : vector<16xf32> to vector<16x1xf32>
    %cst_51 = arith.constant 3.125000e-02 : f32
    %131 = vector.broadcast %cst_51 : f32 to vector<16x1xf32>
    %132 = arith.mulf %130, %131 : vector<16x1xf32>
    %133 = arith.mulf %128, %128 : vector<16x128xf32>
    %cst_52 = arith.constant dense<0.000000e+00> : vector<16xf32>
    %134 = vector.multi_reduction <add>, %133, %cst_52 [1] : vector<16x128xf32> to vector<16xf32>
    %135 = vector.shape_cast %134 : vector<16xf32> to vector<16x1xf32>
    %cst_53 = arith.constant 3.125000e-02 : f32
    %136 = vector.broadcast %cst_53 : f32 to vector<16x1xf32>
    %137 = arith.mulf %135, %136 : vector<16x1xf32>
    %138 = arith.mulf %132, %132 : vector<16x1xf32>
    %139 = arith.subf %137, %138 : vector<16x1xf32>
    %140 = vector.broadcast %132 : vector<16x1xf32> to vector<16x128xf32>
    %141 = arith.subf %128, %140 : vector<16x128xf32>
    %cst_54 = arith.constant 9.99999974E-6 : f32
    %142 = vector.broadcast %cst_54 : f32 to vector<16x1xf32>
    %143 = arith.addf %139, %142 : vector<16x1xf32>
    %144 = math.rsqrt %143 : vector<16x1xf32>
    %145 = vector.broadcast %144 : vector<16x1xf32> to vector<16x128xf32>
    %146 = arith.mulf %141, %145 : vector<16x128xf32>
    %c0_55 = arith.constant 0 : index
    %c0_56 = arith.constant 0 : index
    %147 = vector.load %arg21[%c0_55, %c0_56] : memref<1x128xf32, #tpu.memory_space<vmem>>, vector<1x128xf32>
    %148 = vector.broadcast %147 : vector<1x128xf32> to vector<16x128xf32>
    %149 = arith.mulf %146, %148 : vector<16x128xf32>
    %c0_57 = arith.constant 0 : index
    %c0_58 = arith.constant 0 : index
    %150 = vector.load %arg22[%c0_57, %c0_58] : memref<1x128xf32, #tpu.memory_space<vmem>>, vector<1x128xf32>
    %151 = vector.broadcast %150 : vector<1x128xf32> to vector<16x128xf32>
    %152 = arith.addf %149, %151 : vector<16x128xf32>
    %153 = arith.truncf %152 : vector<16x128xf32> to vector<16x128xbf16>
    %c0_59 = arith.constant 0 : index
    %c0_60 = arith.constant 0 : index
    %154 = vector.load %arg15[%c0_59, %c0_60] : memref<128x128xbf16, #tpu.memory_space<vmem>>, vector<128x128xbf16>
    %cst_61 = arith.constant dense<0.000000e+00> : vector<16x128xf32>
    %155 = tpu.matmul %153, %154, %cst_61 {dimension_numbers = #tpu.dot_dimension_numbers<[1], [0], [0], [1], [0, 0, 1, 1], [], []>} : vector<16x128xbf16>, vector<128x128xbf16>, vector<16x128xf32> -> vector<16x128xf32>
    %c0_62 = arith.constant 0 : index
    %c0_63 = arith.constant 0 : index
    %156 = vector.load %arg16[%c0_62, %c0_63] : memref<1x128xf32, #tpu.memory_space<vmem>>, vector<1x128xf32>
    %157 = vector.broadcast %156 : vector<1x128xf32> to vector<16x128xf32>
    %158 = arith.addf %155, %157 : vector<16x128xf32>
    %cst_64 = arith.constant 0.000000e+00 : f32
    %159 = vector.broadcast %cst_64 : f32 to vector<16x128xf32>
    %160 = arith.maximumf %158, %159 : vector<16x128xf32>
    %161 = arith.truncf %160 : vector<16x128xf32> to vector<16x128xbf16>
    %c0_65 = arith.constant 0 : index
    %c0_66 = arith.constant 0 : index
    %162 = vector.load %arg17[%c0_65, %c0_66] : memref<128x128xbf16, #tpu.memory_space<vmem>>, vector<128x128xbf16>
    %cst_67 = arith.constant dense<0.000000e+00> : vector<16x128xf32>
    %163 = tpu.matmul %161, %162, %cst_67 {dimension_numbers = #tpu.dot_dimension_numbers<[1], [0], [0], [1], [0, 0, 1, 1], [], []>} : vector<16x128xbf16>, vector<128x128xbf16>, vector<16x128xf32> -> vector<16x128xf32>
    %c0_68 = arith.constant 0 : index
    %c0_69 = arith.constant 0 : index
    %164 = vector.load %arg18[%c0_68, %c0_69] : memref<1x128xf32, #tpu.memory_space<vmem>>, vector<1x128xf32>
    %165 = vector.broadcast %164 : vector<1x128xf32> to vector<16x128xf32>
    %166 = arith.addf %163, %165 : vector<16x128xf32>
    %167 = arith.addf %152, %166 : vector<16x128xf32>
    %cst_70 = arith.constant dense<0.000000e+00> : vector<16xf32>
    %168 = vector.multi_reduction <add>, %167, %cst_70 [1] : vector<16x128xf32> to vector<16xf32>
    %169 = vector.shape_cast %168 : vector<16xf32> to vector<16x1xf32>
    %cst_71 = arith.constant 3.125000e-02 : f32
    %170 = vector.broadcast %cst_71 : f32 to vector<16x1xf32>
    %171 = arith.mulf %169, %170 : vector<16x1xf32>
    %172 = arith.mulf %167, %167 : vector<16x128xf32>
    %cst_72 = arith.constant dense<0.000000e+00> : vector<16xf32>
    %173 = vector.multi_reduction <add>, %172, %cst_72 [1] : vector<16x128xf32> to vector<16xf32>
    %174 = vector.shape_cast %173 : vector<16xf32> to vector<16x1xf32>
    %cst_73 = arith.constant 3.125000e-02 : f32
    %175 = vector.broadcast %cst_73 : f32 to vector<16x1xf32>
    %176 = arith.mulf %174, %175 : vector<16x1xf32>
    %177 = arith.mulf %171, %171 : vector<16x1xf32>
    %178 = arith.subf %176, %177 : vector<16x1xf32>
    %179 = vector.broadcast %171 : vector<16x1xf32> to vector<16x128xf32>
    %180 = arith.subf %167, %179 : vector<16x128xf32>
    %cst_74 = arith.constant 9.99999974E-6 : f32
    %181 = vector.broadcast %cst_74 : f32 to vector<16x1xf32>
    %182 = arith.addf %178, %181 : vector<16x1xf32>
    %183 = math.rsqrt %182 : vector<16x1xf32>
    %184 = vector.broadcast %183 : vector<16x1xf32> to vector<16x128xf32>
    %185 = arith.mulf %180, %184 : vector<16x128xf32>
    %c0_75 = arith.constant 0 : index
    %c0_76 = arith.constant 0 : index
    %186 = vector.load %arg23[%c0_75, %c0_76] : memref<1x128xf32, #tpu.memory_space<vmem>>, vector<1x128xf32>
    %187 = vector.broadcast %186 : vector<1x128xf32> to vector<16x128xf32>
    %188 = arith.mulf %185, %187 : vector<16x128xf32>
    %c0_77 = arith.constant 0 : index
    %c0_78 = arith.constant 0 : index
    %189 = vector.load %arg24[%c0_77, %c0_78] : memref<1x128xf32, #tpu.memory_space<vmem>>, vector<1x128xf32>
    %190 = vector.broadcast %189 : vector<1x128xf32> to vector<16x128xf32>
    %191 = arith.addf %188, %190 : vector<16x128xf32>
    %192 = vector.shape_cast %191 : vector<16x128xf32> to vector<2x8x128xf32>
    %c0_79 = arith.constant 0 : index
    %c0_80 = arith.constant 0 : index
    %c0_81 = arith.constant 0 : index
    %193 = vector.load %arg25[%c0_79, %c0_80, %c0_81] : memref<2x8x128xf32, #tpu.memory_space<vmem>>, vector<2x8x128xf32>
    tpu.vector_store %arg25[%c0_79, %c0_80, %c0_81], %192 {strides = array<i32>} : memref<2x8x128xf32, #tpu.memory_space<vmem>>, vector<2x8x128xf32>,
    return
  }
  func.func @transform_0(%arg0: i32) -> (i32, i32, i32) {
    %c0_i32 = arith.constant 0 : i32
    %c0_i32_0 = arith.constant 0 : i32
    %c0_i32_1 = arith.constant 0 : i32
    return %arg0, %c0_i32, %c0_i32_0 : i32, i32, i32
  }
  func.func @transform_1(%arg0: i32) -> (i32, i32, i32) {
    %c0_i32 = arith.constant 0 : i32
    %c0_i32_0 = arith.constant 0 : i32
    %c0_i32_1 = arith.constant 0 : i32
    return %arg0, %c0_i32, %c0_i32_0 : i32, i32, i32
  }
  func.func @transform_2(%arg0: i32) -> (i32, i32) {
    %c0_i32 = arith.constant 0 : i32
    %c0_i32_0 = arith.constant 0 : i32
    %c0_i32_1 = arith.constant 0 : i32
    return %c0_i32, %c0_i32_0 : i32, i32
  }
  func.func @transform_3(%arg0: i32) -> (i32, i32) {
    %c0_i32 = arith.constant 0 : i32
    %c0_i32_0 = arith.constant 0 : i32
    %c0_i32_1 = arith.constant 0 : i32
    return %c0_i32, %c0_i32_0 : i32, i32
  }
  func.func @transform_4(%arg0: i32) -> (i32, i32) {
    %c0_i32 = arith.constant 0 : i32
    %c0_i32_0 = arith.constant 0 : i32
    %c0_i32_1 = arith.constant 0 : i32
    return %c0_i32, %c0_i32_0 : i32, i32
  }
  func.func @transform_5(%arg0: i32) -> (i32, i32) {
    %c0_i32 = arith.constant 0 : i32
    %c0_i32_0 = arith.constant 0 : i32
    %c0_i32_1 = arith.constant 0 : i32
    return %c0_i32, %c0_i32_0 : i32, i32
  }
  func.func @transform_6(%arg0: i32) -> (i32, i32) {
    %c0_i32 = arith.constant 0 : i32
    %c0_i32_0 = arith.constant 0 : i32
    %c0_i32_1 = arith.constant 0 : i32
    return %c0_i32, %c0_i32_0 : i32, i32
  }
  func.func @transform_7(%arg0: i32) -> (i32, i32) {
    %c0_i32 = arith.constant 0 : i32
    %c0_i32_0 = arith.constant 0 : i32
    %c0_i32_1 = arith.constant 0 : i32
    return %c0_i32, %c0_i32_0 : i32, i32
  }
  func.func @transform_8(%arg0: i32) -> (i32, i32) {
    %c0_i32 = arith.constant 0 : i32
    %c0_i32_0 = arith.constant 0 : i32
    %c0_i32_1 = arith.constant 0 : i32
    return %c0_i32, %c0_i32_0 : i32, i32
  }
  func.func @transform_9(%arg0: i32) -> (i32, i32) {
    %c0_i32 = arith.constant 0 : i32
    %c0_i32_0 = arith.constant 0 : i32
    %c0_i32_1 = arith.constant 0 : i32
    return %c0_i32, %c0_i32_0 : i32, i32
  }
  func.func @transform_10(%arg0: i32) -> (i32, i32) {
    %c0_i32 = arith.constant 0 : i32
    %c0_i32_0 = arith.constant 0 : i32
    %c0_i32_1 = arith.constant 0 : i32
    return %c0_i32, %c0_i32_0 : i32, i32
  }
  func.func @transform_11(%arg0: i32) -> (i32, i32) {
    %c0_i32 = arith.constant 0 : i32
    %c0_i32_0 = arith.constant 0 : i32
    %c0_i32_1 = arith.constant 0 : i32
    return %c0_i32, %c0_i32_0 : i32, i32
  }
  func.func @transform_12(%arg0: i32) -> (i32, i32) {
    %c0_i32 = arith.constant 0 : i32
    %c0_i32_0 = arith.constant 0 : i32
    %c0_i32_1 = arith.constant 0 : i32
    return %c0_i32, %c0_i32_0 : i32, i32
  }
  func.func @transform_13(%arg0: i32) -> (i32, i32) {
    %c0_i32 = arith.constant 0 : i32
    %c0_i32_0 = arith.constant 0 : i32
    %c0_i32_1 = arith.constant 0 : i32
    return %c0_i32, %c0_i32_0 : i32, i32
  }
  func.func @transform_14(%arg0: i32) -> (i32, i32) {
    %c0_i32 = arith.constant 0 : i32
    %c0_i32_0 = arith.constant 0 : i32
    %c0_i32_1 = arith.constant 0 : i32
    return %c0_i32, %c0_i32_0 : i32, i32
  }
  func.func @transform_15(%arg0: i32) -> (i32, i32) {
    %c0_i32 = arith.constant 0 : i32
    %c0_i32_0 = arith.constant 0 : i32
    %c0_i32_1 = arith.constant 0 : i32
    return %c0_i32, %c0_i32_0 : i32, i32
  }
  func.func @transform_16(%arg0: i32) -> (i32, i32) {
    %c0_i32 = arith.constant 0 : i32
    %c0_i32_0 = arith.constant 0 : i32
    %c0_i32_1 = arith.constant 0 : i32
    return %c0_i32, %c0_i32_0 : i32, i32
  }
  func.func @transform_17(%arg0: i32) -> (i32, i32) {
    %c0_i32 = arith.constant 0 : i32
    %c0_i32_0 = arith.constant 0 : i32
    %c0_i32_1 = arith.constant 0 : i32
    return %c0_i32, %c0_i32_0 : i32, i32
  }
  func.func @transform_18(%arg0: i32) -> (i32, i32) {
    %c0_i32 = arith.constant 0 : i32
    %c0_i32_0 = arith.constant 0 : i32
    %c0_i32_1 = arith.constant 0 : i32
    return %c0_i32, %c0_i32_0 : i32, i32
  }
  func.func @transform_19(%arg0: i32) -> (i32, i32) {
    %c0_i32 = arith.constant 0 : i32
    %c0_i32_0 = arith.constant 0 : i32
    %c0_i32_1 = arith.constant 0 : i32
    return %c0_i32, %c0_i32_0 : i32, i32
  }
  func.func @transform_20(%arg0: i32) -> (i32, i32) {
    %c0_i32 = arith.constant 0 : i32
    %c0_i32_0 = arith.constant 0 : i32
    %c0_i32_1 = arith.constant 0 : i32
    return %c0_i32, %c0_i32_0 : i32, i32
  }
  func.func @transform_21(%arg0: i32) -> (i32, i32) {
    %c0_i32 = arith.constant 0 : i32
    %c0_i32_0 = arith.constant 0 : i32
    %c0_i32_1 = arith.constant 0 : i32
    return %c0_i32, %c0_i32_0 : i32, i32
  }
  func.func @transform_22(%arg0: i32) -> (i32, i32) {
    %c0_i32 = arith.constant 0 : i32
    %c0_i32_0 = arith.constant 0 : i32
    %c0_i32_1 = arith.constant 0 : i32
    return %c0_i32, %c0_i32_0 : i32, i32
  }
  func.func @transform_23(%arg0: i32) -> (i32, i32) {
    %c0_i32 = arith.constant 0 : i32
    %c0_i32_0 = arith.constant 0 : i32
    %c0_i32_1 = arith.constant 0 : i32
    return %c0_i32, %c0_i32_0 : i32, i32
  }
  func.func @transform_24(%arg0: i32) -> (i32, i32, i32) {
    %c0_i32 = arith.constant 0 : i32
    %c0_i32_0 = arith.constant 0 : i32
    %c0_i32_1 = arith.constant 0 : i32
    return %arg0, %c0_i32, %c0_i32_0 : i32, i32, i32
  }
}

</mosaic_0001>

<bundles_post_ra>
// kernel: tpu_custom_call.1
= control target key start
LH: loop header
LB: loop body
LE: loop exit
PB: predicated region body
PF: predicated region fallthrough
CT: control target
= control target key end

     0   :  { %s7773_s0 = inlined_call_operand.hbm [shape: f32[2,8,128], index: 0, kind: input, shape index: {}]   ;;  %s7774_s1 = inlined_call_operand.hbm [shape: f32[2,8,128], index: 1, kind: input, shape index: {}]   ;;  %s7775_s2 = inlined_call_operand.hbm [shape: f32[8,8], index: 2, kind: input, shape index: {}]   ;;  %s7776_s3 = inlined_call_operand.vmem [shape: f32[8,8], index: 3, kind: input, shape index: {}]   ;;  %s7777_s4 = inlined_call_operand.hbm [shape: bf16[128,384], index: 4, kind: input, shape index: {}]   ;;  %s7778_s5 = inlined_call_operand.vmem [shape: f32[1,384], index: 5, kind: input, shape index: {}]   ;;  %s7779_s6 = inlined_call_operand.hbm [shape: bf16[128,128], index: 6, kind: input, shape index: {}]   ;;  %s7780_s7 = inlined_call_operand.vmem [shape: f32[1,128], index: 7, kind: input, shape index: {}]   ;;  %s7781_s8 = inlined_call_operand.hbm [shape: bf16[128,128], index: 8, kind: input, shape index: {}]   ;;  %s7782_s9 = inlined_call_operand.vmem [shape: f32[1,128], index: 9, kind: input, shape index: {}]   ;;  %s7783_s10 = inlined_call_operand.hbm [shape: bf16[128,256], index: 10, kind: input, shape index: {}]   ;;  %s7784_s11 = inlined_call_operand.vmem [shape: f32[1,256], index: 11, kind: input, shape index: {}]   ;;  %s7785_s12 = inlined_call_operand.hbm [shape: bf16[128,128], index: 12, kind: input, shape index: {}]   ;;  %s7786_s13 = inlined_call_operand.vmem [shape: f32[1,128], index: 13, kind: input, shape index: {}]   ;;  %s7787_s14 = inlined_call_operand.hbm [shape: bf16[128,128], index: 14, kind: input, shape index: {}]   ;;  %s7788_s15 = inlined_call_operand.vmem [shape: f32[1,128], index: 15, kind: input, shape index: {}]   ;;  %s7789_s16 = inlined_call_operand.hbm [shape: bf16[128,128], index: 16, kind: input, shape index: {}]   ;;  %s7790_s17 = inlined_call_operand.vmem [shape: f32[1,128], index: 17, kind: input, shape index: {}]   ;;  %s7791_s18 = inlined_call_operand.vmem [shape: f32[1,128], index: 18, kind: input, shape index: {}]   ;;  %s7792_s19 = inlined_call_operand.vmem [shape: f32[1,128], index: 19, kind: input, shape index: {}]   ;;  %s7793_s20 = inlined_call_operand.vmem [shape: f32[1,128], index: 20, kind: input, shape index: {}]   ;;  %s7794_s21 = inlined_call_operand.vmem [shape: f32[1,128], index: 21, kind: input, shape index: {}]   ;;  %s7795_s22 = inlined_call_operand.vmem [shape: f32[1,128], index: 22, kind: input, shape index: {}]   ;;  %s7796_s23 = inlined_call_operand.vmem [shape: f32[1,128], index: 23, kind: input, shape index: {}]   ;;  %s7797_s24 = inlined_call_operand.hbm [shape: f32[2,8,128], index: 24, kind: output, shape index: {}]  }
   0x1   :  { %7811 = sst [smem:[#allocation27_spill]] %s7773_s0 }
   0x2   :  { %7812 = sst [smem:[#allocation28_spill]] %s7774_s1 }
   0x3   :  { %7813 = sst [smem:[#allocation29_spill]] %s7775_s2 }
   0x4   :  { %7814 = sst [smem:[#allocation30_spill]] %s7776_s3 }
   0x5   :  { %7815 = sst [smem:[#allocation31_spill]] %s7777_s4 }
   0x6   :  { %7816 = sst [smem:[#allocation32_spill]] %s7778_s5 }
   0x7   :  { %7817 = sst [smem:[#allocation33_spill]] %s7779_s6 }
   0x8   :  { %7818 = sst [smem:[#allocation34_spill]] %s7780_s7 }
   0x9   :  { %7819 = sst [smem:[#allocation35_spill]] %s7781_s8 }
   0xa   :  { %7820 = sst [smem:[#allocation36_spill]] %s7795_s22 }
   0xb   :  { %7821 = sst [smem:[#allocation37_spill]] %s7796_s23 }
   0xc   :  { %7822 = sst [smem:[#allocation38_spill]] %s7797_s24 }
   0xd   :  { %29 = vsyncpa [#allocation3], 0 }
   0xe   :  { %30 = vsyncpa [#allocation6], 0 }
   0xf   :  { %31 = vsyncpa [#allocation9], 0 }
  0x10   :  { %32 = vsyncpa [#allocation12], 0 }
  0x11   :  { %33 = vsyncpa [#allocation15], 0 }
  0x12   :  { %34 = vsyncpa [#allocation18], 0 }
  0x13   :  { %35 = vsyncpa [#allocation4], 0  ;;  %s6504_s5 = smov [#allocation5]   ;;  %s6505_s27 = smov [#allocation8]  }
  0x14   :  { %s53_s26 = sshll.u32 %s6504_s5, 4  ;;  %s77_s28 = sshll.u32 %s6505_s27, 4  ;;  %s54_s26 = int_to_ptr.vmem [resolvable:$true] %s53_s26  ;;  %s6653_s28 = int_to_ptr.vmem [resolvable:$true] %s77_s28 }
  0x15   :  { %s7823_s29 = sld [smem:[#allocation28_spill]] }
  0x1b   :  { %s6248_s0 = scalar_lea.hbm %s7823_s29, 256 }
  0x1c   :  { %p6249_p0 = scmp.ne.s32.totalorder %s7823_s29, %s6248_s0  ;;  %p6252_p1 = scmp.lt.u32.totalorder %s6248_s0, %s7823_s29 }
  0x1e   :  { %p6254_p2 = pnand %p6252_p1, %p6249_p0 }
  0x20   :  { %6257 = shalt.err (!%p6254_p2)
}
  0x21   :  { %s6258_s8 = scalar_lea.vmem %s54_s26, 256  ;;  %p6263_p4 = scmp.lt.s32.totalorder %s54_s26, %s54_s26 }
  0x22   :  { %p6259_p3 = scmp.ne.s32.totalorder %s54_s26, %s6258_s8  ;;  %p6264_p5 = scmp.lt.s32.totalorder %s6258_s8, %s6258_s8 }
  0x24   :  { %p6265_p6 = por %p6264_p5, %p6263_p4 }
  0x26   :  { %p6266_p7 = pnand %p6265_p6, %p6259_p3 }
  0x28   :  { %6269 = shalt.err (!%p6266_p7)
}
  0x29   :  { %s7805_s4 = smov 128   ;;  %s7807_s1 = smov 8  }
  0x2a   :  { %59 = dma.hbm_to_vmem [thread:$0]  %s7823_s29, 256, %s54_s26, [#allocation6], %s7805_s4, %s7805_s4, %s7807_s1  }
  0x2b   :  { %s7824_s0 = sld [smem:[#allocation31_spill]] }
  0x31   :  { %s6270_s7 = scalar_lea.hbm %s7824_s0, 3072 }
  0x32   :  { %p6271_p8 = scmp.ne.s32.totalorder %s7824_s0, %s6270_s7  ;;  %p6274_p9 = scmp.lt.u32.totalorder %s6270_s7, %s7824_s0 }
  0x34   :  { %p6276_p10 = pnand %p6274_p9, %p6271_p8 }
  0x36   :  { %6279 = shalt.err (!%p6276_p10)
}
  0x37   :  { %s6280_s24 = scalar_lea.vmem %s6653_s28, 3072  ;;  %p6285_p12 = scmp.lt.s32.totalorder %s6653_s28, %s6653_s28 }
  0x38   :  { %p6281_p11 = scmp.ne.s32.totalorder %s6653_s28, %s6280_s24  ;;  %p6286_p13 = scmp.lt.s32.totalorder %s6280_s24, %s6280_s24 }
  0x3a   :  { %p6287_p0 = por %p6286_p13, %p6285_p12 }
  0x3c   :  { %p6288_p1 = pnand %p6287_p0, %p6281_p11 }
  0x3e   :  { %6291 = shalt.err (!%p6288_p1)
}
  0x3f   :  { %s6508_s26 = smov 192   ;;  %s6509_s29 = smov 12  }
  0x40   :  { %83 = dma.hbm_to_vmem [thread:$0]  %s7824_s0, 3072, %s6653_s28, [#allocation9], %s6508_s26, %s6508_s26, %s6509_s29  }
  0x41   :  { %s6510_s6 = smov [#allocation11]   ;;  %s6511_s7 = smov [#allocation14]  }
  0x42   :  { %s105_s2 = sshll.u32 %s6510_s6, 4  ;;  %s133_s30 = sshll.u32 %s6511_s7, 4  ;;  %s106_s2 = int_to_ptr.vmem [resolvable:$true] %s105_s2  ;;  %s6687_s30 = int_to_ptr.vmem [resolvable:$true] %s133_s30 }
  0x43   :  { %s7825_s24 = sld [smem:[#allocation35_spill]] }
  0x49   :  { %s6292_s8 = scalar_lea.hbm %s7825_s24, 1024 }
  0x4a   :  { %p6293_p2 = scmp.ne.s32.totalorder %s7825_s24, %s6292_s8  ;;  %p6296_p3 = scmp.lt.u32.totalorder %s6292_s8, %s7825_s24 }
  0x4c   :  { %p6298_p4 = pnand %p6296_p3, %p6293_p2 }
  0x4e   :  { %6301 = shalt.err (!%p6298_p4)
}
  0x4f   :  { %s6302_s28 = scalar_lea.vmem %s106_s2, 1024  ;;  %p6307_p6 = scmp.lt.s32.totalorder %s106_s2, %s106_s2 }
  0x50   :  { %p6303_p5 = scmp.ne.s32.totalorder %s106_s2, %s6302_s28  ;;  %p6308_p7 = scmp.lt.s32.totalorder %s6302_s28, %s6302_s28 }
  0x52   :  { %p6309_p8 = por %p6308_p7, %p6307_p6 }
  0x54   :  { %p6310_p9 = pnand %p6309_p8, %p6303_p5 }
  0x56   :  { %6313 = shalt.err (!%p6310_p9)
}
  0x57   :  { %s7809_s0 = smov 64   ;;  %s6513_s26 = smov 4  }
  0x58   :  { %111 = dma.hbm_to_vmem [thread:$0]  %s7825_s24, 1024, %s106_s2, [#allocation12], %s7809_s0, %s7809_s0, %s6513_s26  }
  0x59   :  { %s6314_s29 = scalar_lea.hbm %s7785_s12, 1024 }
  0x5a   :  { %p6315_p10 = scmp.ne.s32.totalorder %s7785_s12, %s6314_s29  ;;  %p6318_p11 = scmp.lt.u32.totalorder %s6314_s29, %s7785_s12 }
  0x5c   :  { %p6320_p12 = pnand %p6318_p11, %p6315_p10 }
  0x5e   :  { %6323 = shalt.err (!%p6320_p12)
}
  0x5f   :  { %s6324_s3 = scalar_lea.vmem %s6687_s30, 1024  ;;  %p6329_p0 = scmp.lt.s32.totalorder %s6687_s30, %s6687_s30 }
  0x60   :  { %p6325_p13 = scmp.ne.s32.totalorder %s6687_s30, %s6324_s3  ;;  %p6330_p1 = scmp.lt.s32.totalorder %s6324_s3, %s6324_s3 }
  0x62   :  { %p6331_p2 = por %p6330_p1, %p6329_p0 }
  0x64   :  { %p6332_p3 = pnand %p6331_p2, %p6325_p13 }
  0x66   :  { %6335 = shalt.err (!%p6332_p3)
}
  0x67   :  { %139 = dma.hbm_to_vmem [thread:$0]  %s7785_s12, 1024, %s6687_s30, [#allocation15], %s7809_s0, %s7809_s0, %s6513_s26  }
  0x68   :  { %s6514_s24 = smov [#allocation2]   ;;  %s6515_s28 = smov [#allocation7]  }
  0x69   :  { %s41_s8 = sshll.u32 %s6514_s24, 4  ;;  %s66_s4 = sshll.u32 %s6515_s28, 4  ;;  %s42_s8 = int_to_ptr.vmem [resolvable:$true] %s41_s8  ;;  %s67_s4 = int_to_ptr.vmem [resolvable:$true] %s66_s4 }
  0x6a   :  { %s7826_s23 = sld [smem:[#allocation27_spill]] }
  0x70   :  { %s6336_s29 = scalar_lea.hbm %s7826_s23, 256 }
  0x71   :  { %p6337_p4 = scmp.ne.s32.totalorder %s7826_s23, %s6336_s29  ;;  %p6340_p5 = scmp.lt.u32.totalorder %s6336_s29, %s7826_s23 }
  0x73   :  { %p6342_p6 = pnand %p6340_p5, %p6337_p4 }
  0x75   :  { %6345 = shalt.err (!%p6342_p6)
}
  0x76   :  { %s6346_s12 = scalar_lea.vmem %s42_s8, 256  ;;  %p6351_p8 = scmp.lt.s32.totalorder %s42_s8, %s42_s8 }
  0x77   :  { %p6347_p7 = scmp.ne.s32.totalorder %s42_s8, %s6346_s12  ;;  %p6352_p9 = scmp.lt.s32.totalorder %s6346_s12, %s6346_s12 }
  0x79   :  { %p6353_p10 = por %p6352_p9, %p6351_p8 }
  0x7b   :  { %p6354_p11 = pnand %p6353_p10, %p6347_p7 }
  0x7d   :  { %6357 = shalt.err (!%p6354_p11)
}
  0x7e   :  { %s7827_s30 = smov 8   ;;  %s7828_s3 = smov 128  }
  0x7f   :  { %47 = dma.hbm_to_vmem [thread:$0]  %s7826_s23, 256, %s42_s8, [#allocation3], %s7828_s3, %s7828_s3, %s7827_s30  }
  0x80   :  { %s7829_s1 = sld [smem:[#allocation29_spill]] }
  0x86   :  { %s6358_s22 = scalar_lea.hbm %s7829_s1, 128 }
  0x87   :  { %p6359_p12 = scmp.ne.s32.totalorder %s7829_s1, %s6358_s22  ;;  %p6362_p13 = scmp.lt.u32.totalorder %s6358_s22, %s7829_s1 }
  0x89   :  { %p6364_p0 = pnand %p6362_p13, %p6359_p12 }
  0x8b   :  { %6367 = shalt.err (!%p6364_p0)
}
  0x8c   :  { %s6368_s7 = scalar_lea.vmem %s67_s4, 128  ;;  %p6373_p2 = scmp.lt.s32.totalorder %s67_s4, %s67_s4 }
  0x8d   :  { %p6369_p1 = scmp.ne.s32.totalorder %s67_s4, %s6368_s7  ;;  %p6374_p3 = scmp.lt.s32.totalorder %s6368_s7, %s6368_s7 }
  0x8f   :  { %p6375_p4 = por %p6374_p3, %p6373_p2 }
  0x91   :  { %p6376_p5 = pnand %p6375_p4, %p6369_p1 }
  0x93   :  { %6379 = shalt.err (!%p6376_p5)
}
  0x94   :  { %69 = dma.hbm_to_vmem [thread:$0]  %s7829_s1, 128, %s67_s4, [#allocation6]  }
  0x95   :  { %s6516_s12 = smov [#allocation10]   ;;  %s6517_s25 = smov [#allocation13]  }
  0x96   :  { %s91_s2 = sshll.u32 %s6516_s12, 4  ;;  %s119_s24 = sshll.u32 %s6517_s25, 4  ;;  %s92_s2 = int_to_ptr.vmem [resolvable:$true] %s91_s2  ;;  %s6751_s24 = int_to_ptr.vmem [resolvable:$true] %s119_s24 }
  0x97   :  { %s7830_s29 = sld [smem:[#allocation33_spill]] }
  0x9d   :  { %s6380_s5 = scalar_lea.hbm %s7830_s29, 1024 }
  0x9e   :  { %p6381_p6 = scmp.ne.s32.totalorder %s7830_s29, %s6380_s5  ;;  %p6384_p7 = scmp.lt.u32.totalorder %s6380_s5, %s7830_s29 }
  0xa0   :  { %p6386_p8 = pnand %p6384_p7, %p6381_p6 }
  0xa2   :  { %6389 = shalt.err (!%p6386_p8)
}
  0xa3   :  { %s6390_s4 = scalar_lea.vmem %s92_s2, 1024  ;;  %p6395_p10 = scmp.lt.s32.totalorder %s92_s2, %s92_s2 }
  0xa4   :  { %p6391_p9 = scmp.ne.s32.totalorder %s92_s2, %s6390_s4  ;;  %p6396_p11 = scmp.lt.s32.totalorder %s6390_s4, %s6390_s4 }
  0xa6   :  { %p6397_p12 = por %p6396_p11, %p6395_p10 }
  0xa8   :  { %p6398_p13 = pnand %p6397_p12, %p6391_p9 }
  0xaa   :  { %6401 = shalt.err (!%p6398_p13)
}
  0xab   :  { %s7831_s1 = smov 64   ;;  %s6402_s0 = scalar_lea.hbm %s7783_s10, 2048 }
  0xac   :  { %97 = dma.hbm_to_vmem [thread:$0]  %s7830_s29, 1024, %s92_s2, [#allocation9], %s7831_s1, %s7831_s1, %s6513_s26  }
  0xad   :  { %p6403_p0 = scmp.ne.s32.totalorder %s7783_s10, %s6402_s0  ;;  %p6406_p1 = scmp.lt.u32.totalorder %s6402_s0, %s7783_s10 }
  0xaf   :  { %p6408_p2 = pnand %p6406_p1, %p6403_p0 }
  0xb1   :  { %6411 = shalt.err (!%p6408_p2)
}
  0xb2   :  { %s6412_s6 = scalar_lea.vmem %s6751_s24, 2048  ;;  %p6417_p4 = scmp.lt.s32.totalorder %s6751_s24, %s6751_s24 }
  0xb3   :  { %p6413_p3 = scmp.ne.s32.totalorder %s6751_s24, %s6412_s6  ;;  %p6418_p5 = scmp.lt.s32.totalorder %s6412_s6, %s6412_s6 }
  0xb5   :  { %p6419_p6 = por %p6418_p5, %p6417_p4 }
  0xb7   :  { %p6420_p7 = pnand %p6419_p6, %p6413_p3 }
  0xb9   :  { %6423 = shalt.err (!%p6420_p7)
}
  0xba   :  { %125 = dma.hbm_to_vmem [thread:$0]  %s7783_s10, 2048, %s6751_s24, [#allocation12], %s7828_s3, %s7828_s3, %s7827_s30  }
  0xbb   :  { %s6518_s7 = smov [#allocation16]   ;;  %s6519_s8 = smov [#allocation17]  }
  0xbc   :  { %s147_s4 = sshll.u32 %s6518_s7, 4  ;;  %s161_s23 = sshll.u32 %s6519_s8, 4  ;;  %s148_s4 = int_to_ptr.vmem [resolvable:$true] %s147_s4  ;;  %s6788_s23 = int_to_ptr.vmem [resolvable:$true] %s161_s23 }
  0xbd   :  { %s6424_s0 = scalar_lea.hbm %s7787_s14, 1024 }
  0xbe   :  { %p6425_p8 = scmp.ne.s32.totalorder %s7787_s14, %s6424_s0  ;;  %p6428_p9 = scmp.lt.u32.totalorder %s6424_s0, %s7787_s14 }
  0xc0   :  { %p6430_p10 = pnand %p6428_p9, %p6425_p8 }
  0xc2   :  { %6433 = shalt.err (!%p6430_p10)
}
  0xc3   :  { %s6434_s10 = scalar_lea.vmem %s148_s4, 1024  ;;  %p6439_p12 = scmp.lt.s32.totalorder %s148_s4, %s148_s4 }
  0xc4   :  { %p6435_p11 = scmp.ne.s32.totalorder %s148_s4, %s6434_s10  ;;  %p6440_p13 = scmp.lt.s32.totalorder %s6434_s10, %s6434_s10 }
  0xc6   :  { %p6441_p0 = por %p6440_p13, %p6439_p12 }
  0xc8   :  { %p6442_p1 = pnand %p6441_p0, %p6435_p11 }
  0xca   :  { %6445 = shalt.err (!%p6442_p1)
}
  0xcb   :  { %153 = dma.hbm_to_vmem [thread:$0]  %s7787_s14, 1024, %s148_s4, [#allocation15], %s7831_s1, %s7831_s1, %s6513_s26  }
  0xcc   :  { %s6446_s7 = scalar_lea.hbm %s7789_s16, 1024 }
  0xcd   :  { %p6447_p2 = scmp.ne.s32.totalorder %s7789_s16, %s6446_s7  ;;  %p6450_p3 = scmp.lt.u32.totalorder %s6446_s7, %s7789_s16 }
  0xcf   :  { %p6452_p4 = pnand %p6450_p3, %p6447_p2 }
  0xd1   :  { %6455 = shalt.err (!%p6452_p4)
}
  0xd2   :  { %s6456_s28 = scalar_lea.vmem %s6788_s23, 1024  ;;  %p6461_p6 = scmp.lt.s32.totalorder %s6788_s23, %s6788_s23 }
  0xd3   :  { %p6457_p5 = scmp.ne.s32.totalorder %s6788_s23, %s6456_s28  ;;  %p6462_p7 = scmp.lt.s32.totalorder %s6456_s28, %s6456_s28 }
  0xd5   :  { %p6463_p8 = por %p6462_p7, %p6461_p6 }
  0xd7   :  { %p6464_p9 = pnand %p6463_p8, %p6457_p5 }
  0xd9   :  { %6467 = shalt.err (!%p6464_p9)
}
  0xda   :  { %167 = dma.hbm_to_vmem [thread:$0]  %s7789_s16, 1024, %s6788_s23, [#allocation18], %s7831_s1, %s7831_s1, %s6513_s26  }
  0xdb   :  { %6490 = dma.done.wait [#allocation3], 256  }
  0xdc   :  { %6491 = vsyncadd [#allocation3], 4294967040 }
  0xdd   :  { %6492 = dma.done.wait [#allocation6], 384  }
  0xde   :  { %6493 = vsyncadd [#allocation6], 4294966912 }
  0xdf   :  { %6494 = dma.done.wait [#allocation9], 4096  }
  0xe0   :  { %6495 = vsyncadd [#allocation9], 4294963200 }
  0xe1   :  { %6496 = dma.done.wait [#allocation12], 3072  }
  0xe2   :  { %6497 = vsyncadd [#allocation12], 4294964224 }
  0xe3   :  { %6498 = dma.done.wait [#allocation15], 2048  }
  0xe4   :  { %6499 = vsyncadd [#allocation15], 4294965248 }
  0xe5   :  { %6500 = dma.done.wait [#allocation18], 1024  }
  0xe6   :  { %6501 = vsyncadd [#allocation18], 4294966272  ;;  %v6520_v0 = vmov 0   ;;  %v6074_v1 = vld [vmem:[#allocation8 + $0x4] ss:$12 sps:$4 sm:$0xff]   ;;  %v213_v17 = vld [vmem:[#allocation2] sm:$0xff]  ;;  %v254_v27 = vlaneseq }
  0xe7   :  { %429 = vmatprep.mubr.bf16.mxu0 %v6520_v0  ;;  %v6076_v2 = vld [vmem:[#allocation8] ss:$12 sps:$4 sm:$0xff]   ;;  %397 = vmatprep.subr.bf16.mxu0 %v6074_v1  ;;  %v6077_v3 = vld [vmem:[#allocation8 + $0x1c] ss:$12 sps:$4 sm:$0xff]   ;;  %v6079_v4 = vld [vmem:[#allocation8 + $0x18] ss:$12 sps:$4 sm:$0xff]  }
  0xe8   :  { %398 = vmatpush1.bf16.msra.mxu0 %v6076_v2  ;;  %v6080_v5 = vld [vmem:[#allocation8 + $0x34] ss:$12 sps:$4 sm:$0xff]   ;;  %v6082_v6 = vld [vmem:[#allocation8 + $0x30] ss:$12 sps:$4 sm:$0xff]   ;;  %v6083_v7 = vld [vmem:[#allocation8 + $0x4c] ss:$12 sps:$4 sm:$0xff]  }
  0xe9   :  { %399 = vmatprep.subr.bf16.mxu0 %v6077_v3  ;;  %v6085_v8 = vld [vmem:[#allocation8 + $0x48] ss:$12 sps:$4 sm:$0xff]   ;;  %v6086_v9 = vld [vmem:[#allocation8 + $0x64] ss:$12 sps:$4 sm:$0xff]   ;;  %v6088_v10 = vld [vmem:[#allocation8 + $0x60] ss:$12 sps:$4 sm:$0xff]  }
  0xea   :  { %v6089_v11 = vld [vmem:[#allocation8 + $0x7c] ss:$12 sps:$4 sm:$0xff]   ;;  %v6091_v12 = vld [vmem:[#allocation8 + $0x78] ss:$12 sps:$4 sm:$0xff]   ;;  %v6092_v13 = vld [vmem:[#allocation8 + $0x94] ss:$12 sps:$4 sm:$0xff]  }
  0xeb   :  { %v6094_v14 = vld [vmem:[#allocation8 + $0x90] ss:$12 sps:$4 sm:$0xff]   ;;  %v6095_v15 = vld [vmem:[#allocation8 + $0xac] ss:$12 sps:$4 sm:$0xff]   ;;  %v6097_v16 = vld [vmem:[#allocation8 + $0xa8] ss:$12 sps:$4 sm:$0xff]  }
  0xec   :  { %400 = vmatpush1.bf16.msra.mxu0 %v6079_v4  ;;  %v214_v18 = vld [vmem:[#allocation2 + $0x8] sm:$0xff]  ;;  %v6098_v20 = vld [vmem:[#allocation8 + $0x8] ss:$12 sps:$4 sm:$0xff]   ;;  %v6521_v21 = vmov 0.0   ;;  %v6101_v24 = vld [vmem:[#allocation8 + $0x50] ss:$12 sps:$4 sm:$0xff]  }
  0xed   :  { %401 = vmatprep.subr.bf16.mxu0 %v6080_v5  ;;  %v219_v19 = vpack.c.bf16 %v214_v18, %v213_v17  ;;  %5708 = vmatprep.subr.bf16.mxu1 %v6521_v21  ;;  %v6099_v22 = vld [vmem:[#allocation8 + $0x20] ss:$12 sps:$4 sm:$0xff]   ;;  %v6100_v23 = vld [vmem:[#allocation8 + $0x38] ss:$12 sps:$4 sm:$0xff]   ;;  %v6102_v25 = vld [vmem:[#allocation8 + $0x68] ss:$12 sps:$4 sm:$0xff]  }
  0xee   :  { %5709 = vmatpush3.bf16.msra.mxu1 %v6098_v20  ;;  %v6103_v26 = vld [vmem:[#allocation8 + $0x80] ss:$12 sps:$4 sm:$0xff]   ;;  %v6834_v28 = vshrl.u32 %v254_v27, 7  ;;  %v6104_v29 = vld [vmem:[#allocation8 + $0x98] ss:$12 sps:$4 sm:$0xff]   ;;  %s7832_s23 = sld [smem:[#allocation32_spill]] }
  0xef   :  { %5710 = vmatprep.subr.bf16.mxu1 %v6521_v21  ;;  %v6105_v32 = vld [vmem:[#allocation8 + $0xb0] ss:$12 sps:$4 sm:$0xff]   ;;  %vm6522_vm0 = vmmov 0   ;;  %s6523_s22 = smov 32   ;;  %s6524_s5 = smov 96   ;;  %vm1373_vm1 = vcmask 261120  }
  0xf0   :  { %402 = vmatpush1.bf16.msra.mxu0 %v6082_v6  ;;  %v260_v30 = vsub.s32 1, %v6834_v28  ;;  %v256_v33 = vsub.s32 0, %v6834_v28  ;;  %5724 = vmatprep.mubr.msk.bf16.mxu1 %vm6522_vm0, %v6521_v21  ;;  %v6525_v44 = vmov 1983009808   ;;  %v6526_v46 = vmov 1934713408  }
  0xf1   :  { %403 = vmatprep.subr.bf16.mxu0 %v6083_v7  ;;  %v504_v45 = vunpack.c.l.s4 %v6525_v44  ;;  %v536_v47 = vunpack.c.l.s4 %v6526_v46  ;;  %vm1742_vm2 = vcmask 64512   ;;  %vm1850_vm3 = vcmask 1043456   ;;  %s7833_s24 = sld [smem:[#allocation34_spill]]  ;;  %s7834_s25 = sld [smem:[#allocation30_spill]] }
  0xf2   :  { %5711 = vmatpush3.bf16.msra.mxu1 %v6099_v22  ;;  %vm2514_vm4 = vcmask 523264   ;;  %vm2517_vm5 = vcmask 785408   ;;  %s7836_s27 = sld [smem:[#allocation37_spill]]  ;;  %s6527_s10 = smov [#allocation19]  }
  0xf3   :  { %5712 = vmatprep.subr.bf16.mxu1 %v6521_v21  ;;  %v505_v48 = vunpack.c.0.s8 %v504_v45  ;;  %v537_v51 = vunpack.c.0.s8 %v536_v47 }
  0xf4   :  { %404 = vmatpush1.bf16.msra.mxu0 %v6085_v8  ;;  %v6841_v31 = vld [vmem:[%s7832_s23] sm:$0x7]  ;;  %s7835_s23 = sld [smem:[#allocation36_spill]] }
  0xf5   :  { %405 = vmatprep.subr.bf16.mxu0 %v6086_v9  ;;  %v261_v34 = vrot.slane %v6841_v31, %v260_v30  ;;  %v257_v37 = vrot.slane %v6841_v31, %v256_v33  ;;  %v6880_v52 = vsub.s32 %v505_v48, %v6834_v28  ;;  %v6883_v59 = vsub.s32 %v537_v51, %v6834_v28 }
  0xf6   :  { %5713 = vmatpush3.bf16.msra.mxu1 %v6100_v23 }
  0xf7   :  { %5714 = vmatprep.subr.bf16.mxu1 %v6521_v21 }
  0xf8   :  { %406 = vmatpush1.bf16.msra.mxu0 %v6088_v10 }
  0xf9   :  { %407 = vmatprep.subr.bf16.mxu0 %v6089_v11 }
  0xfa   :  { %5715 = vmatpush3.bf16.msra.mxu1 %v6101_v24 }
  0xfb   :  { %5716 = vmatprep.subr.bf16.mxu1 %v6521_v21 }
  0xfc   :  { %408 = vmatpush1.bf16.msra.mxu0 %v6091_v12 }
  0xfd   :  { %409 = vmatprep.subr.bf16.mxu0 %v6092_v13 }
  0xfe   :  { %5717 = vmatpush3.bf16.msra.mxu1 %v6102_v25 }
  0xff   :  { %5718 = vmatprep.subr.bf16.mxu1 %v6521_v21 }
 0x100   :  { %410 = vmatpush1.bf16.msra.mxu0 %v6094_v14 }
 0x101   :  { %411 = vmatprep.subr.bf16.mxu0 %v6095_v15 }
 0x102   :  { %5719 = vmatpush3.bf16.msra.mxu1 %v6103_v26 }
 0x103   :  { %5720 = vmatprep.subr.bf16.mxu1 %v6521_v21 }
 0x104   :  { %412 = vmatpush1.bf16.msra.mxu0 %v6097_v16 }
 0x105   :  { %5752 = vmatprep.subr.bf16.mxu0 %v6521_v21 }
 0x106   :  { %5721 = vmatpush3.bf16.msra.mxu1 %v6104_v29 }
 0x107   :  { %430 = vmatmul.mubr.bf16.vlgmr.msra.gmra.mrb[0].mxu0 %v219_v19  ;;  %5722 = vmatprep.subr.bf16.mxu1 %v6521_v21 }
 0x108   :  { %5754 = vmatprep.mubr.msk.bf16.mxu0 %vm6522_vm0, %v6521_v21 }
 0x10a   :  { %5723 = vmatpush3.bf16.msra.mxu1 %v6105_v32 }
 0x10b   :  { %5728 = vmatprep.subr.bf16.mxu1 %v6521_v21 }
 0x10d   :  { %5725 = vmatmul.mubr.bf16.vlgmr.msra.gmra.mrb[0].mxu1 %v219_v19 }
 0x10e   :  { %5730 = vmatprep.mubr.msk.bf16.mxu1 %vm6522_vm0, %v6521_v21 }
 0x1da   :  { %v431_v35 = vpop.f32.mrb[0].mxu0 }
 0x1db   :  { %v433_v36 = vpop.f32.mrb[1].mxu0  ;;  %v432_v41 = vadd.f32 %v431_v35, %v257_v37 }
 0x1dc   :  { %v434_v38 = vadd.f32 %v433_v36, %v261_v34  ;;  %v435_v39 = vpop.f32.mrb[2].mxu0 }
 0x1dd   :  { %v437_v40 = vpop.f32.mrb[3].mxu0  ;;  %v6869_v43 = vadd.f32 %v435_v39, %v257_v37 }
 0x1de   :  { %787 = vrot.lane.b32.xlu1 %v434_v38, %s6523_s22  ;;  %775 = vrot.lane.b32.xlu0 %v434_v38, %s6524_s5  ;;  %v6863_v42 = vadd.f32 %v437_v40, %v261_v34 }
 0x1e2   :  { %781 = vrot.lane.b32.xlu0 %v434_v38, %s7831_s1  ;;  %483 = vrot.lane.b32.xlu1 %v432_v41, %s6524_s5 }
 0x1e6   :  { %489 = vrot.lane.b32.xlu0 %v432_v41, %s7831_s1  ;;  %495 = vrot.lane.b32.xlu1 %v432_v41, %s6523_s22 }
 0x1ea   :  { %777 = vrot.lane.b32.xlu0 %v6863_v42, %s6524_s5  ;;  %783 = vrot.lane.b32.xlu1 %v6863_v42, %s7831_s1 }
 0x1ee   :  { %789 = vrot.lane.b32.xlu0 %v6863_v42, %s6523_s22  ;;  %485 = vrot.lane.b32.xlu1 %v6869_v43, %s6524_s5 }
 0x1f2   :  { %491 = vrot.lane.b32.xlu0 %v6869_v43, %s7831_s1  ;;  %497 = vrot.lane.b32.xlu1 %v6869_v43, %s6523_s22 }
 0x250   :  { %v788_v49 = vpop.permute.xlu1 %787  ;;  %v776_v50 = vpop.permute.xlu0 %775 }
 0x251   :  { %v809_v53 = vcombine.low %v776_v50, %v788_v49  ;;  %v810_v54 = vcombine.high %v776_v50, %v788_v49 }
 0x253   :  { %v817_v60 = vrot.slane %v809_v53, %v6880_v52  ;;  %v824_v61 = vrot.slane %v810_v54, %v6880_v52 }
 0x254   :  { %v782_v55 = vpop.permute.xlu0 %781  ;;  %v484_v56 = vpop.permute.xlu1 %483 }
 0x255   :  { %v793_v57 = vcombine.low %v434_v38, %v782_v55  ;;  %v794_v58 = vcombine.high %v434_v38, %v782_v55 }
 0x257   :  { %v801_v62 = vrot.slane %v793_v57, %v6880_v52  ;;  %v808_v63 = vrot.slane %v794_v58, %v6880_v52 }
 0x258   :  { %v490_v1 = vpop.permute.xlu0 %489  ;;  %v496_v2 = vpop.permute.xlu1 %495 }
 0x259   :  { %v825_v3 = vcombine.low %v801_v62, %v817_v60  ;;  %v826_v4 = vcombine.high %v801_v62, %v817_v60  ;;  %v841_v5 = vcombine.low %v808_v63, %v824_v61  ;;  %v842_v6 = vcombine.high %v808_v63, %v824_v61 }
 0x25a   :  { %v501_v7 = vcombine.low %v432_v41, %v490_v1  ;;  %v502_v8 = vcombine.high %v432_v41, %v490_v1  ;;  %v517_v9 = vcombine.low %v484_v56, %v496_v2  ;;  %v518_v10 = vcombine.high %v484_v56, %v496_v2 }
 0x25b   :  { %v833_v11 = vrot.slane %v825_v3, %v6883_v59  ;;  %v840_v12 = vrot.slane %v826_v4, %v6883_v59  ;;  %v849_v13 = vrot.slane %v841_v5, %v6883_v59  ;;  %v856_v14 = vrot.slane %v842_v6, %v6883_v59 }
 0x25c   :  { %v509_v15 = vrot.slane %v501_v7, %v6880_v52  ;;  %v516_v16 = vrot.slane %v502_v8, %v6880_v52  ;;  %v525_v17 = vrot.slane %v517_v9, %v6880_v52  ;;  %v532_v18 = vrot.slane %v518_v10, %v6880_v52  ;;  %v778_v19 = vpop.permute.xlu0 %777  ;;  %v784_v20 = vpop.permute.xlu1 %783 }
 0x25d   :  { %v929_v26 = vcombine.low %v833_v11, %v840_v12  ;;  %v5463_v27 = vcombine.high %v833_v11, %v840_v12  ;;  %v945_v29 = vcombine.low %v849_v13, %v856_v14  ;;  %v861_v39 = vcombine.low %v6863_v42, %v784_v20 }
 0x25e   :  { %v533_v22 = vcombine.low %v509_v15, %v525_v17  ;;  %v534_v23 = vcombine.high %v509_v15, %v525_v17  ;;  %v549_v24 = vcombine.low %v516_v16, %v532_v18  ;;  %v550_v25 = vcombine.high %v516_v16, %v532_v18 }
 0x25f   :  { %v862_v40 = vcombine.high %v6863_v42, %v784_v20  ;;  %v5464_v45 = vcombine.high %v849_v13, %v856_v14  ;;  %v869_v49 = vrot.slane %v861_v39, %v6880_v52  ;;  %v6908_v54 = vrot.slane %v929_v26, %v6880_v52 }
 0x260   :  { %v541_v32 = vrot.slane %v533_v22, %v6883_v59  ;;  %v548_v34 = vrot.slane %v534_v23, %v6883_v59  ;;  %v557_v35 = vrot.slane %v549_v24, %v6883_v59  ;;  %v564_v36 = vrot.slane %v550_v25, %v6883_v59  ;;  %v790_v37 = vpop.permute.xlu0 %789  ;;  %v486_v38 = vpop.permute.xlu1 %485 }
 0x261   :  { %v877_v41 = vcombine.low %v778_v19, %v790_v37  ;;  %v878_v44 = vcombine.high %v778_v19, %v790_v37  ;;  %v876_v50 = vrot.slane %v862_v40, %v6880_v52  ;;  %v6911_v55 = vrot.slane %v5463_v27, %v6880_v52 }
 0x262   :  { %v637_v46 = vcombine.low %v541_v32, %v548_v34  ;;  %v5459_v47 = vcombine.high %v541_v32, %v548_v34  ;;  %v653_v48 = vcombine.low %v557_v35, %v564_v36  ;;  %v6914_v42 = vrot.slane %v945_v29, %v6880_v52 }
 0x263   :  { %v885_v51 = vrot.slane %v877_v41, %v6880_v52  ;;  %v892_v53 = vrot.slane %v878_v44, %v6880_v52  ;;  %v5460_v56 = vcombine.high %v557_v35, %v564_v36  ;;  %v6917_v1 = vrot.slane %v5464_v45, %v6880_v52 }
 0x264   :  { %v492_v62 = vpop.permute.xlu0 %491  ;;  %v498_v63 = vpop.permute.xlu1 %497  ;;  %v6920_v2 = vrot.slane %v637_v46, %v6880_v52  ;;  %v6923_v3 = vrot.slane %v5459_v47, %v6880_v52  ;;  %v6926_v4 = vrot.slane %v653_v48, %v6880_v52  ;;  %v961_v35 = vcombine.low %v6908_v54, %v6911_v55 }
 0x265   :  { %v893_v57 = vcombine.low %v869_v49, %v885_v51  ;;  %v894_v58 = vcombine.high %v869_v49, %v885_v51  ;;  %v909_v60 = vcombine.low %v876_v50, %v892_v53  ;;  %v910_v61 = vcombine.high %v876_v50, %v892_v53 }
 0x266   :  { %v569_v9 = vcombine.low %v6869_v43, %v492_v62  ;;  %v570_v10 = vcombine.high %v6869_v43, %v492_v62  ;;  %v585_v11 = vcombine.low %v486_v38, %v498_v63  ;;  %v586_v12 = vcombine.high %v486_v38, %v498_v63 }
 0x267   :  { %v901_v5 = vrot.slane %v893_v57, %v6883_v59  ;;  %v908_v6 = vrot.slane %v894_v58, %v6883_v59  ;;  %v917_v7 = vrot.slane %v909_v60, %v6883_v59  ;;  %v924_v8 = vrot.slane %v910_v61, %v6883_v59 }
 0x268   :  { %v6935_v13 = vrot.slane %v5460_v56, %v6880_v52  ;;  %v577_v17 = vrot.slane %v569_v9, %v6880_v52  ;;  %v584_v18 = vrot.slane %v570_v10, %v6880_v52  ;;  %v593_v19 = vrot.slane %v585_v11, %v6880_v52 }
 0x269   :  { %v997_v14 = vcombine.low %v901_v5, %v908_v6  ;;  %v5465_v15 = vcombine.high %v901_v5, %v908_v6  ;;  %v1013_v16 = vcombine.low %v917_v7, %v924_v8  ;;  %v600_v20 = vrot.slane %v586_v12, %v6880_v52 }
 0x26a   :  { %v669_v22 = vcombine.low %v6920_v2, %v6923_v3  ;;  %v5466_v24 = vcombine.high %v917_v7, %v924_v8  ;;  %v601_v25 = vcombine.low %v577_v17, %v593_v19  ;;  %v602_v26 = vcombine.high %v577_v17, %v593_v19 }
 0x26b   :  { %v1004_v43 = vrot.slane %v997_v14, %v6880_v52  ;;  %v1012_v23 = vrot.slane %v5465_v15, %v6880_v52  ;;  %v617_v27 = vcombine.low %v584_v18, %v600_v20  ;;  %v618_v29 = vcombine.high %v584_v18, %v600_v20 }
 0x26c   :  { %v685_v32 = vcombine.low %v6926_v4, %v6935_v13  ;;  %v1020_v34 = vrot.slane %v1013_v16, %v6880_v52  ;;  %v977_v36 = vcombine.low %v6914_v42, %v6917_v1  ;;  %v609_v37 = vrot.slane %v601_v25, %v6883_v59 }
 0x26d   :  { %v616_v38 = vrot.slane %v602_v26, %v6883_v59  ;;  %v625_v39 = vrot.slane %v617_v27, %v6883_v59  ;;  %v632_v40 = vrot.slane %v618_v29, %v6883_v59  ;;  %v1028_v41 = vrot.slane %v5466_v24, %v6880_v52 }
 0x26e   :  { %v969_v44 = vrot.slane %v961_v35, %v6883_v59  ;;  %v985_v45 = vrot.slane %v977_v36, %v6883_v59  ;;  %v1029_v46 = vcombine.low %v1004_v43, %v1012_v23  ;;  %v677_v53 = vrot.slane %v669_v22, %v6883_v59 }
 0x26f   :  { %v705_v47 = vcombine.low %v609_v37, %v616_v38  ;;  %v5461_v48 = vcombine.high %v609_v37, %v616_v38  ;;  %v721_v49 = vcombine.low %v625_v39, %v632_v40  ;;  %v5462_v50 = vcombine.high %v625_v39, %v632_v40 }
 0x270   :  { %v993_v51 = vcombine.low %v969_v44, %v985_v45  ;;  %v693_v62 = vrot.slane %v685_v32, %v6883_v59  ;;  %v6966_v63 = vrot.slane %v1029_v46, %v6883_v59  ;;  %v1045_v5 = vcombine.low %v1020_v34, %v1028_v41 }
 0x271   :  { %v712_v56 = vrot.slane %v705_v47, %v6880_v52  ;;  %v720_v57 = vrot.slane %v5461_v48, %v6880_v52  ;;  %v728_v58 = vrot.slane %v721_v49, %v6880_v52  ;;  %v736_v60 = vrot.slane %v5462_v50, %v6880_v52 }
 0x272   :  { %v1365_v61 = vpack.c.bf16 %v993_v51, %v993_v51  ;;  %v994_v8 = vcombine.high %v969_v44, %v985_v45  ;;  %v1053_v10 = vrot.slane %v1045_v5, %v6883_v59  ;;  %v962_v11 = vcombine.high %v6908_v54, %v6911_v55 }
 0x273   :  { %v737_v6 = vcombine.low %v712_v56, %v720_v57  ;;  %v753_v7 = vcombine.low %v728_v58, %v736_v60  ;;  %v978_v12 = vcombine.high %v6914_v42, %v6917_v1  ;;  %v701_v14 = vcombine.low %v677_v53, %v693_v62 }
 0x274   :  { %v1378_v9 = vsel %vm1373_vm1, %v1365_v61, 0  ;;  %v1061_v15 = vcombine.low %v6966_v63, %v1053_v10  ;;  %v1030_v16 = vcombine.high %v1004_v43, %v1012_v23  ;;  %v1046_v17 = vcombine.high %v1020_v34, %v1028_v41 }
 0x275   :  { %5729 = vmatpush3.bf16.xpose.msra.mxu1 %v1378_v9  ;;  %v1366_v18 = vpack.c.bf16 %v994_v8, %v994_v8  ;;  %v976_v19 = vrot.slane %v962_v11, %v6883_v59  ;;  %v6978_v20 = vrot.slane %v737_v6, %v6883_v59  ;;  %v761_v22 = vrot.slane %v753_v7, %v6883_v59  ;;  %v474_v11 = vpop.f32.mrb[0].mxu1 }
 0x276   :  { %5734 = vmatprep.subr.bf16.mxu1 %v6521_v21  ;;  %v1369_v24 = vpack.c.bf16 %v1061_v15, %v1061_v15  ;;  %v992_v54 = vrot.slane %v978_v12, %v6883_v59  ;;  %v1044_v55 = vrot.slane %v1030_v16, %v6883_v59  ;;  %v1060_v42 = vrot.slane %v1046_v17, %v6883_v59 }
 0x277   :  { %v1357_v1 = vpack.c.bf16 %v701_v14, %v701_v14  ;;  %v738_v23 = vcombine.high %v712_v56, %v720_v57  ;;  %v754_v26 = vcombine.high %v728_v58, %v736_v60  ;;  %v1424_v27 = vsel %vm1373_vm1, %v1366_v18, 0  ;;  %v5726_v14 = vpop.f32.mrb[1].mxu1  ;;  %v217_v18 = vld [vmem:[#allocation7] sm:$0xff] }
 0x278   :  { %v1562_v25 = vsel %vm1373_vm1, %v1369_v24, 0  ;;  %v1063_v43 = vcombine.low %v1044_v55, %v1060_v42  ;;  %v995_v29 = vcombine.low %v976_v19, %v992_v54  ;;  %v769_v32 = vcombine.low %v6978_v20, %v761_v22  ;;  %v477_v15 = vpop.f32.mrb[2].mxu1 }
 0x279   :  { %5753 = vmatpush3.bf16.xpose.msra.mxu0 %v1562_v25  ;;  %v670_v34 = vcombine.high %v6920_v2, %v6923_v3  ;;  %v686_v35 = vcombine.high %v6926_v4, %v6935_v13  ;;  %v702_v36 = vcombine.high %v677_v53, %v693_v62  ;;  %v752_v40 = vrot.slane %v738_v23, %v6883_v59  ;;  %v5727_v17 = vpop.f32.mrb[3].mxu1 }
 0x27a   :  { %5764 = vmatprep.subr.bf16.mxu0 %v6521_v21  ;;  %v1371_v37 = vpack.c.bf16 %v1063_v43, %v1063_v43  ;;  %v1367_v38 = vpack.c.bf16 %v995_v29, %v995_v29  ;;  %v1361_v39 = vpack.c.bf16 %v769_v32, %v769_v32  ;;  %v768_v41 = vrot.slane %v754_v26, %v6883_v59 }
 0x27b   :  { %v1358_v44 = vpack.c.bf16 %v702_v36, %v702_v36  ;;  %v684_v2 = vrot.slane %v670_v34, %v6883_v59  ;;  %v700_v3 = vrot.slane %v686_v35, %v6883_v59  ;;  %v996_v13 = vcombine.high %v976_v19, %v992_v54 }
 0x27c   :  { %5731 = vmatmul.mubr.msk.bf16.vlgmr.msra.gmra.mrb[4].mxu1 %vm1373_vm1, %v1357_v1  ;;  %v1654_v45 = vsel %vm1373_vm1, %v1371_v37, 0  ;;  %v1470_v4 = vsel %vm1373_vm1, %v1367_v38, 0  ;;  %v771_v46 = vcombine.low %v752_v40, %v768_v41  ;;  %v1062_v53 = vcombine.high %v6966_v63, %v1053_v10 }
 0x27d   :  { %5735 = vmatpush3.bf16.xpose.msra.mxu1 %v1424_v27  ;;  %5736 = vmatprep.mubr.msk.bf16.mxu1 %vm6522_vm0, %v6521_v21  ;;  %v703_v47 = vcombine.low %v684_v2, %v700_v3  ;;  %v1368_v48 = vpack.c.bf16 %v996_v13, %v996_v13  ;;  %v704_v56 = vcombine.high %v684_v2, %v700_v3  ;;  %v264_v9 = vsub.s32 2, %v6834_v28 }
 0x27e   :  { %5740 = vmatprep.subr.bf16.mxu1 %v6521_v21  ;;  %v1363_v49 = vpack.c.bf16 %v771_v46, %v771_v46  ;;  %v1370_v57 = vpack.c.bf16 %v1062_v53, %v1062_v53  ;;  %v1064_v61 = vcombine.high %v1044_v55, %v1060_v42  ;;  %v770_v62 = vcombine.high %v6978_v20, %v761_v22 }
 0x27f   :  { %v1359_v50 = vpack.c.bf16 %v703_v47, %v703_v47  ;;  %v1516_v51 = vsel %vm1373_vm1, %v1368_v48, 0  ;;  %v1360_v58 = vpack.c.bf16 %v704_v56, %v704_v56  ;;  %v772_v7 = vcombine.high %v752_v40, %v768_v41 }
 0x280   :  { %5755 = vmatmul.mubr.msk.bf16.vlgmr.msra.gmra.mrb[4].mxu0 %vm1373_vm1, %v1361_v39  ;;  %v1608_v60 = vsel %vm1373_vm1, %v1370_v57, 0  ;;  %v1372_v63 = vpack.c.bf16 %v1064_v61, %v1064_v61  ;;  %v1362_v5 = vpack.c.bf16 %v770_v62, %v770_v62  ;;  %v265_v10 = vrot.slane %v6841_v31, %v264_v9 }
 0x281   :  { %5765 = vmatpush3.bf16.xpose.msra.mxu0 %v1654_v45  ;;  %5766 = vmatprep.mubr.msk.bf16.mxu0 %vm6522_vm0, %v6521_v21  ;;  %v1364_v8 = vpack.c.bf16 %v772_v7, %v772_v7 }
 0x282   :  { %5776 = vmatprep.subr.bf16.mxu0 %v6521_v21  ;;  %v1700_v6 = vsel %vm1373_vm1, %v1372_v63, 0  ;;  %v7035_v12 = vadd.f32 %v474_v11, %v265_v10  ;;  %v7039_v16 = vadd.f32 %v477_v15, %v265_v10 }
 0x284   :  { %5737 = vmatmul.mubr.msk.bf16.vlgmr.msra.gmra.mrb[8].mxu1 %vm1373_vm1, %v1358_v44  ;;  %1067 = vrot.lane.b32.xlu1 %v7035_v12, %s6524_s5 }
 0x285   :  { %5741 = vmatpush3.bf16.xpose.msra.mxu1 %v1470_v4  ;;  %5742 = vmatprep.mubr.msk.bf16.mxu1 %vm6522_vm0, %v6521_v21 }
 0x286   :  { %5746 = vmatprep.subr.bf16.mxu1 %v6521_v21 }
 0x288   :  { %5767 = vmatmul.mubr.msk.bf16.vlgmr.msra.gmra.mrb[8].mxu0 %vm1373_vm1, %v1363_v49 }
 0x289   :  { %5778 = vmatprep.mubr.msk.bf16.mxu0 %vm6522_vm0, %v6521_v21 }
 0x28c   :  { %5743 = vmatmul.mubr.msk.bf16.vlgmr.msra.gmra.mrb[12].mxu1 %vm1373_vm1, %v1359_v50 }
 0x28d   :  { %5747 = vmatpush3.bf16.xpose.msra.mxu1 %v1516_v51  ;;  %5748 = vmatprep.mubr.msk.bf16.mxu1 %vm6522_vm0, %v6521_v21 }
 0x28e   :  { %5758 = vmatprep.subr.bf16.mxu1 %v6521_v21 }
 0x294   :  { %5749 = vmatmul.mubr.msk.bf16.vlgmr.msra.gmra.mrb[16].mxu1 %vm1373_vm1, %v1360_v58 }
 0x295   :  { %5759 = vmatpush3.bf16.xpose.msra.mxu1 %v1608_v60  ;;  %5760 = vmatprep.mubr.msk.bf16.mxu1 %vm6522_vm0, %v6521_v21 }
 0x296   :  { %5770 = vmatprep.subr.bf16.mxu1 %v6521_v21 }
 0x29c   :  { %5761 = vmatmul.mubr.msk.bf16.vlgmr.msra.gmra.mrb[20].mxu1 %vm1373_vm1, %v1362_v5 }
 0x29d   :  { %5771 = vmatpush3.bf16.xpose.msra.mxu1 %v1700_v6  ;;  %5772 = vmatprep.mubr.msk.bf16.mxu1 %vm6522_vm0, %v6521_v21 }
 0x29e   :  { %5782 = vmatprep.subr.bf16.mxu1 %v6521_v21 }
 0x2a4   :  { %5773 = vmatmul.mubr.msk.bf16.vlgmr.msra.gmra.mrb[24].mxu1 %vm1373_vm1, %v1364_v8 }
 0x2a5   :  { %5784 = vmatprep.mubr.msk.bf16.mxu1 %vm6522_vm0, %v6521_v21 }
 0x2f6   :  { %v1068_v11 = vpop.permute.xlu1 %1067 }
 0x34f   :  { %v1414_v19 = vpop.f32.mrb[4].mxu1 }
 0x350   :  { %v1415_v20 = vadd.f32 %v1414_v19, %v217_v18  ;;  %v5732_v22 = vpop.f32.mrb[5].mxu1 }
 0x351   :  { %v1417_v24 = vpop.f32.mrb[6].mxu1 }
 0x352   :  { %v5733_v54 = vpop.f32.mrb[7].mxu1  ;;  %v1743_v31 = vsel %vm1742_vm2, %v1415_v20, -inf }
 0x353   :  { %1744 = vmax.xlane.f32.xlu0 %v1743_v31  ;;  %v1598_v55 = vpop.f32.mrb[4].mxu0 }
 0x354   :  { %v1599_v42 = vadd.f32 %v1598_v55, %v217_v18  ;;  %v5756_v1 = vpop.f32.mrb[5].mxu0 }
 0x355   :  { %v1601_v43 = vpop.f32.mrb[6].mxu0 }
 0x356   :  { %v5757_v27 = vpop.f32.mrb[7].mxu0  ;;  %v1755_v29 = vsel %vm1742_vm2, %v1599_v42, -inf }
 0x357   :  { %v1460_v25 = vpop.f32.mrb[8].mxu1  ;;  %1756 = vmax.xlane.f32.xlu1 %v1755_v29 }
 0x358   :  { %v1461_v23 = vadd.f32 %v1460_v25, %v217_v18  ;;  %v5738_v26 = vpop.f32.mrb[9].mxu1 }
 0x359   :  { %v1463_v32 = vpop.f32.mrb[10].mxu1 }
 0x35a   :  { %v5739_v34 = vpop.f32.mrb[11].mxu1  ;;  %v1746_v35 = vsel %vm1742_vm2, %v1461_v23, -inf }
 0x35b   :  { %1747 = vmax.xlane.f32.xlu1 %v1746_v35  ;;  %v1690_v36 = vpop.f32.mrb[8].mxu0 }
 0x35c   :  { %v7044_v37 = vadd.f32 %v1690_v36, %v217_v18  ;;  %v5768_v38 = vpop.f32.mrb[9].mxu0 }
 0x35d   :  { %v1693_v40 = vpop.f32.mrb[10].mxu0 }
 0x35e   :  { %v5769_v45 = vpop.f32.mrb[11].mxu0  ;;  %v1761_v2 = vsel %vm1742_vm2, %v7044_v37, -inf }
 0x35f   :  { %v1506_v39 = vpop.f32.mrb[12].mxu1  ;;  %1762 = vmax.xlane.f32.xlu1 %v1761_v2 }
 0x360   :  { %v1507_v41 = vadd.f32 %v1506_v39, %v217_v18  ;;  %v5744_v44 = vpop.f32.mrb[13].mxu1 }
 0x361   :  { %v1509_v3 = vpop.f32.mrb[14].mxu1 }
 0x362   :  { %v5745_v4 = vpop.f32.mrb[15].mxu1  ;;  %v1749_v13 = vsel %vm1742_vm2, %v1507_v41, -inf }
 0x363   :  { %1750 = vmax.xlane.f32.xlu0 %v1749_v13 }
 0x367   :  { %v1552_v46 = vpop.f32.mrb[16].mxu1 }
 0x368   :  { %v1553_v47 = vadd.f32 %v1552_v46, %v217_v18  ;;  %v5750_v48 = vpop.f32.mrb[17].mxu1 }
 0x369   :  { %v1555_v49 = vpop.f32.mrb[18].mxu1 }
 0x36a   :  { %v5751_v50 = vpop.f32.mrb[19].mxu1  ;;  %v1752_v51 = vsel %vm1742_vm2, %v1553_v47, -inf }
 0x36b   :  { %1753 = vmax.xlane.f32.xlu0 %v1752_v51 }
 0x36f   :  { %v1644_v53 = vpop.f32.mrb[20].mxu1 }
 0x370   :  { %v7050_v56 = vadd.f32 %v1644_v53, %v217_v18  ;;  %v5762_v57 = vpop.f32.mrb[21].mxu1  ;;  %1079 = vrot.lane.b32.xlu1 %v7035_v12, %s6523_s22 }
 0x371   :  { %v1647_v58 = vpop.f32.mrb[22].mxu1 }
 0x372   :  { %v5763_v60 = vpop.f32.mrb[23].mxu1  ;;  %v1758_v61 = vsel %vm1742_vm2, %v7050_v56, -inf }
 0x373   :  { %1759 = vmax.xlane.f32.xlu0 %v1758_v61 }
 0x377   :  { %v1736_v62 = vpop.f32.mrb[24].mxu1 }
 0x378   :  { %v7056_v63 = vadd.f32 %v1736_v62, %v217_v18  ;;  %v5774_v5 = vpop.f32.mrb[25].mxu1 }
 0x379   :  { %v1739_v6 = vpop.f32.mrb[26].mxu1 }
 0x37a   :  { %v5775_v7 = vpop.f32.mrb[27].mxu1  ;;  %v1764_v8 = vsel %vm1742_vm2, %v7056_v63, -inf }
 0x37b   :  { %1765 = vmax.xlane.f32.xlu0 %v1764_v8 }
 0x391   :  { %1073 = vrot.lane.b32.xlu0 %v7035_v12, %s7831_s1 }
 0x3e0   :  { %v1745_v9 = vpop.xlane.xlu0 %1744 }
 0x3e1   :  { %v1767_v10 = vsub.f32 %v1415_v20, %v1745_v9 }
 0x3e3   :  { %v1775_v14 = vmul.f32 1.442695, %v1767_v10 }
 0x3e4   :  { %v1757_v15 = vpop.xlane.xlu1 %1756 }
 0x3e5   :  { %6170 = vpow2.f32 %v1775_v14  ;;  %v1771_v17 = vsub.f32 %v1599_v42, %v1757_v15 }
 0x3e7   :  { %v1783_v19 = vmul.f32 1.442695, %v1771_v17 }
 0x3e8   :  { %v1748_v18 = vpop.xlane.xlu1 %1747 }
 0x3e9   :  { %6172 = vpow2.f32 %v1783_v19  ;;  %v1768_v22 = vsub.f32 %v1461_v23, %v1748_v18 }
 0x3eb   :  { %v1777_v24 = vmul.f32 1.442695, %v1768_v22 }
 0x3ec   :  { %v1763_v35 = vpop.xlane.xlu1 %1762 }
 0x3ed   :  { %6174 = vpow2.f32 %v1777_v24 }
 0x3ef   :  { %v7062_v54 = vpop.eup %6170 }
 0x3f0   :  { %v1751_v31 = vpop.xlane.xlu0 %1750  ;;  %v1791_v55 = vsel %vm1742_vm2, %v7062_v54, 0.0  ;;  %v1080_v39 = vpop.permute.xlu1 %1079 }
 0x3f1   :  { %v1769_v1 = vsub.f32 %v1507_v41, %v1751_v31  ;;  %1792 = vadd.xlane.f32.xlu1 %v1791_v55  ;;  %v1101_v44 = vcombine.low %v1068_v11, %v1080_v39  ;;  %v1102_v45 = vcombine.high %v1068_v11, %v1080_v39  ;;  %v1773_v39 = vsub.f32 %v7044_v37, %v1763_v35 }
 0x3f3   :  { %v1779_v20 = vmul.f32 1.442695, %v1769_v1  ;;  %v7066_v25 = vpop.eup %6172  ;;  %v1109_v13 = vrot.slane %v1101_v44, %v6880_v52  ;;  %v1116_v46 = vrot.slane %v1102_v45, %v6880_v52 }
 0x3f4   :  { %v1803_v42 = vsel %vm1742_vm2, %v7066_v25, 0.0 }
 0x3f5   :  { %6176 = vpow2.f32 %v1779_v20  ;;  %1804 = vadd.xlane.f32.xlu0 %v1803_v42 }
 0x3f7   :  { %v7070_v23 = vpop.eup %6174 }
 0x3f8   :  { %v1754_v43 = vpop.xlane.xlu0 %1753  ;;  %v1794_v27 = vsel %vm1742_vm2, %v7070_v23, 0.0 }
 0x3f9   :  { %v1770_v26 = vsub.f32 %v1553_v47, %v1754_v43  ;;  %1795 = vadd.xlane.f32.xlu0 %v1794_v27 }
 0x3fb   :  { %v1781_v29 = vmul.f32 1.442695, %v1770_v26 }
 0x3fd   :  { %6178 = vpow2.f32 %v1781_v29 }
 0x3ff   :  { %v7074_v32 = vpop.eup %6176 }
 0x400   :  { %v1797_v34 = vsel %vm1742_vm2, %v7074_v32, 0.0  ;;  %v1760_v36 = vpop.xlane.xlu0 %1759 }
 0x401   :  { %1798 = vadd.xlane.f32.xlu1 %v1797_v34  ;;  %v1772_v26 = vsub.f32 %v7050_v56, %v1760_v36 }
 0x403   :  { %v1785_v34 = vmul.f32 1.442695, %v1772_v26 }
 0x405   :  { %6180 = vpow2.f32 %v1785_v34 }
 0x407   :  { %v7078_v38 = vpop.eup %6178 }
 0x408   :  { %v7080_v40 = vpop.xlane.xlu0 %1765  ;;  %v1800_v41 = vsel %vm1742_vm2, %v7078_v38, 0.0 }
 0x409   :  { %1801 = vadd.xlane.f32.xlu0 %v1800_v41  ;;  %v1787_v41 = vmul.f32 1.442695, %v1773_v39  ;;  %v1774_v37 = vsub.f32 %v7056_v63, %v7080_v40 }
 0x40b   :  { %6182 = vpow2.f32 %v1787_v41  ;;  %v1789_v35 = vmul.f32 1.442695, %v1774_v37 }
 0x40c   :  { %v1074_v2 = vpop.permute.xlu0 %1073 }
 0x40d   :  { %v1085_v3 = vcombine.low %v7035_v12, %v1074_v2  ;;  %v1086_v4 = vcombine.high %v7035_v12, %v1074_v2  ;;  %6184 = vpow2.f32 %v1789_v35 }
 0x40f   :  { %v1093_v47 = vrot.slane %v1085_v3, %v6880_v52  ;;  %v1100_v48 = vrot.slane %v1086_v4, %v6880_v52  ;;  %v7112_v44 = vpop.eup %6180 }
 0x410   :  { %v1806_v56 = vsel %vm1742_vm2, %v7112_v44, 0.0 }
 0x411   :  { %v1117_v49 = vcombine.low %v1093_v47, %v1109_v13  ;;  %v1118_v50 = vcombine.high %v1093_v47, %v1109_v13  ;;  %v1133_v51 = vcombine.low %v1100_v48, %v1116_v46  ;;  %v1134_v53 = vcombine.high %v1100_v48, %v1116_v46 }
 0x412   :  { %1075 = vrot.lane.b32.xlu1 %v7039_v16, %s7831_s1 }
 0x413   :  { %v1125_v57 = vrot.slane %v1117_v49, %v6883_v59  ;;  %v1132_v58 = vrot.slane %v1118_v50, %v6883_v59  ;;  %v1141_v12 = vrot.slane %v1133_v51, %v6883_v59  ;;  %v1148_v60 = vrot.slane %v1134_v53, %v6883_v59 }
 0x415   :  { %v1221_v61 = vcombine.low %v1125_v57, %v1132_v58  ;;  %v5467_v62 = vcombine.high %v1125_v57, %v1132_v58  ;;  %v1237_v5 = vcombine.low %v1141_v12, %v1148_v60  ;;  %v5468_v6 = vcombine.high %v1141_v12, %v1148_v60  ;;  %v7116_v36 = vpop.eup %6182 }
 0x416   :  { %v1809_v45 = vsel %vm1742_vm2, %v7116_v36, 0.0 }
 0x417   :  { %v1228_v7 = vrot.slane %v1221_v61, %v6880_v52  ;;  %v1236_v8 = vrot.slane %v5467_v62, %v6880_v52  ;;  %v1244_v9 = vrot.slane %v1237_v5, %v6880_v52  ;;  %v1252_v10 = vrot.slane %v5468_v6, %v6880_v52  ;;  %v7124_v2 = vpop.eup %6184 }
 0x418   :  { %v1812_v3 = vsel %vm1742_vm2, %v7124_v2, 0.0 }
 0x419   :  { %v1253_v11 = vcombine.low %v1228_v7, %v1236_v8  ;;  %v1269_v14 = vcombine.low %v1244_v9, %v1252_v10  ;;  %v1254_v15 = vcombine.high %v1228_v7, %v1236_v8  ;;  %v1270_v17 = vcombine.high %v1244_v9, %v1252_v10 }
 0x41b   :  { %v1261_v19 = vrot.slane %v1253_v11, %v6883_v59  ;;  %v1277_v18 = vrot.slane %v1269_v14, %v6883_v59  ;;  %v1268_v22 = vrot.slane %v1254_v15, %v6883_v59  ;;  %v1284_v24 = vrot.slane %v1270_v17, %v6883_v59 }
 0x41d   :  { %v1285_v31 = vcombine.low %v1261_v19, %v1277_v18  ;;  %v1286_v55 = vcombine.high %v1261_v19, %v1277_v18  ;;  %v1287_v1 = vcombine.low %v1268_v22, %v1284_v24  ;;  %v1288_v20 = vcombine.high %v1268_v22, %v1284_v24 }
 0x41f   :  { %1069 = vrot.lane.b32.xlu0 %v7039_v16, %s6524_s5  ;;  %v1839_v42 = vpack.c.bf16 %v1285_v31, %v1285_v31  ;;  %v1840_v43 = vpack.c.bf16 %v1286_v55, %v1286_v55  ;;  %v1841_v49 = vpack.c.bf16 %v1287_v1, %v1287_v1  ;;  %v1842_v57 = vpack.c.bf16 %v1288_v20, %v1288_v20 }
 0x421   :  { %v1852_v27 = vsel %vm1850_vm3, %v1839_v42, 0  ;;  %v1898_v29 = vsel %vm1850_vm3, %v1840_v43, 0  ;;  %v1944_v63 = vsel %vm1850_vm3, %v1841_v49, 0  ;;  %v1990_v12 = vsel %vm1850_vm3, %v1842_v57, 0 }
 0x422   :  { %5777 = vmatpush3.bf16.msra.mxu0 %v1852_v27  ;;  %5783 = vmatpush3.bf16.msra.mxu1 %v1898_v29 }
 0x423   :  { %5788 = vmatprep.subr.bf16.mxu0 %v6521_v21  ;;  %5794 = vmatprep.subr.bf16.mxu1 %v6521_v21 }
 0x436   :  { %1807 = vadd.xlane.f32.xlu1 %v1806_v56 }
 0x43e   :  { %1810 = vadd.xlane.f32.xlu0 %v1809_v45 }
 0x447   :  { %1081 = vrot.lane.b32.xlu1 %v7039_v16, %s6523_s22 }
 0x46b   :  { %1813 = vadd.xlane.f32.xlu1 %v1812_v3 }
 0x47e   :  { %v1793_v4 = vpop.xlane.xlu1 %1792 }
 0x47f   :  { %6186 = vrcp.f32 %v1793_v4 }
 0x482   :  { %v1805_v13 = vpop.xlane.xlu0 %1804 }
 0x486   :  { %v1796_v46 = vpop.xlane.xlu0 %1795 }
 0x487   :  { %6188 = vrcp.f32 %v1796_v46 }
 0x489   :  { %v6187_v47 = vpop.eup %6186 }
 0x48a   :  { %v1823_v48 = vmul.f32 %v6187_v47, %v7062_v54 }
 0x48c   :  { %v1831_v50 = vpack.c.bf16 %v1823_v48, %v1823_v48 }
 0x48e   :  { %5779 = vmatmul.mubr.msk.bf16.vlgmr.msra.gmra.mrb[12].mxu0 %vm1742_vm2, %v1831_v50  ;;  %v1799_v40 = vpop.xlane.xlu1 %1798 }
 0x48f   :  { %5789 = vmatpush3.bf16.msra.mxu0 %v1944_v63  ;;  %6190 = vrcp.f32 %v1799_v40  ;;  %5790 = vmatprep.mubr.msk.bf16.mxu0 %vm6522_vm0, %v6521_v21 }
 0x490   :  { %5800 = vmatprep.subr.bf16.mxu0 %v6521_v21 }
 0x491   :  { %v6189_v51 = vpop.eup %6188 }
 0x492   :  { %v1824_v53 = vmul.f32 %v6189_v51, %v7070_v23  ;;  %v1076_v7 = vpop.permute.xlu1 %1075 }
 0x493   :  { %v1154_v9 = vcombine.high %v7039_v16, %v1076_v7 }
 0x494   :  { %v1832_v54 = vpack.c.bf16 %v1824_v53, %v1824_v53 }
 0x496   :  { %v1802_v58 = vpop.xlane.xlu0 %1801  ;;  %5785 = vmatmul.mubr.msk.bf16.vlgmr.msra.gmra.mrb[28].mxu1 %vm1742_vm2, %v1832_v54 }
 0x497   :  { %6192 = vrcp.f32 %v1802_v58  ;;  %5795 = vmatpush3.bf16.msra.mxu1 %v1990_v12  ;;  %5796 = vmatprep.mubr.msk.bf16.mxu1 %vm6522_vm0, %v6521_v21 }
 0x498   :  { %5806 = vmatprep.subr.bf16.mxu1 %v6521_v21  ;;  %6194 = vrcp.f32 %v1805_v13 }
 0x499   :  { %v6191_v60 = vpop.eup %6190 }
 0x49a   :  { %v1825_v61 = vmul.f32 %v6191_v60, %v7074_v32  ;;  %v1153_v32 = vcombine.low %v7039_v16, %v1076_v7  ;;  %v1070_v10 = vpop.permute.xlu0 %1069 }
 0x49c   :  { %v1833_v62 = vpack.c.bf16 %v1825_v61, %v1825_v61  ;;  %v1161_v17 = vrot.slane %v1153_v32, %v6880_v52 }
 0x49e   :  { %5791 = vmatmul.mubr.msk.bf16.vlgmr.msra.gmra.mrb[16].mxu0 %vm1742_vm2, %v1833_v62 }
 0x49f   :  { %5802 = vmatprep.mubr.msk.bf16.mxu0 %vm6522_vm0, %v6521_v21 }
 0x4a1   :  { %v6193_v23 = vpop.eup %6192 }
 0x4a2   :  { %v1826_v5 = vmul.f32 %v6193_v23, %v7078_v38  ;;  %v1168_v38 = vrot.slane %v1154_v9, %v6880_v52  ;;  %v6195_v13 = vpop.eup %6194 }
 0x4a3   :  { %v1827_v57 = vmul.f32 %v6195_v13, %v7066_v25 }
 0x4a4   :  { %v1834_v6 = vpack.c.bf16 %v1826_v5, %v1826_v5 }
 0x4a5   :  { %v1835_v5 = vpack.c.bf16 %v1827_v57, %v1827_v57 }
 0x4a6   :  { %5797 = vmatmul.mubr.msk.bf16.vlgmr.msra.gmra.mrb[32].mxu1 %vm1742_vm2, %v1834_v6 }
 0x4a7   :  { %5808 = vmatprep.mubr.msk.bf16.mxu1 %vm6522_vm0, %v6521_v21 }
 0x4c3   :  { %v1808_v8 = vpop.xlane.xlu1 %1807 }
 0x4c4   :  { %6196 = vrcp.f32 %v1808_v8 }
 0x4c7   :  { %v1082_v11 = vpop.permute.xlu1 %1081 }
 0x4c8   :  { %v1169_v14 = vcombine.low %v1070_v10, %v1082_v11  ;;  %v1170_v15 = vcombine.high %v1070_v10, %v1082_v11 }
 0x4ca   :  { %v1177_v19 = vrot.slane %v1169_v14, %v6880_v52  ;;  %v1184_v18 = vrot.slane %v1170_v15, %v6880_v52 }
 0x4cb   :  { %v1811_v45 = vpop.xlane.xlu0 %1810 }
 0x4cc   :  { %v1185_v22 = vcombine.low %v1161_v17, %v1177_v19  ;;  %v1186_v24 = vcombine.high %v1161_v17, %v1177_v19  ;;  %v1201_v31 = vcombine.low %v1168_v38, %v1184_v18  ;;  %v1202_v55 = vcombine.high %v1168_v38, %v1184_v18 }
 0x4cd   :  { %6198 = vrcp.f32 %v1811_v45 }
 0x4ce   :  { %v1193_v16 = vrot.slane %v1185_v22, %v6883_v59  ;;  %v1200_v1 = vrot.slane %v1186_v24, %v6883_v59  ;;  %v1209_v20 = vrot.slane %v1201_v31, %v6883_v59  ;;  %v1216_v42 = vrot.slane %v1202_v55, %v6883_v59  ;;  %v6197_v50 = vpop.eup %6196 }
 0x4cf   :  { %v1828_v58 = vmul.f32 %v6197_v50, %v7112_v44 }
 0x4d0   :  { %v1289_v43 = vcombine.low %v1193_v16, %v1200_v1  ;;  %v5469_v26 = vcombine.high %v1193_v16, %v1200_v1  ;;  %v1305_v27 = vcombine.low %v1209_v20, %v1216_v42  ;;  %v5470_v29 = vcombine.high %v1209_v20, %v1216_v42  ;;  %v6106_v42 = vld [vmem:[#allocation10] sm:$0xff]  }
 0x4d1   :  { %v1836_v6 = vpack.c.bf16 %v1828_v58, %v1828_v58 }
 0x4d2   :  { %v1296_v34 = vrot.slane %v1289_v43, %v6880_v52  ;;  %v1304_v39 = vrot.slane %v5469_v26, %v6880_v52  ;;  %v1312_v41 = vrot.slane %v1305_v27, %v6880_v52  ;;  %v1320_v56 = vrot.slane %v5470_v29, %v6880_v52  ;;  %v6107_v43 = vld [vmem:[#allocation10 + $0x8] sm:$0xff]  }
 0x4d4   :  { %v1321_v37 = vcombine.low %v1296_v34, %v1304_v39  ;;  %v1337_v35 = vcombine.low %v1312_v41, %v1320_v56  ;;  %v1322_v3 = vcombine.high %v1296_v34, %v1304_v39  ;;  %v1338_v4 = vcombine.high %v1312_v41, %v1320_v56  ;;  %v6108_v39 = vld [vmem:[#allocation10 + $0x10] sm:$0xff]  }
 0x4d6   :  { %v1329_v46 = vrot.slane %v1321_v37, %v6883_v59  ;;  %v1345_v47 = vrot.slane %v1337_v35, %v6883_v59  ;;  %v1336_v48 = vrot.slane %v1322_v3, %v6883_v59  ;;  %v1352_v49 = vrot.slane %v1338_v4, %v6883_v59 }
 0x4d7   :  { %v6199_v7 = vpop.eup %6198 }
 0x4d8   :  { %v1353_v63 = vcombine.low %v1329_v46, %v1345_v47  ;;  %v1354_v40 = vcombine.high %v1329_v46, %v1345_v47  ;;  %v1355_v51 = vcombine.low %v1336_v48, %v1352_v49  ;;  %v1356_v53 = vcombine.high %v1336_v48, %v1352_v49  ;;  %v6109_v48 = vld [vmem:[#allocation10 + $0x18] sm:$0xff]  }
 0x4d9   :  { %v1829_v8 = vmul.f32 %v6199_v7, %v7116_v36 }
 0x4da   :  { %v1843_v54 = vpack.c.bf16 %v1353_v63, %v1353_v63  ;;  %v1844_v12 = vpack.c.bf16 %v1354_v40, %v1354_v40  ;;  %v1845_v62 = vpack.c.bf16 %v1355_v51, %v1355_v51  ;;  %v1846_v23 = vpack.c.bf16 %v1356_v53, %v1356_v53 }
 0x4db   :  { %v1837_v32 = vpack.c.bf16 %v1829_v8, %v1829_v8 }
 0x4dc   :  { %v2036_v60 = vsel %vm1850_vm3, %v1843_v54, 0  ;;  %v2082_v61 = vsel %vm1850_vm3, %v1844_v12, 0  ;;  %v2128_v25 = vsel %vm1850_vm3, %v1845_v62, 0  ;;  %v2174_v44 = vsel %vm1850_vm3, %v1846_v23, 0  ;;  %v6110_v54 = vld [vmem:[#allocation10 + $0x20] sm:$0xff]  }
 0x4dd   :  { %5801 = vmatpush3.bf16.msra.mxu0 %v2036_v60  ;;  %5807 = vmatpush3.bf16.msra.mxu1 %v2082_v61 }
 0x4de   :  { %5812 = vmatprep.subr.bf16.mxu0 %v6521_v21  ;;  %5818 = vmatprep.subr.bf16.mxu1 %v6521_v21 }
 0x4e0   :  { %5803 = vmatmul.mubr.msk.bf16.vlgmr.msra.gmra.mrb[20].mxu0 %vm1742_vm2, %v1835_v5  ;;  %5809 = vmatmul.mubr.msk.bf16.vlgmr.msra.gmra.mrb[36].mxu1 %vm1742_vm2, %v1836_v6 }
 0x4e1   :  { %5813 = vmatpush3.bf16.msra.mxu0 %v2128_v25  ;;  %5819 = vmatpush3.bf16.msra.mxu1 %v2174_v44  ;;  %v6111_v25 = vld [vmem:[#allocation10 + $0x28] sm:$0xff]  }
 0x4e2   :  { %5814 = vmatprep.mubr.msk.bf16.mxu0 %vm6522_vm0, %v6521_v21  ;;  %5820 = vmatprep.mubr.msk.bf16.mxu1 %vm6522_vm0, %v6521_v21 }
 0x4e3   :  { %5824 = vmatprep.subr.bf16.mxu0 %v6521_v21  ;;  %5844 = vmatprep.subr.bf16.mxu1 %v6521_v21 }
 0x4e8   :  { %5815 = vmatmul.mubr.msk.bf16.vlgmr.msra.gmra.mrb[24].mxu0 %vm1742_vm2, %v1837_v32 }
 0x4e9   :  { %5840 = vmatprep.mubr.msk.bf16.mxu0 %vm6522_vm0, %v6521_v21  ;;  %5825 = vmatpush3.bf16.msra.mxu0 %v6106_v42 }
 0x4ea   :  { %5826 = vmatprep.subr.bf16.mxu0 %v6521_v21 }
 0x4ed   :  { %5827 = vmatpush3.bf16.msra.mxu0 %v6107_v43 }
 0x4ee   :  { %5828 = vmatprep.subr.bf16.mxu0 %v6521_v21 }
 0x4f1   :  { %5829 = vmatpush3.bf16.msra.mxu0 %v6108_v39 }
 0x4f2   :  { %5830 = vmatprep.subr.bf16.mxu0 %v6521_v21 }
 0x4f5   :  { %5831 = vmatpush3.bf16.msra.mxu0 %v6109_v48 }
 0x4f6   :  { %5832 = vmatprep.subr.bf16.mxu0 %v6521_v21 }
 0x4f8   :  { %v1814_v9 = vpop.xlane.xlu1 %1813 }
 0x4f9   :  { %6200 = vrcp.f32 %v1814_v9  ;;  %5833 = vmatpush3.bf16.msra.mxu0 %v6110_v54 }
 0x4fa   :  { %5834 = vmatprep.subr.bf16.mxu0 %v6521_v21 }
 0x4fd   :  { %5835 = vmatpush3.bf16.msra.mxu0 %v6111_v25 }
 0x4fe   :  { %5836 = vmatprep.subr.bf16.mxu0 %v6521_v21 }
 0x503   :  { %v6201_v10 = vpop.eup %6200 }
 0x504   :  { %v1830_v36 = vmul.f32 %v6201_v10, %v7124_v2 }
 0x506   :  { %v1838_v11 = vpack.c.bf16 %v1830_v36, %v1830_v36 }
 0x508   :  { %5821 = vmatmul.mubr.msk.bf16.vlgmr.msra.gmra.mrb[40].mxu1 %vm1742_vm2, %v1838_v11 }
 0x509   :  { %5860 = vmatprep.mubr.msk.bf16.mxu1 %vm6522_vm0, %v6521_v21 }
 0x561   :  { %v1888_v14 = vpop.f32.mrb[12].mxu0 }
 0x562   :  { %v5780_v15 = vpop.f32.mrb[13].mxu0 }
 0x563   :  { %v1891_v17 = vpop.f32.mrb[14].mxu0 }
 0x564   :  { %v5781_v38 = vpop.f32.mrb[15].mxu0 }
 0x569   :  { %v1934_v19 = vpop.f32.mrb[28].mxu1 }
 0x56a   :  { %v5786_v18 = vpop.f32.mrb[29].mxu1 }
 0x56b   :  { %v1937_v22 = vpop.f32.mrb[30].mxu1 }
 0x56c   :  { %v5787_v24 = vpop.f32.mrb[31].mxu1 }
 0x571   :  { %v1980_v31 = vpop.f32.mrb[16].mxu0 }
 0x572   :  { %v2216_v55 = vcombine.low %v1888_v14, %v1980_v31  ;;  %v2217_v16 = vcombine.high %v1888_v14, %v1980_v31  ;;  %v5792_v1 = vpop.f32.mrb[17].mxu0 }
 0x573   :  { %v1983_v20 = vpop.f32.mrb[18].mxu0 }
 0x574   :  { %v5793_v2 = vpop.f32.mrb[19].mxu0  ;;  %v2224_v56 = vrot.slane %v2216_v55, %v6880_v52  ;;  %v2231_v45 = vrot.slane %v2217_v16, %v6880_v52 }
 0x579   :  { %v2026_v26 = vpop.f32.mrb[32].mxu1 }
 0x57a   :  { %v2232_v27 = vcombine.low %v1934_v19, %v2026_v26  ;;  %v2233_v29 = vcombine.high %v1934_v19, %v2026_v26  ;;  %v5798_v34 = vpop.f32.mrb[33].mxu1 }
 0x57b   :  { %v2029_v41 = vpop.f32.mrb[34].mxu1 }
 0x57c   :  { %v2240_v37 = vrot.slane %v2232_v27, %v6880_v52  ;;  %v2247_v35 = vrot.slane %v2233_v29, %v6880_v52  ;;  %v5799_v3 = vpop.f32.mrb[35].mxu1 }
 0x57e   :  { %v2248_v4 = vcombine.low %v2224_v56, %v2240_v37  ;;  %v2249_v13 = vcombine.high %v2224_v56, %v2240_v37  ;;  %v2264_v46 = vcombine.low %v2231_v45, %v2247_v35  ;;  %v2265_v47 = vcombine.high %v2231_v45, %v2247_v35 }
 0x580   :  { %v2256_v49 = vrot.slane %v2248_v4, %v6883_v59  ;;  %v2263_v50 = vrot.slane %v2249_v13, %v6883_v59  ;;  %v2272_v63 = vrot.slane %v2264_v46, %v6883_v59  ;;  %v2279_v40 = vrot.slane %v2265_v47, %v6883_v59 }
 0x582   :  { %v2352_v51 = vcombine.low %v2256_v49, %v2263_v50  ;;  %v5487_v53 = vcombine.high %v2256_v49, %v2263_v50  ;;  %v2368_v57 = vcombine.low %v2272_v63, %v2279_v40  ;;  %v5488_v58 = vcombine.high %v2272_v63, %v2279_v40 }
 0x584   :  { %v2359_v12 = vrot.slane %v2352_v51, %v6880_v52  ;;  %v2367_v60 = vrot.slane %v5487_v53, %v6880_v52  ;;  %v2375_v61 = vrot.slane %v2368_v57, %v6880_v52  ;;  %v2383_v62 = vrot.slane %v5488_v58, %v6880_v52  ;;  %v6112_v53 = vld [vmem:[#allocation10 + $0x30] sm:$0xff]  }
 0x585   :  { %5837 = vmatpush3.bf16.msra.mxu0 %v6112_v53 }
 0x586   :  { %v2385_v23 = vcombine.high %v2359_v12, %v2367_v60  ;;  %v2401_v5 = vcombine.high %v2375_v61, %v2383_v62  ;;  %v2384_v6 = vcombine.low %v2359_v12, %v2367_v60  ;;  %v2400_v7 = vcombine.low %v2375_v61, %v2383_v62  ;;  %5838 = vmatprep.subr.bf16.mxu0 %v6521_v21 }
 0x588   :  { %v7208_v44 = vrot.slane %v2385_v23, %v6883_v59  ;;  %v7211_v8 = vrot.slane %v2401_v5, %v6883_v59  ;;  %v7214_v32 = vrot.slane %v2384_v6, %v6883_v59  ;;  %v7217_v9 = vrot.slane %v2400_v7, %v6883_v59 }
 0x58a   :  { %v2418_v10 = vcombine.low %v7208_v44, %v7211_v8  ;;  %v2416_v36 = vcombine.low %v7214_v32, %v7217_v9  ;;  %v2417_v11 = vcombine.high %v7214_v32, %v7217_v9  ;;  %v2419_v14 = vcombine.high %v7208_v44, %v7211_v8  ;;  %v6114_v32 = vld [vmem:[#allocation13] ss:$8 sps:$4 sm:$0xff]   ;;  %v6116_v9 = vld [vmem:[#allocation13 + $0x4] ss:$8 sps:$4 sm:$0xff]  }
 0x5b3   :  { %v2072_v15 = vpop.f32.mrb[20].mxu0  ;;  %v2118_v17 = vpop.f32.mrb[36].mxu1 }
 0x5b4   :  { %v5804_v38 = vpop.f32.mrb[21].mxu0  ;;  %v5810_v19 = vpop.f32.mrb[37].mxu1 }
 0x5b5   :  { %v2075_v18 = vpop.f32.mrb[22].mxu0  ;;  %v2121_v22 = vpop.f32.mrb[38].mxu1 }
 0x5b6   :  { %v5805_v24 = vpop.f32.mrb[23].mxu0  ;;  %v5811_v31 = vpop.f32.mrb[39].mxu1 }
 0x5bb   :  { %v2164_v55 = vpop.f32.mrb[24].mxu0 }
 0x5bc   :  { %v2284_v16 = vcombine.low %v2072_v15, %v2164_v55  ;;  %v2285_v1 = vcombine.high %v2072_v15, %v2164_v55  ;;  %v5816_v20 = vpop.f32.mrb[25].mxu0  ;;  %v6113_v15 = vld [vmem:[#allocation10 + $0x38] sm:$0xff]  }
 0x5bd   :  { %v2167_v2 = vpop.f32.mrb[26].mxu0  ;;  %5839 = vmatpush3.bf16.msra.mxu0 %v6113_v15  ;;  %v6140_v15 = vld [vmem:[#allocation11 + $0x10] sm:$0xff]  }
 0x5be   :  { %v5817_v42 = vpop.f32.mrb[27].mxu0  ;;  %v2292_v39 = vrot.slane %v2284_v16, %v6880_v52  ;;  %v2299_v41 = vrot.slane %v2285_v1, %v6880_v52  ;;  %2901 = vmatprep.subr.bf16.mxu0 %v6116_v9 }
 0x5db   :  { %v2210_v43 = vpop.f32.mrb[40].mxu1 }
 0x5dc   :  { %v2300_v26 = vcombine.low %v2118_v17, %v2210_v43  ;;  %v2301_v27 = vcombine.high %v2118_v17, %v2210_v43  ;;  %v5822_v29 = vpop.f32.mrb[41].mxu1 }
 0x5dd   :  { %v2213_v34 = vpop.f32.mrb[42].mxu1 }
 0x5de   :  { %v2308_v56 = vrot.slane %v2300_v26, %v6880_v52  ;;  %v2315_v45 = vrot.slane %v2301_v27, %v6880_v52  ;;  %v5823_v37 = vpop.f32.mrb[43].mxu1 }
 0x5df   :  { %v6123_v37 = vld [vmem:[#allocation13 + $0x30] ss:$8 sps:$4 sm:$0xff]  }
 0x5e0   :  { %v2316_v35 = vcombine.low %v2292_v39, %v2308_v56  ;;  %v2317_v3 = vcombine.high %v2292_v39, %v2308_v56  ;;  %v2332_v4 = vcombine.low %v2299_v41, %v2315_v45  ;;  %v2333_v13 = vcombine.high %v2299_v41, %v2315_v45  ;;  %v6117_v39 = vld [vmem:[#allocation13 + $0x10] ss:$8 sps:$4 sm:$0xff]   ;;  %v6122_v41 = vld [vmem:[#allocation13 + $0x24] ss:$8 sps:$4 sm:$0xff]   ;;  %v6120_v56 = vld [vmem:[#allocation13 + $0x20] ss:$8 sps:$4 sm:$0xff]  }
 0x5e1   :  { %v6125_v45 = vld [vmem:[#allocation13 + $0x34] ss:$8 sps:$4 sm:$0xff]  }
 0x5e2   :  { %v2324_v46 = vrot.slane %v2316_v35, %v6883_v59  ;;  %v2331_v47 = vrot.slane %v2317_v3, %v6883_v59  ;;  %v2340_v48 = vrot.slane %v2332_v4, %v6883_v59  ;;  %v2347_v49 = vrot.slane %v2333_v13, %v6883_v59  ;;  %v6128_v35 = vld [vmem:[#allocation13 + $0x44] ss:$8 sps:$4 sm:$0xff]   ;;  %v6126_v3 = vld [vmem:[#allocation13 + $0x40] ss:$8 sps:$4 sm:$0xff]   ;;  %v6129_v4 = vld [vmem:[#allocation13 + $0x50] ss:$8 sps:$4 sm:$0xff]  }
 0x5e3   :  { %v6134_v13 = vld [vmem:[#allocation13 + $0x64] ss:$8 sps:$4 sm:$0xff]  }
 0x5e4   :  { %v2420_v50 = vcombine.low %v2324_v46, %v2331_v47  ;;  %v5489_v63 = vcombine.high %v2324_v46, %v2331_v47  ;;  %v2436_v40 = vcombine.low %v2340_v48, %v2347_v49  ;;  %v5490_v51 = vcombine.high %v2340_v48, %v2347_v49  ;;  %v6132_v46 = vld [vmem:[#allocation13 + $0x60] ss:$8 sps:$4 sm:$0xff]   ;;  %v6137_v47 = vld [vmem:[#allocation13 + $0x74] ss:$8 sps:$4 sm:$0xff]   ;;  %v6135_v48 = vld [vmem:[#allocation13 + $0x70] ss:$8 sps:$4 sm:$0xff]  }
 0x5e5   :  { %v215_v49 = vld [vmem:[#allocation5] sm:$0xff] }
 0x5e6   :  { %v2427_v57 = vrot.slane %v2420_v50, %v6880_v52  ;;  %v2435_v58 = vrot.slane %v5489_v63, %v6880_v52  ;;  %v2443_v54 = vrot.slane %v2436_v40, %v6880_v52  ;;  %v2451_v12 = vrot.slane %v5490_v51, %v6880_v52  ;;  %v216_v50 = vld [vmem:[#allocation5 + $0x8] sm:$0xff]  ;;  %v5491_v40 = vld [vmem:[%s7833_s24] ss:$0 sm:$0xff]  ;;  %s5418_s24 = sshll.u32 %s6527_s10, 4  ;;  %s5419_s24 = int_to_ptr.vmem [resolvable:$true] %s5418_s24 }
 0x5e7   :  { %v2792_v63 = vpack.c.bf16 %v216_v50, %v215_v49  ;;  %s6468_s6 = scalar_lea.vmem %s5419_s24, 256  ;;  %p6473_p11 = scmp.lt.s32.totalorder %s5419_s24, %s5419_s24 }
 0x5e8   :  { %v2453_v60 = vcombine.high %v2427_v57, %v2435_v58  ;;  %v2469_v61 = vcombine.high %v2443_v54, %v2451_v12  ;;  %v2452_v62 = vcombine.low %v2427_v57, %v2435_v58  ;;  %v2468_v23 = vcombine.low %v2443_v54, %v2451_v12  ;;  %v6246_v54 = vld [vmem:[#allocation2] sm:$0xff]  ;;  %p6469_p10 = scmp.ne.s32.totalorder %s5419_s24, %s6468_s6  ;;  %p6474_p12 = scmp.lt.s32.totalorder %s6468_s6, %s6468_s6 }
 0x5ea   :  { %v2467_v5 = vrot.slane %v2453_v60, %v6883_v59  ;;  %v2483_v6 = vrot.slane %v2469_v61, %v6883_v59  ;;  %v2460_v7 = vrot.slane %v2452_v62, %v6883_v59  ;;  %v2476_v25 = vrot.slane %v2468_v23, %v6883_v59  ;;  %v6247_v62 = vld [vmem:[#allocation2 + $0x8] sm:$0xff]  ;;  %p6475_p13 = por %p6474_p12, %p6473_p11 }
 0x5ec   :  { %v2486_v17 = vcombine.low %v2467_v5, %v2483_v6  ;;  %v2485_v38 = vcombine.high %v2460_v7, %v2476_v25  ;;  %v2484_v19 = vcombine.low %v2460_v7, %v2476_v25  ;;  %v2487_v18 = vcombine.high %v2467_v5, %v2483_v6  ;;  %v6138_v7 = vld [vmem:[#allocation11] sm:$0xff]   ;;  %v6139_v25 = vld [vmem:[#allocation11 + $0x8] sm:$0xff]   ;;  %p6476_p0 = pnand %p6475_p13, %p6469_p10 }
 0x5ed   :  { %5845 = vmatpush3.bf16.msra.mxu1 %v6138_v7 }
 0x5ee   :  { %v6049_v22 = vpack.i.bf16 %v2486_v17, %v2418_v10  ;;  %v6044_v24 = vpack.i.bf16 %v2485_v38, %v2417_v11  ;;  %v6054_v31 = vpack.i.bf16 %v2487_v18, %v2419_v14  ;;  %5846 = vmatprep.subr.bf16.mxu1 %v6521_v21  ;;  %v6141_v17 = vld [vmem:[#allocation11 + $0x18] sm:$0xff]   ;;  %v6142_v38 = vld [vmem:[#allocation11 + $0x20] sm:$0xff]   ;;  %v6144_v18 = vld [vmem:[#allocation11 + $0x30] sm:$0xff]  }
 0x5f0   :  { %6050 = vrot.lane.b32.xlu1 %v6049_v22, %s7831_s1  ;;  %6045 = vrot.lane.b32.xlu0 %v6044_v24, %s6523_s22  ;;  %v6145_v22 = vld [vmem:[#allocation11 + $0x38] sm:$0xff]  }
 0x5f1   :  { %5847 = vmatpush3.bf16.msra.mxu1 %v6139_v25  ;;  %v2809_v24 = vld [vmem:[%s7784_s11] sm:$0x3] }
 0x5f2   :  { %5848 = vmatprep.subr.bf16.mxu1 %v6521_v21 }
 0x5f4   :  { %6055 = vrot.lane.b32.xlu0 %v6054_v31, %s6524_s5  ;;  %v2814_v31 = vrot.slane %v2809_v24, %v256_v33 }
 0x5f5   :  { %5849 = vmatpush3.bf16.msra.mxu1 %v6140_v15 }
 0x5f6   :  { %5850 = vmatprep.subr.bf16.mxu1 %v6521_v21 }
 0x5f9   :  { %5851 = vmatpush3.bf16.msra.mxu1 %v6141_v17 }
 0x5fa   :  { %5852 = vmatprep.subr.bf16.mxu1 %v6521_v21 }
 0x5fd   :  { %5853 = vmatpush3.bf16.msra.mxu1 %v6142_v38 }
 0x5fe   :  { %5854 = vmatprep.subr.bf16.mxu1 %v6521_v21 }
 0x662   :  { %v6051_v55 = vpop.permute.xlu1 %6050  ;;  %v6046_v16 = vpop.permute.xlu0 %6045 }
 0x663   :  { %v6048_v1 = vunpack.i.h.bf16 %v6046_v16  ;;  %v6047_v20 = vunpack.i.l.bf16 %v6046_v16  ;;  %v6053_v2 = vunpack.i.h.bf16 %v6051_v55  ;;  %v6052_v42 = vunpack.i.l.bf16 %v6051_v55 }
 0x664   :  { %v2818_v55 = vrot.slane %v2809_v24, %v260_v30 }
 0x665   :  { %v2512_v44 = vsel %vm1373_vm1, %v2416_v36, %v6047_v20  ;;  %v2513_v8 = vsel %vm1373_vm1, %v2484_v19, %v6048_v1  ;;  %v6119_v36 = vld [vmem:[#allocation13 + $0x14] ss:$8 sps:$4 sm:$0xff]   ;;  %v6143_v19 = vld [vmem:[#allocation11 + $0x28] sm:$0xff]  }
 0x666   :  { %v6056_v10 = vpop.permute.xlu0 %6055  ;;  %v2515_v43 = vsel %vm2514_vm4, %v2512_v44, %v6052_v42  ;;  %v2516_v26 = vsel %vm2514_vm4, %v2513_v8, %v6053_v2  ;;  %5855 = vmatpush3.bf16.msra.mxu1 %v6143_v19 }
 0x667   :  { %v6058_v11 = vunpack.i.h.bf16 %v6056_v10  ;;  %v6057_v14 = vunpack.i.l.bf16 %v6056_v10  ;;  %5856 = vmatprep.subr.bf16.mxu1 %v6521_v21 }
 0x669   :  { %v2518_v27 = vsel %vm2517_vm5, %v2515_v43, %v6057_v14  ;;  %v2519_v29 = vsel %vm2517_vm5, %v2516_v26, %v6058_v11 }
 0x66a   :  { %v2520_v34 = vpack.c.bf16 %v2519_v29, %v2518_v27  ;;  %5857 = vmatpush3.bf16.msra.mxu1 %v6144_v18 }
 0x66b   :  { %5858 = vmatprep.subr.bf16.mxu1 %v6521_v21 }
 0x66c   :  { %5841 = vmatmul.mubr.bf16.vlgmr.msra.gmra.mrb[28].mxu0 %v2520_v34 }
 0x66d   :  { %2933 = vmatprep.mubr.bf16.mxu0 %v6520_v0  ;;  %2902 = vmatpush1.bf16.msra.mxu0 %v6114_v32  ;;  %v6131_v0 = vld [vmem:[#allocation13 + $0x54] ss:$8 sps:$4 sm:$0xff]  }
 0x66e   :  { %2903 = vmatprep.subr.bf16.mxu0 %v6119_v36  ;;  %5859 = vmatpush3.bf16.msra.mxu1 %v6145_v22 }
 0x66f   :  { %5864 = vmatprep.subr.bf16.mxu1 %v6521_v21 }
 0x671   :  { %2904 = vmatpush1.bf16.msra.mxu0 %v6117_v39 }
 0x672   :  { %2905 = vmatprep.subr.bf16.mxu0 %v6122_v41 }
 0x675   :  { %2906 = vmatpush1.bf16.msra.mxu0 %v6120_v56 }
 0x676   :  { %2907 = vmatprep.subr.bf16.mxu0 %v6125_v45  ;;  %v5500_v45 = vld [vmem:[%s7791_s18] ss:$0 sm:$0xff] }
 0x679   :  { %2908 = vmatpush1.bf16.msra.mxu0 %v6123_v37 }
 0x67a   :  { %2909 = vmatprep.subr.bf16.mxu0 %v6128_v35 }
 0x67d   :  { %2910 = vmatpush1.bf16.msra.mxu0 %v6126_v3 }
 0x67e   :  { %2911 = vmatprep.subr.bf16.mxu0 %v6131_v0 }
 0x681   :  { %2912 = vmatpush1.bf16.msra.mxu0 %v6129_v4 }
 0x682   :  { %2913 = vmatprep.subr.bf16.mxu0 %v6134_v13  ;;  %v5501_v13 = vld [vmem:[%s7792_s19] ss:$0 sm:$0xff] }
 0x685   :  { %2914 = vmatpush1.bf16.msra.mxu0 %v6132_v46 }
 0x686   :  { %2915 = vmatprep.subr.bf16.mxu0 %v6137_v47 }
 0x689   :  { %2916 = vmatpush1.bf16.msra.mxu0 %v6135_v48 }
 0x68a   :  { %5888 = vmatprep.subr.bf16.mxu0 %v6521_v21 }
 0x68c   :  { %2934 = vmatmul.mubr.bf16.vlgmr.msra.gmra.mrb[32].mxu0 %v2792_v63 }
 0x68d   :  { %5890 = vmatprep.mubr.msk.bf16.mxu0 %vm6522_vm0, %v6521_v21 }
 0x73f   :  { %v2626_v51 = vpop.f32.mrb[28].mxu0 }
 0x740   :  { %v2627_v53 = vadd.f32 %v5491_v40, %v2626_v51  ;;  %v5842_v57 = vpop.f32.mrb[29].mxu0 }
 0x741   :  { %v2629_v58 = vpop.f32.mrb[30].mxu0 }
 0x742   :  { %v7267_v12 = vadd.f32 %v6246_v54, %v2627_v53  ;;  %v2630_v60 = vadd.f32 %v5491_v40, %v2629_v58  ;;  %v5843_v61 = vpop.f32.mrb[31].mxu0 }
 0x744   :  { %v7269_v23 = vadd.f32 %v6247_v62, %v2630_v60  ;;  %2635 = vadd.xlane.f32.xlu1 %v7267_v12  ;;  %v2641_v6 = vmul.f32 %v7267_v12, %v7267_v12 }
 0x746   :  { %2637 = vadd.xlane.f32.xlu0 %v7269_v23  ;;  %v2642_v5 = vmul.f32 %v7269_v23, %v7269_v23 }
 0x748   :  { %2645 = vadd.xlane.f32.xlu1 %v2642_v5 }
 0x74a   :  { %2643 = vadd.xlane.f32.xlu0 %v2641_v6 }
 0x75f   :  { %v2935_v16 = vpop.f32.mrb[32].mxu0 }
 0x760   :  { %v2936_v1 = vadd.f32 %v2935_v16, %v2814_v31  ;;  %v2937_v20 = vpop.f32.mrb[33].mxu0 }
 0x761   :  { %v7292_v2 = vadd.f32 %v2937_v20, %v2818_v55  ;;  %v2939_v42 = vpop.f32.mrb[34].mxu0 }
 0x762   :  { %3244 = vrot.lane.b32.xlu1 %v2936_v1, %s7831_s1  ;;  %3238 = vrot.lane.b32.xlu0 %v2936_v1, %s6524_s5  ;;  %v7296_v44 = vadd.f32 %v2939_v42, %v2814_v31  ;;  %v2941_v8 = vpop.f32.mrb[35].mxu0 }
 0x763   :  { %v7298_v10 = vadd.f32 %v2941_v8, %v2818_v55 }
 0x766   :  { %3250 = vrot.lane.b32.xlu1 %v2936_v1, %s6523_s22 }
 0x7d1   :  { %v2636_v33 = vpop.xlane.xlu1 %2635 }
 0x7d2   :  { %v2639_v30 = vmul.f32 0.03125, %v2636_v33 }
 0x7d3   :  { %v2638_v28 = vpop.xlane.xlu0 %2637 }
 0x7d4   :  { %v2640_v11 = vmul.f32 0.03125, %v2638_v28  ;;  %v2649_v29 = vmul.f32 %v2639_v30, %v2639_v30  ;;  %v2653_v37 = vsub.f32 %v7267_v12, %v2639_v30 }
 0x7d5   :  { %v2646_v14 = vpop.xlane.xlu1 %2645 }
 0x7d6   :  { %v2650_v43 = vmul.f32 %v2640_v11, %v2640_v11  ;;  %v2648_v26 = vmul.f32 0.03125, %v2646_v14  ;;  %v2654_v41 = vsub.f32 %v7269_v23, %v2640_v11 }
 0x7d7   :  { %v2644_v27 = vpop.xlane.xlu0 %2643 }
 0x7d8   :  { %v2652_v34 = vsub.f32 %v2648_v26, %v2650_v43  ;;  %v2647_v32 = vmul.f32 0.03125, %v2644_v27 }
 0x7d9   :  { %v3245_v50 = vpop.permute.xlu1 %3244 }
 0x7da   :  { %v2656_v9 = vadd.f32 1e-05, %v2652_v34  ;;  %v2651_v36 = vsub.f32 %v2647_v32, %v2649_v29  ;;  %v3256_v51 = vcombine.low %v2936_v1, %v3245_v50  ;;  %v3257_v53 = vcombine.high %v2936_v1, %v3245_v50  ;;  %v5502_v32 = vld [vmem:[%s7782_s9] ss:$0 sm:$0xff] }
 0x7db   :  { %v3239_v40 = vpop.permute.xlu0 %3238 }
 0x7dc   :  { %6202 = vrsqrt.f32 %v2656_v9  ;;  %v2655_v39 = vadd.f32 1e-05, %v2651_v36  ;;  %v3264_v54 = vrot.slane %v3256_v51, %v6880_v52  ;;  %v3271_v12 = vrot.slane %v3257_v53, %v6880_v52 }
 0x7dd   :  { %v3251_v63 = vpop.permute.xlu1 %3250 }
 0x7de   :  { %6204 = vrsqrt.f32 %v2655_v39  ;;  %v3272_v57 = vcombine.low %v3239_v40, %v3251_v63  ;;  %v3273_v58 = vcombine.high %v3239_v40, %v3251_v63 }
 0x7e0   :  { %v3280_v60 = vrot.slane %v3272_v57, %v6880_v52  ;;  %v3287_v61 = vrot.slane %v3273_v58, %v6880_v52 }
 0x7e2   :  { %v3288_v62 = vcombine.low %v3264_v54, %v3280_v60  ;;  %v3289_v23 = vcombine.high %v3264_v54, %v3280_v60  ;;  %v3304_v5 = vcombine.low %v3271_v12, %v3287_v61  ;;  %v3305_v6 = vcombine.high %v3271_v12, %v3287_v61 }
 0x7e4   :  { %v3296_v7 = vrot.slane %v3288_v62, %v6883_v59  ;;  %v3303_v25 = vrot.slane %v3289_v23, %v6883_v59  ;;  %v3312_v15 = vrot.slane %v3304_v5, %v6883_v59  ;;  %v3319_v17 = vrot.slane %v3305_v6, %v6883_v59 }
 0x7e6   :  { %v6203_v56 = vpop.eup %6202  ;;  %v3392_v38 = vcombine.low %v3296_v7, %v3303_v25  ;;  %v5531_v19 = vcombine.high %v3296_v7, %v3303_v25  ;;  %v3408_v18 = vcombine.low %v3312_v15, %v3319_v17  ;;  %v5532_v22 = vcombine.high %v3312_v15, %v3319_v17 }
 0x7e7   :  { %v2660_v35 = vmul.f32 %v6203_v56, %v2654_v41 }
 0x7e8   :  { %v6205_v3 = vpop.eup %6204  ;;  %v3399_v24 = vrot.slane %v3392_v38, %v6880_v52  ;;  %v3407_v31 = vrot.slane %v5531_v19, %v6880_v52  ;;  %v3415_v55 = vrot.slane %v3408_v18, %v6880_v52  ;;  %v3423_v16 = vrot.slane %v5532_v22, %v6880_v52 }
 0x7e9   :  { %v2659_v0 = vmul.f32 %v6205_v3, %v2653_v37  ;;  %v2669_v4 = vmul.f32 %v5500_v45, %v2660_v35 }
 0x7ea   :  { %v3424_v1 = vcombine.low %v3399_v24, %v3407_v31  ;;  %v3440_v20 = vcombine.low %v3415_v55, %v3423_v16  ;;  %v3425_v42 = vcombine.high %v3399_v24, %v3407_v31  ;;  %v3441_v8 = vcombine.high %v3415_v55, %v3423_v16 }
 0x7eb   :  { %v2668_v46 = vmul.f32 %v5500_v45, %v2659_v0  ;;  %v7311_v48 = vadd.f32 %v5501_v13, %v2669_v4 }
 0x7ec   :  { %v3432_v33 = vrot.slane %v3424_v1, %v6883_v59  ;;  %v3448_v28 = vrot.slane %v3440_v20, %v6883_v59  ;;  %v3439_v30 = vrot.slane %v3425_v42, %v6883_v59  ;;  %v3455_v11 = vrot.slane %v3441_v8, %v6883_v59 }
 0x7ed   :  { %v7309_v47 = vadd.f32 %v5501_v13, %v2668_v46 }
 0x7ee   :  { %v3456_v14 = vcombine.low %v3432_v33, %v3448_v28  ;;  %v7333_v43 = vcombine.high %v3432_v33, %v3448_v28  ;;  %v7335_v26 = vcombine.low %v3439_v30, %v3455_v11  ;;  %v7337_v29 = vcombine.high %v3439_v30, %v3455_v11 }
 0x7ef   :  { %v2679_v49 = vpack.c.bf16 %v7311_v48, %v7309_v47 }
 0x7f0   :  { %v3828_v27 = vpack.c.bf16 %v3456_v14, %v3456_v14 }
 0x7f1   :  { %5861 = vmatmul.mubr.bf16.vlgmr.msra.gmra.mrb[44].mxu1 %v2679_v49 }
 0x7f2   :  { %5866 = vmatprep.mubr.msk.bf16.mxu1 %vm6522_vm0, %v6521_v21  ;;  %v3840_v34 = vsel %vm1373_vm1, %v3828_v27, 0 }
 0x7f3   :  { %5865 = vmatpush3.bf16.xpose.msra.mxu1 %v3840_v34 }
 0x7f4   :  { %5870 = vmatprep.subr.bf16.mxu1 %v6521_v21 }
 0x8c4   :  { %v2785_v9 = vpop.f32.mrb[44].mxu1 }
 0x8c5   :  { %v2786_v36 = vadd.f32 %v5502_v32, %v2785_v9  ;;  %v5862_v39 = vpop.f32.mrb[45].mxu1 }
 0x8c6   :  { %v2788_v41 = vpop.f32.mrb[46].mxu1 }
 0x8c7   :  { %2952 = vrot.lane.b32.xlu1 %v2786_v36, %s7831_s1  ;;  %2946 = vrot.lane.b32.xlu0 %v2786_v36, %s6524_s5  ;;  %v5863_v56 = vpop.f32.mrb[47].mxu1  ;;  %v7353_v45 = vadd.f32 %v5502_v32, %v2788_v41  ;;  %v3829_v41 = vpack.c.bf16 %v7333_v43, %v7333_v43 }
 0x8cb   :  { %3240 = vrot.lane.b32.xlu1 %v7296_v44, %s6524_s5  ;;  %2958 = vrot.lane.b32.xlu0 %v2786_v36, %s6523_s22 }
 0x8cf   :  { %3252 = vrot.lane.b32.xlu1 %v7296_v44, %s6523_s22  ;;  %3246 = vrot.lane.b32.xlu0 %v7296_v44, %s7831_s1 }
 0x8d3   :  { %2954 = vrot.lane.b32.xlu1 %v7353_v45, %s7831_s1  ;;  %2948 = vrot.lane.b32.xlu0 %v7353_v45, %s6524_s5 }
 0x8d7   :  { %2960 = vrot.lane.b32.xlu0 %v7353_v45, %s6523_s22 }
 0x939   :  { %v2953_v37 = vpop.permute.xlu1 %2952  ;;  %v2947_v35 = vpop.permute.xlu0 %2946 }
 0x93a   :  { %v2964_v3 = vcombine.low %v2786_v36, %v2953_v37  ;;  %v2965_v0 = vcombine.high %v2786_v36, %v2953_v37 }
 0x93c   :  { %v2972_v50 = vrot.slane %v2964_v3, %v6880_v52  ;;  %v2979_v63 = vrot.slane %v2965_v0, %v6880_v52 }
 0x93d   :  { %v3241_v4 = vpop.permute.xlu1 %3240  ;;  %v2959_v13 = vpop.permute.xlu0 %2958 }
 0x93e   :  { %v2980_v46 = vcombine.low %v2947_v35, %v2959_v13  ;;  %v2981_v49 = vcombine.high %v2947_v35, %v2959_v13 }
 0x940   :  { %v2988_v40 = vrot.slane %v2980_v46, %v6880_v52  ;;  %v2995_v51 = vrot.slane %v2981_v49, %v6880_v52 }
 0x941   :  { %v3253_v53 = vpop.permute.xlu1 %3252  ;;  %v3247_v57 = vpop.permute.xlu0 %3246 }
 0x942   :  { %v2996_v58 = vcombine.low %v2972_v50, %v2988_v40  ;;  %v2997_v54 = vcombine.high %v2972_v50, %v2988_v40  ;;  %v3012_v12 = vcombine.low %v2979_v63, %v2995_v51  ;;  %v3013_v60 = vcombine.high %v2979_v63, %v2995_v51 }
 0x943   :  { %v3340_v61 = vcombine.low %v3241_v4, %v3253_v53  ;;  %v3341_v62 = vcombine.high %v3241_v4, %v3253_v53  ;;  %v3324_v23 = vcombine.low %v7296_v44, %v3247_v57  ;;  %v3325_v5 = vcombine.high %v7296_v44, %v3247_v57 }
 0x944   :  { %v3004_v6 = vrot.slane %v2996_v58, %v6883_v59  ;;  %v3011_v7 = vrot.slane %v2997_v54, %v6883_v59  ;;  %v3020_v25 = vrot.slane %v3012_v12, %v6883_v59  ;;  %v3027_v15 = vrot.slane %v3013_v60, %v6883_v59 }
 0x945   :  { %v3348_v17 = vrot.slane %v3340_v61, %v6880_v52  ;;  %v3355_v38 = vrot.slane %v3341_v62, %v6880_v52  ;;  %v3332_v19 = vrot.slane %v3324_v23, %v6880_v52  ;;  %v3339_v18 = vrot.slane %v3325_v5, %v6880_v52  ;;  %v2949_v22 = vpop.permute.xlu0 %2948  ;;  %v2955_v32 = vpop.permute.xlu1 %2954 }
 0x946   :  { %v3100_v24 = vcombine.low %v3004_v6, %v3011_v7  ;;  %v5527_v31 = vcombine.high %v3004_v6, %v3011_v7  ;;  %v3116_v44 = vcombine.low %v3020_v25, %v3027_v15  ;;  %v5528_v55 = vcombine.high %v3020_v25, %v3027_v15 }
 0x947   :  { %v3356_v16 = vcombine.low %v3332_v19, %v3348_v17  ;;  %v3357_v1 = vcombine.high %v3332_v19, %v3348_v17  ;;  %v3372_v20 = vcombine.low %v3339_v18, %v3355_v38  ;;  %v3373_v42 = vcombine.high %v3339_v18, %v3355_v38 }
 0x948   :  { %v7376_v8 = vrot.slane %v3100_v24, %v6880_v52  ;;  %v7379_v33 = vrot.slane %v5527_v31, %v6880_v52  ;;  %v7382_v28 = vrot.slane %v3116_v44, %v6880_v52  ;;  %v7385_v30 = vrot.slane %v5528_v55, %v6880_v52 }
 0x949   :  { %v3364_v11 = vrot.slane %v3356_v16, %v6883_v59  ;;  %v3371_v14 = vrot.slane %v3357_v1, %v6883_v59  ;;  %v3380_v27 = vrot.slane %v3372_v20, %v6883_v59  ;;  %v3387_v34 = vrot.slane %v3373_v42, %v6883_v59  ;;  %v2961_v9 = vpop.permute.xlu0 %2960 }
 0x94a   :  { %v3132_v36 = vcombine.low %v7376_v8, %v7379_v33  ;;  %v3148_v39 = vcombine.low %v7382_v28, %v7385_v30  ;;  %v3032_v0 = vcombine.low %v7353_v45, %v2955_v32  ;;  %v3033_v4 = vcombine.high %v7353_v45, %v2955_v32 }
 0x94b   :  { %v3460_v56 = vcombine.low %v3364_v11, %v3371_v14  ;;  %v5533_v37 = vcombine.high %v3364_v11, %v3371_v14  ;;  %v3476_v35 = vcombine.low %v3380_v27, %v3387_v34  ;;  %v5534_v3 = vcombine.high %v3380_v27, %v3387_v34 }
 0x94c   :  { %v3048_v13 = vcombine.low %v2949_v22, %v2961_v9  ;;  %v3049_v46 = vcombine.high %v2949_v22, %v2961_v9  ;;  %v3040_v43 = vrot.slane %v3032_v0, %v6880_v52  ;;  %v3047_v51 = vrot.slane %v3033_v4, %v6880_v52 }
 0x94d   :  { %v3467_v49 = vrot.slane %v3460_v56, %v6880_v52  ;;  %v3475_v50 = vrot.slane %v5533_v37, %v6880_v52  ;;  %v3483_v63 = vrot.slane %v3476_v35, %v6880_v52  ;;  %v3491_v40 = vrot.slane %v5534_v3, %v6880_v52 }
 0x94e   :  { %v3056_v53 = vrot.slane %v3048_v13, %v6880_v52  ;;  %v3063_v57 = vrot.slane %v3049_v46, %v6880_v52  ;;  %v3140_v45 = vrot.slane %v3132_v36, %v6883_v59  ;;  %v3156_v58 = vrot.slane %v3148_v39, %v6883_v59 }
 0x94f   :  { %v3492_v54 = vcombine.low %v3467_v49, %v3475_v50  ;;  %v3508_v12 = vcombine.low %v3483_v63, %v3491_v40  ;;  %v3886_v18 = vsel %vm1373_vm1, %v3829_v41, 0  ;;  %v3493_v24 = vcombine.high %v3467_v49, %v3475_v50 }
 0x950   :  { %v3064_v60 = vcombine.low %v3040_v43, %v3056_v53  ;;  %v3065_v61 = vcombine.high %v3040_v43, %v3056_v53  ;;  %v3080_v62 = vcombine.low %v3047_v51, %v3063_v57  ;;  %v3081_v23 = vcombine.high %v3047_v51, %v3063_v57 }
 0x951   :  { %v3164_v5 = vcombine.low %v3140_v45, %v3156_v58  ;;  %v7410_v6 = vrot.slane %v3492_v54, %v6883_v59  ;;  %v7413_v7 = vrot.slane %v3508_v12, %v6883_v59  ;;  %v3133_v1 = vcombine.high %v7376_v8, %v7379_v33 }
 0x952   :  { %v3072_v25 = vrot.slane %v3064_v60, %v6883_v59  ;;  %v3079_v15 = vrot.slane %v3065_v61, %v6883_v59  ;;  %v3088_v17 = vrot.slane %v3080_v62, %v6883_v59  ;;  %v3095_v38 = vrot.slane %v3081_v23, %v6883_v59 }
 0x953   :  { %v3820_v19 = vpack.c.bf16 %v3164_v5, %v3164_v5  ;;  %v3524_v22 = vcombine.low %v7410_v6, %v7413_v7  ;;  %v3507_v42 = vrot.slane %v3493_v24, %v6883_v59  ;;  %v3509_v11 = vcombine.high %v3483_v63, %v3491_v40 }
 0x954   :  { %v3168_v31 = vcombine.low %v3072_v25, %v3079_v15  ;;  %v5529_v44 = vcombine.high %v3072_v25, %v3079_v15  ;;  %v3184_v55 = vcombine.low %v3088_v17, %v3095_v38  ;;  %v5530_v16 = vcombine.high %v3088_v17, %v3095_v38  ;;  %v218_v38 = vld [vmem:[%s7834_s25] sm:$0xff] }
 0x955   :  { %5867 = vmatmul.mubr.msk.bf16.vlgmr.msra.gmra.mrb[48].mxu1 %vm1373_vm1, %v3820_v19  ;;  %v3832_v20 = vpack.c.bf16 %v3524_v22, %v3524_v22  ;;  %v3149_v9 = vcombine.high %v7382_v28, %v7385_v30  ;;  %v3165_v33 = vcombine.high %v3140_v45, %v3156_v58  ;;  %v3523_v36 = vrot.slane %v3509_v11, %v6883_v59 }
 0x956   :  { %v3175_v14 = vrot.slane %v3168_v31, %v6880_v52  ;;  %v3183_v27 = vrot.slane %v5529_v44, %v6880_v52  ;;  %v3191_v34 = vrot.slane %v3184_v55, %v6880_v52  ;;  %v3199_v32 = vrot.slane %v5530_v16, %v6880_v52  ;;  %5871 = vmatpush3.bf16.xpose.msra.mxu1 %v3886_v18 }
 0x957   :  { %v4024_v8 = vsel %vm1373_vm1, %v3832_v20, 0  ;;  %5872 = vmatprep.mubr.msk.bf16.mxu1 %vm6522_vm0, %v6521_v21  ;;  %5876 = vmatprep.subr.bf16.mxu1 %v6521_v21  ;;  %v3830_v56 = vpack.c.bf16 %v7335_v26, %v7335_v26  ;;  %v3526_v37 = vcombine.low %v3507_v42, %v3523_v36  ;;  %v3821_v0 = vpack.c.bf16 %v3165_v33, %v3165_v33 }
 0x958   :  { %v3200_v39 = vcombine.low %v3175_v14, %v3183_v27  ;;  %v3216_v41 = vcombine.low %v3191_v34, %v3199_v32  ;;  %5889 = vmatpush3.bf16.xpose.msra.mxu0 %v4024_v8  ;;  %v3201_v28 = vcombine.high %v3175_v14, %v3183_v27  ;;  %v3217_v30 = vcombine.high %v3191_v34, %v3199_v32 }
 0x959   :  { %5900 = vmatprep.subr.bf16.mxu0 %v6521_v21  ;;  %v3147_v4 = vrot.slane %v3133_v1, %v6883_v59  ;;  %v3163_v13 = vrot.slane %v3149_v9, %v6883_v59  ;;  %v3834_v49 = vpack.c.bf16 %v3526_v37, %v3526_v37  ;;  %v3932_v26 = vsel %vm1373_vm1, %v3830_v56, 0 }
 0x95a   :  { %v3208_v35 = vrot.slane %v3200_v39, %v6883_v59  ;;  %v3224_v3 = vrot.slane %v3216_v41, %v6883_v59  ;;  %v3215_v63 = vrot.slane %v3201_v28, %v6883_v59  ;;  %v3231_v40 = vrot.slane %v3217_v30, %v6883_v59 }
 0x95b   :  { %v3166_v43 = vcombine.low %v3147_v4, %v3163_v13  ;;  %v4116_v51 = vsel %vm1373_vm1, %v3834_v49, 0  ;;  %v3831_v53 = vpack.c.bf16 %v7337_v29, %v7337_v29  ;;  %v3525_v54 = vcombine.high %v7410_v6, %v7413_v7 }
 0x95c   :  { %v3232_v46 = vcombine.low %v3208_v35, %v3224_v3  ;;  %v3234_v57 = vcombine.low %v3215_v63, %v3231_v40  ;;  %v3167_v29 = vcombine.high %v3147_v4, %v3163_v13  ;;  %v3527_v23 = vcombine.high %v3507_v42, %v3523_v36 }
 0x95d   :  { %5873 = vmatmul.mubr.msk.bf16.vlgmr.msra.gmra.mrb[52].mxu1 %vm1373_vm1, %v3821_v0  ;;  %v3822_v45 = vpack.c.bf16 %v3166_v43, %v3166_v43  ;;  %v3978_v58 = vsel %vm1373_vm1, %v3831_v53, 0  ;;  %v3833_v60 = vpack.c.bf16 %v3525_v54, %v3525_v54  ;;  %v3233_v5 = vcombine.high %v3208_v35, %v3224_v3 }
 0x95e   :  { %5877 = vmatpush3.bf16.xpose.msra.mxu1 %v3932_v26  ;;  %v3824_v50 = vpack.c.bf16 %v3232_v46, %v3232_v46  ;;  %5878 = vmatprep.mubr.msk.bf16.mxu1 %vm6522_vm0, %v6521_v21  ;;  %v3826_v12 = vpack.c.bf16 %v3234_v57, %v3234_v57  ;;  %v3823_v61 = vpack.c.bf16 %v3167_v29, %v3167_v29 }
 0x95f   :  { %5882 = vmatprep.subr.bf16.mxu1 %v6521_v21  ;;  %v4070_v62 = vsel %vm1373_vm1, %v3833_v60, 0  ;;  %v3835_v6 = vpack.c.bf16 %v3527_v23, %v3527_v23  ;;  %v3825_v7 = vpack.c.bf16 %v3233_v5, %v3233_v5  ;;  %v3235_v15 = vcombine.high %v3215_v63, %v3231_v40 }
 0x960   :  { %5891 = vmatmul.mubr.msk.bf16.vlgmr.msra.gmra.mrb[36].mxu0 %vm1373_vm1, %v3824_v50 }
 0x961   :  { %5901 = vmatpush3.bf16.xpose.msra.mxu0 %v4116_v51  ;;  %5902 = vmatprep.mubr.msk.bf16.mxu0 %vm6522_vm0, %v6521_v21  ;;  %v4162_v25 = vsel %vm1373_vm1, %v3835_v6, 0  ;;  %v3827_v17 = vpack.c.bf16 %v3235_v15, %v3235_v15 }
 0x962   :  { %5912 = vmatprep.subr.bf16.mxu0 %v6521_v21 }
 0x965   :  { %5879 = vmatmul.mubr.msk.bf16.vlgmr.msra.gmra.mrb[56].mxu1 %vm1373_vm1, %v3822_v45 }
 0x966   :  { %5883 = vmatpush3.bf16.xpose.msra.mxu1 %v3978_v58  ;;  %5884 = vmatprep.mubr.msk.bf16.mxu1 %vm6522_vm0, %v6521_v21 }
 0x967   :  { %5894 = vmatprep.subr.bf16.mxu1 %v6521_v21 }
 0x968   :  { %5903 = vmatmul.mubr.msk.bf16.vlgmr.msra.gmra.mrb[40].mxu0 %vm1373_vm1, %v3826_v12 }
 0x969   :  { %5914 = vmatprep.mubr.msk.bf16.mxu0 %vm6522_vm0, %v6521_v21 }
 0x96d   :  { %5885 = vmatmul.mubr.msk.bf16.vlgmr.msra.gmra.mrb[60].mxu1 %vm1373_vm1, %v3823_v61 }
 0x96e   :  { %5895 = vmatpush3.bf16.xpose.msra.mxu1 %v4070_v62  ;;  %5896 = vmatprep.mubr.msk.bf16.mxu1 %vm6522_vm0, %v6521_v21 }
 0x96f   :  { %5906 = vmatprep.subr.bf16.mxu1 %v6521_v21 }
 0x975   :  { %5897 = vmatmul.mubr.msk.bf16.vlgmr.msra.gmra.mrb[64].mxu1 %vm1373_vm1, %v3825_v7 }
 0x976   :  { %5907 = vmatpush3.bf16.xpose.msra.mxu1 %v4162_v25  ;;  %5908 = vmatprep.mubr.msk.bf16.mxu1 %vm6522_vm0, %v6521_v21 }
 0x977   :  { %5918 = vmatprep.subr.bf16.mxu1 %v6521_v21 }
 0x97d   :  { %5909 = vmatmul.mubr.msk.bf16.vlgmr.msra.gmra.mrb[68].mxu1 %vm1373_vm1, %v3827_v17 }
 0x97e   :  { %5920 = vmatprep.mubr.msk.bf16.mxu1 %vm6522_vm0, %v6521_v21 }
 0xa28   :  { %v3876_v19 = vpop.f32.mrb[48].mxu1 }
 0xa29   :  { %v3877_v18 = vadd.f32 %v3876_v19, %v218_v38  ;;  %v5868_v22 = vpop.f32.mrb[49].mxu1 }
 0xa2a   :  { %v3879_v24 = vpop.f32.mrb[50].mxu1 }
 0xa2b   :  { %v5869_v31 = vpop.f32.mrb[51].mxu1  ;;  %v4204_v44 = vsel %vm1742_vm2, %v3877_v18, -inf }
 0xa2c   :  { %4205 = vmax.xlane.f32.xlu1 %v4204_v44 }
 0xa30   :  { %v3922_v55 = vpop.f32.mrb[52].mxu1 }
 0xa31   :  { %v5874_v16 = vpop.f32.mrb[53].mxu1  ;;  %v3923_v34 = vadd.f32 %v3922_v55, %v218_v38 }
 0xa32   :  { %v3925_v1 = vpop.f32.mrb[54].mxu1 }
 0xa33   :  { %v5875_v20 = vpop.f32.mrb[55].mxu1  ;;  %v4060_v42 = vpop.f32.mrb[36].mxu0  ;;  %v4207_v39 = vsel %vm1742_vm2, %v3923_v34, -inf }
 0xa34   :  { %v4061_v11 = vadd.f32 %v4060_v42, %v218_v38  ;;  %v5892_v14 = vpop.f32.mrb[37].mxu0 }
 0xa35   :  { %v4063_v27 = vpop.f32.mrb[38].mxu0 }
 0xa36   :  { %v5893_v32 = vpop.f32.mrb[39].mxu0  ;;  %v4216_v9 = vsel %vm1742_vm2, %v4061_v11, -inf }
 0xa37   :  { %4217 = vmax.xlane.f32.xlu0 %v4216_v9 }
 0xa38   :  { %v3968_v8 = vpop.f32.mrb[56].mxu1 }
 0xa39   :  { %v5880_v33 = vpop.f32.mrb[57].mxu1  ;;  %v3969_v35 = vadd.f32 %v3968_v8, %v218_v38 }
 0xa3a   :  { %v3971_v36 = vpop.f32.mrb[58].mxu1 }
 0xa3b   :  { %v5881_v41 = vpop.f32.mrb[59].mxu1  ;;  %v4152_v56 = vpop.f32.mrb[40].mxu0  ;;  %4208 = vmax.xlane.f32.xlu0 %v4207_v39  ;;  %v4210_v49 = vsel %vm1742_vm2, %v3969_v35, -inf }
 0xa3c   :  { %v7487_v37 = vadd.f32 %v4152_v56, %v218_v38  ;;  %v5904_v28 = vpop.f32.mrb[41].mxu0 }
 0xa3d   :  { %3536 = vrot.lane.b32.xlu1 %v7292_v2, %s7831_s1  ;;  %v4155_v30 = vpop.f32.mrb[42].mxu0 }
 0xa3e   :  { %v5905_v3 = vpop.f32.mrb[43].mxu0  ;;  %v4222_v0 = vsel %vm1742_vm2, %v7487_v37, -inf }
 0xa3f   :  { %4223 = vmax.xlane.f32.xlu0 %v4222_v0 }
 0xa40   :  { %v4014_v4 = vpop.f32.mrb[60].mxu1 }
 0xa41   :  { %3542 = vrot.lane.b32.xlu1 %v7292_v2, %s6523_s22  ;;  %v5886_v13 = vpop.f32.mrb[61].mxu1  ;;  %v7500_v54 = vadd.f32 %v4014_v4, %v218_v38 }
 0xa42   :  { %v4017_v46 = vpop.f32.mrb[62].mxu1 }
 0xa43   :  { %v5887_v26 = vpop.f32.mrb[63].mxu1  ;;  %4211 = vmax.xlane.f32.xlu0 %v4210_v49  ;;  %v4213_v29 = vsel %vm1742_vm2, %v7500_v54, -inf }
 0xa48   :  { %v4106_v50 = vpop.f32.mrb[64].mxu1 }
 0xa49   :  { %v5898_v63 = vpop.f32.mrb[65].mxu1  ;;  %v7502_v12 = vadd.f32 %v4106_v50, %v218_v38 }
 0xa4a   :  { %v4109_v40 = vpop.f32.mrb[66].mxu1 }
 0xa4b   :  { %v5899_v43 = vpop.f32.mrb[67].mxu1  ;;  %v4219_v60 = vsel %vm1742_vm2, %v7502_v12, -inf }
 0xa50   :  { %v4198_v51 = vpop.f32.mrb[68].mxu1 }
 0xa51   :  { %v7496_v53 = vadd.f32 %v4198_v51, %v218_v38  ;;  %v5910_v57 = vpop.f32.mrb[69].mxu1 }
 0xa52   :  { %v4201_v45 = vpop.f32.mrb[70].mxu1 }
 0xa53   :  { %v5911_v58 = vpop.f32.mrb[71].mxu1  ;;  %v4225_v61 = vsel %vm1742_vm2, %v7496_v53, -inf }
 0xa59   :  { %3530 = vrot.lane.b32.xlu0 %v7292_v2, %s6524_s5 }
 0xa65   :  { %4214 = vmax.xlane.f32.xlu1 %v4213_v29 }
 0xa69   :  { %4220 = vmax.xlane.f32.xlu1 %v4219_v60 }
 0xa6d   :  { %4226 = vmax.xlane.f32.xlu1 %v4225_v61 }
 0xa7e   :  { %3532 = vrot.lane.b32.xlu1 %v7298_v10, %s6524_s5 }
 0xab9   :  { %v4206_v62 = vpop.xlane.xlu1 %4205 }
 0xaba   :  { %v4228_v23 = vsub.f32 %v3877_v18, %v4206_v62 }
 0xabc   :  { %v4236_v5 = vmul.f32 1.442695, %v4228_v23 }
 0xabd   :  { %v3537_v31 = vpop.permute.xlu1 %3536 }
 0xabe   :  { %6206 = vpow2.f32 %v4236_v5  ;;  %v3548_v16 = vcombine.low %v7292_v2, %v3537_v31  ;;  %v3549_v1 = vcombine.high %v7292_v2, %v3537_v31 }
 0xac0   :  { %v3556_v9 = vrot.slane %v3548_v16, %v6880_v52  ;;  %v3563_v8 = vrot.slane %v3549_v1, %v6880_v52 }
 0xac1   :  { %v3543_v42 = vpop.permute.xlu1 %3542 }
 0xac4   :  { %v4218_v6 = vpop.xlane.xlu0 %4217 }
 0xac5   :  { %v4232_v7 = vsub.f32 %v4061_v11, %v4218_v6 }
 0xac7   :  { %v4244_v25 = vmul.f32 1.442695, %v4232_v7 }
 0xac8   :  { %v7512_v15 = vpop.eup %6206  ;;  %v4209_v17 = vpop.xlane.xlu0 %4208 }
 0xac9   :  { %6208 = vpow2.f32 %v4244_v25  ;;  %v4229_v38 = vsub.f32 %v3923_v34, %v4209_v17  ;;  %v4252_v19 = vsel %vm1742_vm2, %v7512_v15, 0.0 }
 0xaca   :  { %4253 = vadd.xlane.f32.xlu0 %v4252_v19 }
 0xacb   :  { %v4238_v22 = vmul.f32 1.442695, %v4229_v38 }
 0xacc   :  { %v7516_v24 = vpop.xlane.xlu0 %4223 }
 0xacd   :  { %6210 = vpow2.f32 %v4238_v22 }
 0xad0   :  { %v4212_v18 = vpop.xlane.xlu0 %4211 }
 0xad1   :  { %v4230_v44 = vsub.f32 %v3969_v35, %v4212_v18 }
 0xad3   :  { %v7518_v55 = vpop.eup %6208  ;;  %v4240_v20 = vmul.f32 1.442695, %v4230_v44 }
 0xad4   :  { %v3531_v11 = vpop.permute.xlu0 %3530  ;;  %v4264_v14 = vsel %vm1742_vm2, %v7518_v55, 0.0 }
 0xad5   :  { %6212 = vpow2.f32 %v4240_v20  ;;  %v3564_v27 = vcombine.low %v3531_v11, %v3543_v42  ;;  %v3565_v34 = vcombine.high %v3531_v11, %v3543_v42  ;;  %4265 = vadd.xlane.f32.xlu0 %v4264_v14 }
 0xad7   :  { %v7524_v32 = vpop.eup %6210  ;;  %v3572_v33 = vrot.slane %v3564_v27, %v6880_v52  ;;  %v3579_v2 = vrot.slane %v3565_v34, %v6880_v52 }
 0xad8   :  { %v4255_v36 = vsel %vm1742_vm2, %v7524_v32, 0.0 }
 0xad9   :  { %v3580_v39 = vcombine.low %v3556_v9, %v3572_v33  ;;  %v3581_v41 = vcombine.high %v3556_v9, %v3572_v33  ;;  %v3596_v56 = vcombine.low %v3563_v8, %v3579_v2  ;;  %v3597_v28 = vcombine.high %v3563_v8, %v3579_v2  ;;  %4256 = vadd.xlane.f32.xlu1 %v4255_v36 }
 0xadb   :  { %v3588_v30 = vrot.slane %v3580_v39, %v6883_v59  ;;  %v3595_v35 = vrot.slane %v3581_v41, %v6883_v59  ;;  %v3604_v3 = vrot.slane %v3596_v56, %v6883_v59  ;;  %v3611_v0 = vrot.slane %v3597_v28, %v6883_v59 }
 0xadd   :  { %v3684_v4 = vcombine.low %v3588_v30, %v3595_v35  ;;  %v5535_v13 = vcombine.high %v3588_v30, %v3595_v35  ;;  %v3700_v46 = vcombine.low %v3604_v3, %v3611_v0  ;;  %v5536_v49 = vcombine.high %v3604_v3, %v3611_v0 }
 0xadf   :  { %v7536_v26 = vpop.eup %6212  ;;  %v3691_v50 = vrot.slane %v3684_v4, %v6880_v52  ;;  %v3699_v63 = vrot.slane %v5535_v13, %v6880_v52  ;;  %v3707_v40 = vrot.slane %v3700_v46, %v6880_v52  ;;  %v3715_v43 = vrot.slane %v5536_v49, %v6880_v52 }
 0xae0   :  { %v4258_v51 = vsel %vm1742_vm2, %v7536_v26, 0.0 }
 0xae1   :  { %4259 = vadd.xlane.f32.xlu0 %v4258_v51  ;;  %v3716_v57 = vcombine.low %v3691_v50, %v3699_v63  ;;  %v3732_v45 = vcombine.low %v3707_v40, %v3715_v43  ;;  %v3717_v58 = vcombine.high %v3691_v50, %v3699_v63  ;;  %v3733_v29 = vcombine.high %v3707_v40, %v3715_v43 }
 0xae3   :  { %v3724_v60 = vrot.slane %v3716_v57, %v6883_v59  ;;  %v3740_v61 = vrot.slane %v3732_v45, %v6883_v59  ;;  %v3731_v62 = vrot.slane %v3717_v58, %v6883_v59  ;;  %v3747_v23 = vrot.slane %v3733_v29, %v6883_v59 }
 0xae5   :  { %v3748_v5 = vcombine.low %v3724_v60, %v3740_v61  ;;  %v3749_v6 = vcombine.high %v3724_v60, %v3740_v61  ;;  %v3750_v7 = vcombine.low %v3731_v62, %v3747_v23  ;;  %v3751_v25 = vcombine.high %v3731_v62, %v3747_v23 }
 0xae7   :  { %v4300_v17 = vpack.c.bf16 %v3748_v5, %v3748_v5  ;;  %v4301_v38 = vpack.c.bf16 %v3749_v6, %v3749_v6  ;;  %v4302_v56 = vpack.c.bf16 %v3750_v7, %v3750_v7  ;;  %v4303_v13 = vpack.c.bf16 %v3751_v25, %v3751_v25 }
 0xae9   :  { %v4312_v19 = vsel %vm1850_vm3, %v4300_v17, 0  ;;  %v4358_v22 = vsel %vm1850_vm3, %v4301_v38, 0  ;;  %v4404_v35 = vsel %vm1850_vm3, %v4302_v56, 0  ;;  %v4450_v49 = vsel %vm1850_vm3, %v4303_v13, 0 }
 0xaea   :  { %5913 = vmatpush3.bf16.msra.mxu0 %v4312_v19  ;;  %5919 = vmatpush3.bf16.msra.mxu1 %v4358_v22 }
 0xaeb   :  { %5924 = vmatprep.subr.bf16.mxu0 %v6521_v21  ;;  %5930 = vmatprep.subr.bf16.mxu1 %v6521_v21 }
 0xaf2   :  { %v4215_v31 = vpop.xlane.xlu1 %4214 }
 0xaf3   :  { %v4231_v18 = vsub.f32 %v7500_v54, %v4215_v31  ;;  %v4234_v54 = vsub.f32 %v7487_v37, %v7516_v24 }
 0xaf5   :  { %v4242_v44 = vmul.f32 1.442695, %v4231_v18  ;;  %v4248_v34 = vmul.f32 1.442695, %v4234_v54 }
 0xaf6   :  { %v4221_v16 = vpop.xlane.xlu1 %4220 }
 0xaf7   :  { %6214 = vpow2.f32 %v4242_v44  ;;  %v4233_v1 = vsub.f32 %v7502_v12, %v4221_v16 }
 0xaf9   :  { %v4246_v20 = vmul.f32 1.442695, %v4233_v1 }
 0xafa   :  { %v4227_v12 = vpop.xlane.xlu1 %4226 }
 0xafb   :  { %6216 = vpow2.f32 %v4246_v20  ;;  %v4235_v9 = vsub.f32 %v7496_v53, %v4227_v12 }
 0xafc   :  { %6218 = vpow2.f32 %v4248_v34 }
 0xafd   :  { %v4250_v8 = vmul.f32 1.442695, %v4235_v9 }
 0xafe   :  { %v3533_v41 = vpop.permute.xlu1 %3532 }
 0xaff   :  { %6220 = vpow2.f32 %v4250_v8 }
 0xb01   :  { %v7554_v42 = vpop.eup %6214 }
 0xb02   :  { %v4261_v11 = vsel %vm1742_vm2, %v7554_v42, 0.0 }
 0xb03   :  { %4262 = vadd.xlane.f32.xlu1 %v4261_v11 }
 0xb05   :  { %v7558_v14 = vpop.eup %6216 }
 0xb06   :  { %v4267_v27 = vsel %vm1742_vm2, %v7558_v14, 0.0  ;;  %v7569_v33 = vpop.eup %6218 }
 0xb07   :  { %4268 = vadd.xlane.f32.xlu0 %v4267_v27  ;;  %v4270_v2 = vsel %vm1742_vm2, %v7569_v33, 0.0 }
 0xb09   :  { %v7573_v36 = vpop.eup %6220 }
 0xb0a   :  { %v4273_v39 = vsel %vm1742_vm2, %v7573_v36, 0.0 }
 0xb14   :  { %3544 = vrot.lane.b32.xlu1 %v7298_v10, %s6523_s22 }
 0xb1d   :  { %3538 = vrot.lane.b32.xlu0 %v7298_v10, %s7831_s1 }
 0xb38   :  { %4271 = vadd.xlane.f32.xlu1 %v4270_v2 }
 0xb3c   :  { %4274 = vadd.xlane.f32.xlu0 %v4273_v39 }
 0xb57   :  { %v4254_v37 = vpop.xlane.xlu0 %4253 }
 0xb58   :  { %6222 = vrcp.f32 %v4254_v37 }
 0xb62   :  { %v6223_v24 = vpop.eup %6222  ;;  %v4266_v3 = vpop.xlane.xlu0 %4265 }
 0xb63   :  { %v4284_v53 = vmul.f32 %v6223_v24, %v7512_v15 }
 0xb65   :  { %v4292_v28 = vpack.c.bf16 %v4284_v53, %v4284_v53 }
 0xb66   :  { %v4257_v30 = vpop.xlane.xlu1 %4256 }
 0xb67   :  { %5915 = vmatmul.mubr.msk.bf16.vlgmr.msra.gmra.mrb[44].mxu0 %vm1742_vm2, %v4292_v28  ;;  %6224 = vrcp.f32 %v4257_v30 }
 0xb68   :  { %5925 = vmatpush3.bf16.msra.mxu0 %v4404_v35  ;;  %5926 = vmatprep.mubr.msk.bf16.mxu0 %vm6522_vm0, %v6521_v21 }
 0xb69   :  { %5936 = vmatprep.subr.bf16.mxu0 %v6521_v21 }
 0xb6e   :  { %v4260_v0 = vpop.xlane.xlu0 %4259 }
 0xb6f   :  { %6226 = vrcp.f32 %v4260_v0 }
 0xb71   :  { %v6225_v4 = vpop.eup %6224 }
 0xb72   :  { %v4285_v15 = vmul.f32 %v6225_v4, %v7524_v32 }
 0xb74   :  { %v4293_v46 = vpack.c.bf16 %v4285_v15, %v4285_v15 }
 0xb76   :  { %5921 = vmatmul.mubr.msk.bf16.vlgmr.msra.gmra.mrb[72].mxu1 %vm1742_vm2, %v4293_v46 }
 0xb77   :  { %5931 = vmatpush3.bf16.msra.mxu1 %v4450_v49  ;;  %5932 = vmatprep.mubr.msk.bf16.mxu1 %vm6522_vm0, %v6521_v21 }
 0xb78   :  { %5942 = vmatprep.subr.bf16.mxu1 %v6521_v21 }
 0xb79   :  { %v6227_v50 = vpop.eup %6226 }
 0xb7a   :  { %v4286_v63 = vmul.f32 %v6227_v50, %v7536_v26 }
 0xb7c   :  { %v4294_v40 = vpack.c.bf16 %v4286_v63, %v4286_v63 }
 0xb7e   :  { %5927 = vmatmul.mubr.msk.bf16.vlgmr.msra.gmra.mrb[48].mxu0 %vm1742_vm2, %v4294_v40 }
 0xb7f   :  { %5938 = vmatprep.mubr.msk.bf16.mxu0 %vm6522_vm0, %v6521_v21 }
 0xb90   :  { %v4263_v32 = vpop.xlane.xlu1 %4262 }
 0xb91   :  { %6228 = vrcp.f32 %v4263_v32 }
 0xb92   :  { %6230 = vrcp.f32 %v4266_v3 }
 0xb94   :  { %v4269_v43 = vpop.xlane.xlu0 %4268  ;;  %v3545_v51 = vpop.permute.xlu1 %3544 }
 0xb95   :  { %v3632_v57 = vcombine.low %v3533_v41, %v3545_v51  ;;  %v3633_v45 = vcombine.high %v3533_v41, %v3545_v51  ;;  %6232 = vrcp.f32 %v4269_v43 }
 0xb97   :  { %v3640_v26 = vrot.slane %v3632_v57, %v6880_v52  ;;  %v3647_v62 = vrot.slane %v3633_v45, %v6880_v52 }
 0xb98   :  { %v3539_v58 = vpop.permute.xlu0 %3538 }
 0xb99   :  { %v3616_v29 = vcombine.low %v7298_v10, %v3539_v58  ;;  %v3617_v60 = vcombine.high %v7298_v10, %v3539_v58 }
 0xb9b   :  { %v6229_v61 = vpop.eup %6228  ;;  %v3624_v23 = vrot.slane %v3616_v29, %v6880_v52  ;;  %v3631_v5 = vrot.slane %v3617_v60, %v6880_v52 }
 0xb9c   :  { %v4287_v6 = vmul.f32 %v6229_v61, %v7554_v42  ;;  %v6231_v2 = vpop.eup %6230 }
 0xb9d   :  { %v3648_v7 = vcombine.low %v3624_v23, %v3640_v26  ;;  %v3649_v25 = vcombine.high %v3624_v23, %v3640_v26  ;;  %v3664_v17 = vcombine.low %v3631_v5, %v3647_v62  ;;  %v3665_v38 = vcombine.high %v3631_v5, %v3647_v62  ;;  %v6147_v5 = vld [vmem:[#allocation14 + $0x8] sm:$0xff]  }
 0xb9e   :  { %v4295_v19 = vpack.c.bf16 %v4287_v6, %v4287_v6  ;;  %v4288_v3 = vmul.f32 %v6231_v2, %v7518_v55 }
 0xb9f   :  { %v3656_v10 = vrot.slane %v3648_v7, %v6883_v59  ;;  %v3663_v22 = vrot.slane %v3649_v25, %v6883_v59  ;;  %v3672_v31 = vrot.slane %v3664_v17, %v6883_v59  ;;  %v3679_v18 = vrot.slane %v3665_v38, %v6883_v59  ;;  %v6233_v53 = vpop.eup %6232  ;;  %v6148_v25 = vld [vmem:[#allocation14 + $0x10] sm:$0xff]   ;;  %v6149_v38 = vld [vmem:[#allocation14 + $0x18] sm:$0xff]  }
 0xba0   :  { %5933 = vmatmul.mubr.msk.bf16.vlgmr.msra.gmra.mrb[76].mxu1 %vm1742_vm2, %v4295_v19  ;;  %v4289_v0 = vmul.f32 %v6233_v53, %v7558_v14  ;;  %v4296_v63 = vpack.c.bf16 %v4288_v3, %v4288_v3 }
 0xba1   :  { %v3752_v44 = vcombine.low %v3656_v10, %v3663_v22  ;;  %v5537_v16 = vcombine.high %v3656_v10, %v3663_v22  ;;  %v3768_v1 = vcombine.low %v3672_v31, %v3679_v18  ;;  %v5538_v20 = vcombine.high %v3672_v31, %v3679_v18  ;;  %5944 = vmatprep.mubr.msk.bf16.mxu1 %vm6522_vm0, %v6521_v21 }
 0xba2   :  { %v4297_v40 = vpack.c.bf16 %v4289_v0, %v4289_v0 }
 0xba3   :  { %v3759_v42 = vrot.slane %v3752_v44, %v6880_v52  ;;  %v3767_v11 = vrot.slane %v5537_v16, %v6880_v52  ;;  %v3775_v27 = vrot.slane %v3768_v1, %v6880_v52  ;;  %v3783_v54 = vrot.slane %v5538_v20, %v6880_v52  ;;  %v6150_v44 = vld [vmem:[#allocation14 + $0x20] sm:$0xff]   ;;  %v6151_v1 = vld [vmem:[#allocation14 + $0x28] sm:$0xff]  }
 0xba5   :  { %v3784_v12 = vcombine.low %v3759_v42, %v3767_v11  ;;  %v3800_v34 = vcombine.low %v3775_v27, %v3783_v54  ;;  %v3785_v9 = vcombine.high %v3759_v42, %v3767_v11  ;;  %v3801_v8 = vcombine.high %v3775_v27, %v3783_v54 }
 0xba7   :  { %v3792_v39 = vrot.slane %v3784_v12, %v6883_v59  ;;  %v3808_v37 = vrot.slane %v3800_v34, %v6883_v59  ;;  %v3799_v24 = vrot.slane %v3785_v9, %v6883_v59  ;;  %v3815_v41 = vrot.slane %v3801_v8, %v6883_v59 }
 0xba9   :  { %v3816_v56 = vcombine.low %v3792_v39, %v3808_v37  ;;  %v3817_v28 = vcombine.high %v3792_v39, %v3808_v37  ;;  %v3818_v30 = vcombine.low %v3799_v24, %v3815_v41  ;;  %v3819_v35 = vcombine.high %v3799_v24, %v3815_v41 }
 0xbab   :  { %v4304_v4 = vpack.c.bf16 %v3816_v56, %v3816_v56  ;;  %v4305_v15 = vpack.c.bf16 %v3817_v28, %v3817_v28  ;;  %v4306_v49 = vpack.c.bf16 %v3818_v30, %v3818_v30  ;;  %v4307_v50 = vpack.c.bf16 %v3819_v35, %v3819_v35 }
 0xbad   :  { %v4496_v13 = vsel %vm1850_vm3, %v4304_v4, 0  ;;  %v4542_v46 = vsel %vm1850_vm3, %v4305_v15, 0  ;;  %v4588_v55 = vsel %vm1850_vm3, %v4306_v49, 0  ;;  %v4634_v14 = vsel %vm1850_vm3, %v4307_v50, 0 }
 0xbae   :  { %5937 = vmatpush3.bf16.msra.mxu0 %v4496_v13  ;;  %5943 = vmatpush3.bf16.msra.mxu1 %v4542_v46 }
 0xbaf   :  { %5948 = vmatprep.subr.bf16.mxu0 %v6521_v21  ;;  %5954 = vmatprep.subr.bf16.mxu1 %v6521_v21 }
 0xbb1   :  { %5939 = vmatmul.mubr.msk.bf16.vlgmr.msra.gmra.mrb[52].mxu0 %vm1742_vm2, %v4296_v63  ;;  %5945 = vmatmul.mubr.msk.bf16.vlgmr.msra.gmra.mrb[80].mxu1 %vm1742_vm2, %v4297_v40 }
 0xbb2   :  { %5949 = vmatpush3.bf16.msra.mxu0 %v4588_v55  ;;  %5955 = vmatpush3.bf16.msra.mxu1 %v4634_v14 }
 0xbb3   :  { %5950 = vmatprep.mubr.msk.bf16.mxu0 %vm6522_vm0, %v6521_v21  ;;  %5956 = vmatprep.mubr.msk.bf16.mxu1 %vm6522_vm0, %v6521_v21 }
 0xbb4   :  { %5960 = vmatprep.subr.bf16.mxu0 %v6521_v21  ;;  %5980 = vmatprep.subr.bf16.mxu1 %v6521_v21 }
 0xbc5   :  { %v4272_v32 = vpop.xlane.xlu1 %4271 }
 0xbc6   :  { %6234 = vrcp.f32 %v4272_v32 }
 0xbc9   :  { %v4275_v43 = vpop.xlane.xlu0 %4274 }
 0xbca   :  { %6236 = vrcp.f32 %v4275_v43 }
 0xbd0   :  { %v6235_v51 = vpop.eup %6234 }
 0xbd1   :  { %v4290_v57 = vmul.f32 %v6235_v51, %v7569_v33  ;;  %v6146_v33 = vld [vmem:[#allocation14] sm:$0xff]  }
 0xbd3   :  { %v4298_v45 = vpack.c.bf16 %v4290_v57, %v4290_v57 }
 0xbd4   :  { %v6237_v58 = vpop.eup %6236 }
 0xbd5   :  { %v4291_v29 = vmul.f32 %v6237_v58, %v7573_v36  ;;  %5951 = vmatmul.mubr.msk.bf16.vlgmr.msra.gmra.mrb[56].mxu0 %vm1742_vm2, %v4298_v45 }
 0xbd6   :  { %5976 = vmatprep.mubr.msk.bf16.mxu0 %vm6522_vm0, %v6521_v21  ;;  %5961 = vmatpush3.bf16.msra.mxu0 %v6146_v33 }
 0xbd7   :  { %v4299_v60 = vpack.c.bf16 %v4291_v29, %v4291_v29  ;;  %5962 = vmatprep.subr.bf16.mxu0 %v6521_v21 }
 0xbd9   :  { %5957 = vmatmul.mubr.msk.bf16.vlgmr.msra.gmra.mrb[84].mxu1 %vm1742_vm2, %v4299_v60 }
 0xbda   :  { %5996 = vmatprep.mubr.msk.bf16.mxu1 %vm6522_vm0, %v6521_v21  ;;  %5963 = vmatpush3.bf16.msra.mxu0 %v6147_v5 }
 0xbdb   :  { %5964 = vmatprep.subr.bf16.mxu0 %v6521_v21 }
 0xbde   :  { %5965 = vmatpush3.bf16.msra.mxu0 %v6148_v25 }
 0xbdf   :  { %5966 = vmatprep.subr.bf16.mxu0 %v6521_v21 }
 0xbe2   :  { %5967 = vmatpush3.bf16.msra.mxu0 %v6149_v38 }
 0xbe3   :  { %5968 = vmatprep.subr.bf16.mxu0 %v6521_v21 }
 0xbe6   :  { %5969 = vmatpush3.bf16.msra.mxu0 %v6150_v44 }
 0xbe7   :  { %5970 = vmatprep.subr.bf16.mxu0 %v6521_v21 }
 0xbea   :  { %5971 = vmatpush3.bf16.msra.mxu0 %v6151_v1 }
 0xbeb   :  { %5972 = vmatprep.subr.bf16.mxu0 %v6521_v21 }
 0xc3a   :  { %v4348_v61 = vpop.f32.mrb[44].mxu0 }
 0xc3b   :  { %v5916_v26 = vpop.f32.mrb[45].mxu0 }
 0xc3c   :  { %v4351_v62 = vpop.f32.mrb[46].mxu0 }
 0xc3d   :  { %v5917_v23 = vpop.f32.mrb[47].mxu0 }
 0xc49   :  { %v4394_v36 = vpop.f32.mrb[72].mxu1 }
 0xc4a   :  { %v5922_v6 = vpop.f32.mrb[73].mxu1 }
 0xc4b   :  { %v4397_v7 = vpop.f32.mrb[74].mxu1 }
 0xc4c   :  { %v5923_v17 = vpop.f32.mrb[75].mxu1 }
 0xc51   :  { %v4440_v19 = vpop.f32.mrb[48].mxu0 }
 0xc52   :  { %v4676_v10 = vcombine.low %v4348_v61, %v4440_v19  ;;  %v4677_v22 = vcombine.high %v4348_v61, %v4440_v19  ;;  %v5928_v31 = vpop.f32.mrb[49].mxu0 }
 0xc53   :  { %v4443_v18 = vpop.f32.mrb[50].mxu0 }
 0xc54   :  { %v5929_v16 = vpop.f32.mrb[51].mxu0  ;;  %v4684_v12 = vrot.slane %v4676_v10, %v6880_v52  ;;  %v4691_v34 = vrot.slane %v4677_v22, %v6880_v52 }
 0xc73   :  { %v4486_v20 = vpop.f32.mrb[76].mxu1 }
 0xc74   :  { %v4692_v42 = vcombine.low %v4394_v36, %v4486_v20  ;;  %v4693_v11 = vcombine.high %v4394_v36, %v4486_v20  ;;  %v5934_v27 = vpop.f32.mrb[77].mxu1 }
 0xc75   :  { %v4489_v54 = vpop.f32.mrb[78].mxu1 }
 0xc76   :  { %v4700_v9 = vrot.slane %v4692_v42, %v6880_v52  ;;  %v4707_v8 = vrot.slane %v4693_v11, %v6880_v52  ;;  %v5935_v2 = vpop.f32.mrb[79].mxu1 }
 0xc78   :  { %v4708_v39 = vcombine.low %v4684_v12, %v4700_v9  ;;  %v4709_v37 = vcombine.high %v4684_v12, %v4700_v9  ;;  %v4724_v24 = vcombine.low %v4691_v34, %v4707_v8  ;;  %v4725_v41 = vcombine.high %v4691_v34, %v4707_v8 }
 0xc7a   :  { %v4716_v53 = vrot.slane %v4708_v39, %v6883_v59  ;;  %v4723_v56 = vrot.slane %v4709_v37, %v6883_v59  ;;  %v4732_v28 = vrot.slane %v4724_v24, %v6883_v59  ;;  %v4739_v30 = vrot.slane %v4725_v41, %v6883_v59 }
 0xc7c   :  { %v4812_v35 = vcombine.low %v4716_v53, %v4723_v56  ;;  %v5555_v3 = vcombine.high %v4716_v53, %v4723_v56  ;;  %v4828_v0 = vcombine.low %v4732_v28, %v4739_v30  ;;  %v5556_v4 = vcombine.high %v4732_v28, %v4739_v30  ;;  %v6152_v56 = vld [vmem:[#allocation14 + $0x30] sm:$0xff]  }
 0xc7d   :  { %5973 = vmatpush3.bf16.msra.mxu0 %v6152_v56 }
 0xc7e   :  { %v4819_v15 = vrot.slane %v4812_v35, %v6880_v52  ;;  %v4827_v13 = vrot.slane %v5555_v3, %v6880_v52  ;;  %v4835_v46 = vrot.slane %v4828_v0, %v6880_v52  ;;  %v4843_v49 = vrot.slane %v5556_v4, %v6880_v52  ;;  %5974 = vmatprep.subr.bf16.mxu0 %v6521_v21 }
 0xc80   :  { %v4845_v50 = vcombine.high %v4819_v15, %v4827_v13  ;;  %v4861_v63 = vcombine.high %v4835_v46, %v4843_v49  ;;  %v4844_v40 = vcombine.low %v4819_v15, %v4827_v13  ;;  %v4860_v55 = vcombine.low %v4835_v46, %v4843_v49 }
 0xc82   :  { %v7658_v14 = vrot.slane %v4845_v50, %v6883_v59  ;;  %v7661_v32 = vrot.slane %v4861_v63, %v6883_v59  ;;  %v7664_v43 = vrot.slane %v4844_v40, %v6883_v59  ;;  %v7667_v51 = vrot.slane %v4860_v55, %v6883_v59  ;;  %v6153_v40 = vld [vmem:[#allocation14 + $0x38] sm:$0xff]  }
 0xc83   :  { %5975 = vmatpush3.bf16.msra.mxu0 %v6153_v40 }
 0xc84   :  { %v4532_v57 = vpop.f32.mrb[52].mxu0  ;;  %v4578_v45 = vpop.f32.mrb[80].mxu1  ;;  %v4878_v58 = vcombine.low %v7658_v14, %v7661_v32  ;;  %v4876_v29 = vcombine.low %v7664_v43, %v7667_v51  ;;  %v4877_v60 = vcombine.high %v7664_v43, %v7667_v51  ;;  %v4879_v61 = vcombine.high %v7658_v14, %v7661_v32  ;;  %6000 = vmatprep.subr.bf16.mxu0 %v6521_v21  ;;  %v5559_v43 = vld [vmem:[%s7786_s13] ss:$0 sm:$0xff] }
 0xc85   :  { %v5940_v26 = vpop.f32.mrb[53].mxu0  ;;  %v5946_v62 = vpop.f32.mrb[81].mxu1 }
 0xc86   :  { %v4535_v23 = vpop.f32.mrb[54].mxu0  ;;  %v4581_v33 = vpop.f32.mrb[82].mxu1 }
 0xc87   :  { %v5941_v5 = vpop.f32.mrb[55].mxu0  ;;  %v5947_v36 = vpop.f32.mrb[83].mxu1 }
 0xca8   :  { %v4624_v6 = vpop.f32.mrb[56].mxu0 }
 0xca9   :  { %v4744_v7 = vcombine.low %v4532_v57, %v4624_v6  ;;  %v4745_v25 = vcombine.high %v4532_v57, %v4624_v6  ;;  %v5952_v17 = vpop.f32.mrb[57].mxu0 }
 0xcaa   :  { %v4627_v38 = vpop.f32.mrb[58].mxu0 }
 0xcab   :  { %v5953_v19 = vpop.f32.mrb[59].mxu0  ;;  %v4752_v16 = vrot.slane %v4744_v7, %v6880_v52  ;;  %v4759_v1 = vrot.slane %v4745_v25, %v6880_v52 }
 0xcac   :  { %v4670_v10 = vpop.f32.mrb[84].mxu1 }
 0xcad   :  { %v4760_v22 = vcombine.low %v4578_v45, %v4670_v10  ;;  %v4761_v31 = vcombine.high %v4578_v45, %v4670_v10  ;;  %v5958_v18 = vpop.f32.mrb[85].mxu1 }
 0xcae   :  { %v4673_v44 = vpop.f32.mrb[86].mxu1 }
 0xcaf   :  { %v4768_v20 = vrot.slane %v4760_v22, %v6880_v52  ;;  %v4775_v42 = vrot.slane %v4761_v31, %v6880_v52  ;;  %v5959_v11 = vpop.f32.mrb[87].mxu1 }
 0xcb0   :  { %v6154_v11 = vld [vmem:[#allocation16] sm:$0xff]  }
 0xcb1   :  { %v4776_v27 = vcombine.low %v4752_v16, %v4768_v20  ;;  %v4777_v54 = vcombine.high %v4752_v16, %v4768_v20  ;;  %v4792_v12 = vcombine.low %v4759_v1, %v4775_v42  ;;  %v4793_v34 = vcombine.high %v4759_v1, %v4775_v42  ;;  %5981 = vmatpush3.bf16.msra.mxu1 %v6154_v11 }
 0xcb2   :  { %5982 = vmatprep.subr.bf16.mxu1 %v6521_v21 }
 0xcb3   :  { %v4784_v9 = vrot.slane %v4776_v27, %v6883_v59  ;;  %v4791_v8 = vrot.slane %v4777_v54, %v6883_v59  ;;  %v4800_v2 = vrot.slane %v4792_v12, %v6883_v59  ;;  %v4807_v39 = vrot.slane %v4793_v34, %v6883_v59  ;;  %v6157_v27 = vld [vmem:[#allocation16 + $0x18] sm:$0xff]   ;;  %v6158_v54 = vld [vmem:[#allocation16 + $0x20] sm:$0xff]   ;;  %v6159_v12 = vld [vmem:[#allocation16 + $0x28] sm:$0xff]  }
 0xcb4   :  { %v6160_v34 = vld [vmem:[#allocation16 + $0x30] sm:$0xff]  }
 0xcb5   :  { %v4880_v37 = vcombine.low %v4784_v9, %v4791_v8  ;;  %v5557_v24 = vcombine.high %v4784_v9, %v4791_v8  ;;  %v4896_v41 = vcombine.low %v4800_v2, %v4807_v39  ;;  %v5558_v53 = vcombine.high %v4800_v2, %v4807_v39  ;;  %v6161_v9 = vld [vmem:[#allocation16 + $0x38] sm:$0xff]   ;;  %v6162_v8 = vld [vmem:[#allocation17] sm:$0xff]   ;;  %v6163_v2 = vld [vmem:[#allocation17 + $0x8] sm:$0xff]  }
 0xcb6   :  { %v6164_v39 = vld [vmem:[#allocation17 + $0x10] sm:$0xff]  }
 0xcb7   :  { %v4887_v28 = vrot.slane %v4880_v37, %v6880_v52  ;;  %v4895_v30 = vrot.slane %v5557_v24, %v6880_v52  ;;  %v4903_v35 = vrot.slane %v4896_v41, %v6880_v52  ;;  %v4911_v3 = vrot.slane %v5558_v53, %v6880_v52  ;;  %v6165_v37 = vld [vmem:[#allocation17 + $0x18] sm:$0xff]   ;;  %v6166_v24 = vld [vmem:[#allocation17 + $0x20] sm:$0xff]   ;;  %v6167_v41 = vld [vmem:[#allocation17 + $0x28] sm:$0xff]  }
 0xcb9   :  { %v4913_v0 = vcombine.high %v4887_v28, %v4895_v30  ;;  %v4929_v4 = vcombine.high %v4903_v35, %v4911_v3  ;;  %v4912_v15 = vcombine.low %v4887_v28, %v4895_v30  ;;  %v4928_v13 = vcombine.low %v4903_v35, %v4911_v3 }
 0xcbb   :  { %v4927_v46 = vrot.slane %v4913_v0, %v6883_v59  ;;  %v4943_v49 = vrot.slane %v4929_v4, %v6883_v59  ;;  %v4920_v50 = vrot.slane %v4912_v15, %v6883_v59  ;;  %v4936_v63 = vrot.slane %v4928_v13, %v6883_v59 }
 0xcbd   :  { %v4946_v55 = vcombine.low %v4927_v46, %v4943_v49  ;;  %v4945_v14 = vcombine.high %v4920_v50, %v4936_v63  ;;  %v4944_v32 = vcombine.low %v4920_v50, %v4936_v63  ;;  %v4947_v52 = vcombine.high %v4927_v46, %v4943_v49 }
 0xcbf   :  { %v6064_v57 = vpack.i.bf16 %v4946_v55, %v4878_v58  ;;  %v6059_v45 = vpack.i.bf16 %v4945_v14, %v4877_v60  ;;  %v6069_v26 = vpack.i.bf16 %v4947_v52, %v4879_v61 }
 0xcc1   :  { %6065 = vrot.lane.b32.xlu1 %v6064_v57, %s7831_s1  ;;  %6060 = vrot.lane.b32.xlu0 %v6059_v45, %s6523_s22 }
 0xcc5   :  { %6070 = vrot.lane.b32.xlu1 %v6069_v26, %s6524_s5 }
 0xd33   :  { %v6066_v62 = vpop.permute.xlu1 %6065  ;;  %v6061_v23 = vpop.permute.xlu0 %6060 }
 0xd34   :  { %v6063_v59 = vunpack.i.h.bf16 %v6061_v23  ;;  %v6062_v33 = vunpack.i.l.bf16 %v6061_v23  ;;  %v6068_v5 = vunpack.i.h.bf16 %v6066_v62  ;;  %v6067_v36 = vunpack.i.l.bf16 %v6066_v62  ;;  %v5569_v62 = vld [vmem:[%s7794_s21] ss:$0 sm:$0xff] }
 0xd36   :  { %v4972_v6 = vsel %vm1373_vm1, %v4876_v29, %v6062_v33  ;;  %v4973_v58 = vsel %vm1373_vm1, %v4944_v32, %v6063_v59  ;;  %v5568_v32 = vld [vmem:[%s7793_s20] ss:$0 sm:$0xff] }
 0xd37   :  { %v6071_v60 = vpop.permute.xlu1 %6070  ;;  %v4974_v25 = vsel %vm2514_vm4, %v4972_v6, %v6067_v36  ;;  %v4975_v17 = vsel %vm2514_vm4, %v4973_v58, %v6068_v5  ;;  %v6168_v36 = vld [vmem:[#allocation17 + $0x30] sm:$0xff]   ;;  %v6169_v6 = vld [vmem:[#allocation17 + $0x38] sm:$0xff]  }
 0xd38   :  { %v6073_v61 = vunpack.i.h.bf16 %v6071_v60  ;;  %v6072_v7 = vunpack.i.l.bf16 %v6071_v60  ;;  %v5570_v58 = vld [vmem:[%s7788_s15] ss:$0 sm:$0xff] }
 0xd3a   :  { %v4976_v38 = vsel %vm2517_vm5, %v4974_v25, %v6072_v7  ;;  %v4977_v19 = vsel %vm2517_vm5, %v4975_v17, %v6073_v61 }
 0xd3b   :  { %v4978_v10 = vpack.c.bf16 %v4977_v19, %v4976_v38 }
 0xd3d   :  { %5977 = vmatmul.mubr.bf16.vlgmr.msra.gmra.mrb[60].mxu0 %v4978_v10 }
 0xd3e   :  { %6016 = vmatprep.mubr.msk.bf16.mxu0 %vm6522_vm0, %v6521_v21  ;;  %6001 = vmatpush3.bf16.msra.mxu0 %v6162_v8 }
 0xd3f   :  { %6002 = vmatprep.subr.bf16.mxu0 %v6521_v21 }
 0xd42   :  { %6003 = vmatpush3.bf16.msra.mxu0 %v6163_v2 }
 0xd43   :  { %6004 = vmatprep.subr.bf16.mxu0 %v6521_v21 }
 0xd46   :  { %6005 = vmatpush3.bf16.msra.mxu0 %v6164_v39 }
 0xd47   :  { %6006 = vmatprep.subr.bf16.mxu0 %v6521_v21 }
 0xd4a   :  { %6007 = vmatpush3.bf16.msra.mxu0 %v6165_v37 }
 0xd4b   :  { %6008 = vmatprep.subr.bf16.mxu0 %v6521_v21 }
 0xd4e   :  { %6009 = vmatpush3.bf16.msra.mxu0 %v6166_v24 }
 0xd4f   :  { %6010 = vmatprep.subr.bf16.mxu0 %v6521_v21 }
 0xd52   :  { %6011 = vmatpush3.bf16.msra.mxu0 %v6167_v41 }
 0xd53   :  { %6012 = vmatprep.subr.bf16.mxu0 %v6521_v21 }
 0xd56   :  { %6013 = vmatpush3.bf16.msra.mxu0 %v6168_v36 }
 0xd57   :  { %6014 = vmatprep.subr.bf16.mxu0 %v6521_v21 }
 0xd5a   :  { %6015 = vmatpush3.bf16.msra.mxu0 %v6169_v6 }
 0xe10   :  { %v5084_v51 = vpop.f32.mrb[60].mxu0 }
 0xe11   :  { %v5085_v29 = vadd.f32 %v5559_v43, %v5084_v51  ;;  %v5978_v22 = vpop.f32.mrb[61].mxu0  ;;  %v5579_v51 = vld [vmem:[%s7790_s17] ss:$0 sm:$0xff] }
 0xe12   :  { %v5087_v31 = vpop.f32.mrb[62].mxu0 }
 0xe13   :  { %v7713_v18 = vadd.f32 %v5085_v29, %v7309_v47  ;;  %v5088_v44 = vadd.f32 %v5559_v43, %v5087_v31  ;;  %v5979_v16 = vpop.f32.mrb[63].mxu0  ;;  %v6155_v47 = vld [vmem:[#allocation16 + $0x8] sm:$0xff]  }
 0xe14   :  { %5983 = vmatpush3.bf16.msra.mxu1 %v6155_v47 }
 0xe15   :  { %v7716_v1 = vadd.f32 %v5088_v44, %v7311_v48  ;;  %5093 = vadd.xlane.f32.xlu0 %v7713_v18  ;;  %v5099_v20 = vmul.f32 %v7713_v18, %v7713_v18  ;;  %5984 = vmatprep.subr.bf16.mxu1 %v6521_v21  ;;  %v6156_v48 = vld [vmem:[#allocation16 + $0x10] sm:$0xff]  }
 0xe17   :  { %5095 = vadd.xlane.f32.xlu1 %v7716_v1  ;;  %v5100_v42 = vmul.f32 %v7716_v1, %v7716_v1 }
 0xe18   :  { %5985 = vmatpush3.bf16.msra.mxu1 %v6156_v48 }
 0xe19   :  { %5101 = vadd.xlane.f32.xlu0 %v5099_v20  ;;  %5986 = vmatprep.subr.bf16.mxu1 %v6521_v21 }
 0xe1c   :  { %5987 = vmatpush3.bf16.msra.mxu1 %v6157_v27 }
 0xe1d   :  { %5103 = vadd.xlane.f32.xlu0 %v5100_v42  ;;  %5988 = vmatprep.subr.bf16.mxu1 %v6521_v21 }
 0xe20   :  { %5989 = vmatpush3.bf16.msra.mxu1 %v6158_v54 }
 0xe21   :  { %5990 = vmatprep.subr.bf16.mxu1 %v6521_v21 }
 0xe24   :  { %5991 = vmatpush3.bf16.msra.mxu1 %v6159_v12 }
 0xe25   :  { %5992 = vmatprep.subr.bf16.mxu1 %v6521_v21 }
 0xe28   :  { %5993 = vmatpush3.bf16.msra.mxu1 %v6160_v34 }
 0xe29   :  { %5994 = vmatprep.subr.bf16.mxu1 %v6521_v21 }
 0xe2c   :  { %5995 = vmatpush3.bf16.msra.mxu1 %v6161_v9 }
 0xea2   :  { %v5094_v53 = vpop.xlane.xlu0 %5093 }
 0xea3   :  { %v5097_v56 = vmul.f32 0.03125, %v5094_v53 }
 0xea4   :  { %v5096_v28 = vpop.xlane.xlu1 %5095 }
 0xea5   :  { %v5107_v35 = vmul.f32 %v5097_v56, %v5097_v56  ;;  %v5098_v3 = vmul.f32 0.03125, %v5096_v28  ;;  %v5111_v40 = vsub.f32 %v7713_v18, %v5097_v56  ;;  %v5588_v28 = vld [vmem:[%s7835_s23] ss:$0 sm:$0xff] }
 0xea6   :  { %v5102_v30 = vpop.xlane.xlu0 %5101 }
 0xea7   :  { %v5105_v0 = vmul.f32 0.03125, %v5102_v30  ;;  %v5108_v13 = vmul.f32 %v5098_v3, %v5098_v3  ;;  %v5112_v52 = vsub.f32 %v7716_v1, %v5098_v3 }
 0xea9   :  { %v5109_v4 = vsub.f32 %v5105_v0, %v5107_v35  ;;  %v5589_v0 = vld [vmem:[%s7836_s27] ss:$0 sm:$0xff] }
 0xeaa   :  { %v5104_v15 = vpop.xlane.xlu0 %5103 }
 0xeab   :  { %v5113_v46 = vadd.f32 1e-05, %v5109_v4  ;;  %v5106_v49 = vmul.f32 0.03125, %v5104_v15 }
 0xead   :  { %6238 = vrsqrt.f32 %v5113_v46  ;;  %v5110_v50 = vsub.f32 %v5106_v49, %v5108_v13 }
 0xeaf   :  { %v5114_v63 = vadd.f32 1e-05, %v5110_v50 }
 0xeb1   :  { %6240 = vrsqrt.f32 %v5114_v63 }
 0xeb7   :  { %v6239_v55 = vpop.eup %6238 }
 0xeb8   :  { %v5117_v14 = vmul.f32 %v6239_v55, %v5111_v40 }
 0xeba   :  { %v5126_v26 = vmul.f32 %v5568_v32, %v5117_v14 }
 0xebb   :  { %v6241_v57 = vpop.eup %6240 }
 0xebc   :  { %v5118_v45 = vmul.f32 %v6241_v57, %v5112_v52  ;;  %v5135_v59 = vadd.f32 %v5569_v62, %v5126_v26 }
 0xebe   :  { %v5127_v23 = vmul.f32 %v5568_v32, %v5118_v45 }
 0xec0   :  { %v5136_v33 = vadd.f32 %v5569_v62, %v5127_v23 }
 0xec2   :  { %v5137_v5 = vpack.c.bf16 %v5136_v33, %v5135_v59 }
 0xec4   :  { %5997 = vmatmul.mubr.bf16.vlgmr.msra.gmra.mrb[88].mxu1 %v5137_v5 }
 0xf97   :  { %v5243_v60 = vpop.f32.mrb[88].mxu1 }
 0xf98   :  { %v5244_v61 = vadd.f32 %v5570_v58, %v5243_v60  ;;  %v5998_v7 = vpop.f32.mrb[89].mxu1 }
 0xf99   :  { %v5246_v25 = vpop.f32.mrb[90].mxu1 }
 0xf9a   :  { %v5247_v17 = vadd.f32 %v5570_v58, %v5246_v25  ;;  %v5999_v38 = vpop.f32.mrb[91].mxu1  ;;  %v5250_v19 = vmax.f32 %v5244_v61, 0.0 }
 0xf9c   :  { %v5251_v10 = vmax.f32 %v5247_v17, 0.0 }
 0xf9e   :  { %v5252_v43 = vpack.c.bf16 %v5251_v10, %v5250_v19 }
 0xfa0   :  { %6017 = vmatmul.mubr.bf16.vlgmr.msra.gmra.mrb[64].mxu0 %v5252_v43 }
0x1073   :  { %v5358_v21 = vpop.f32.mrb[64].mxu0 }
0x1074   :  { %v5359_v29 = vadd.f32 %v5579_v51, %v5358_v21  ;;  %v6018_v22 = vpop.f32.mrb[65].mxu0 }
0x1075   :  { %v5361_v31 = vpop.f32.mrb[66].mxu0 }
0x1076   :  { %v5365_v18 = vadd.f32 %v5359_v29, %v5135_v59  ;;  %v5362_v44 = vadd.f32 %v5579_v51, %v5361_v31  ;;  %v6019_v16 = vpop.f32.mrb[67].mxu0 }
0x1078   :  { %v5366_v1 = vadd.f32 %v5362_v44, %v5136_v33  ;;  %5367 = vadd.xlane.f32.xlu1 %v5365_v18  ;;  %v5373_v20 = vmul.f32 %v5365_v18, %v5365_v18 }
0x107a   :  { %5369 = vadd.xlane.f32.xlu0 %v5366_v1  ;;  %v5374_v42 = vmul.f32 %v5366_v1, %v5366_v1 }
0x107c   :  { %5375 = vadd.xlane.f32.xlu1 %v5373_v20 }
0x107e   :  { %5377 = vadd.xlane.f32.xlu0 %v5374_v42 }
0x1105   :  { %v5368_v11 = vpop.xlane.xlu1 %5367 }
0x1106   :  { %v5371_v47 = vmul.f32 0.03125, %v5368_v11 }
0x1107   :  { %v5370_v48 = vpop.xlane.xlu0 %5369 }
0x1108   :  { %v5372_v27 = vmul.f32 0.03125, %v5370_v48  ;;  %v5381_v12 = vmul.f32 %v5371_v47, %v5371_v47  ;;  %v5385_v53 = vsub.f32 %v5365_v18, %v5371_v47 }
0x1109   :  { %v5376_v54 = vpop.xlane.xlu1 %5375 }
0x110a   :  { %v5379_v34 = vmul.f32 0.03125, %v5376_v54  ;;  %v5382_v8 = vmul.f32 %v5372_v27, %v5372_v27  ;;  %v5386_v30 = vsub.f32 %v5366_v1, %v5372_v27 }
0x110b   :  { %v5378_v9 = vpop.xlane.xlu0 %5377 }
0x110c   :  { %v5383_v2 = vsub.f32 %v5379_v34, %v5381_v12  ;;  %v5380_v39 = vmul.f32 0.03125, %v5378_v9 }
0x110e   :  { %v5387_v37 = vadd.f32 1e-05, %v5383_v2  ;;  %v5384_v24 = vsub.f32 %v5380_v39, %v5382_v8 }
0x1110   :  { %6242 = vrsqrt.f32 %v5387_v37  ;;  %v5388_v41 = vadd.f32 1e-05, %v5384_v24 }
0x1112   :  { %6244 = vrsqrt.f32 %v5388_v41 }
0x111a   :  { %v6243_v56 = vpop.eup %6242 }
0x111b   :  { %v5391_v35 = vmul.f32 %v6243_v56, %v5385_v53 }
0x111c   :  { %v6245_v3 = vpop.eup %6244 }
0x111d   :  { %v5392_v4 = vmul.f32 %v6245_v3, %v5386_v30  ;;  %v5400_v15 = vmul.f32 %v5588_v28, %v5391_v35 }
0x111f   :  { %v5401_v13 = vmul.f32 %v5588_v28, %v5392_v4  ;;  %v5409_v46 = vadd.f32 %v5589_v0, %v5400_v15 }
0x1121   :  { %v5410_v49 = vadd.f32 %v5589_v0, %v5401_v13  ;;  %5411 = vst [vmem:[#allocation19] sm:$0xff] %v5409_v46 }
0x1123   :  { %5412 = vst [vmem:[#allocation19 + $0x8] sm:$0xff] %v5410_v49 }
0x1124   :  { %6479 = shalt.err (!%p6476_p0)
}
0x1125   :  { %s7837_s29 = sld [smem:[#allocation38_spill]] }
0x112b   :  { %s6480_s7 = scalar_lea.hbm %s7837_s29, 256 }
0x112c   :  { %p6481_p1 = scmp.ne.s32.totalorder %s7837_s29, %s6480_s7  ;;  %p6484_p2 = scmp.lt.u32.totalorder %s6480_s7, %s7837_s29 }
0x112e   :  { %p6486_p3 = pnand %p6484_p2, %p6481_p1 }
0x1130   :  { %6489 = shalt.err (!%p6486_p3)
}
0x1131   :  { %5424 = dma.vmem_to_hbm [thread:$0]  %s5419_s24, 256, %s7837_s29, [#allocation4], %s7828_s3, %s7828_s3, %s7827_s30  }
0x1132   :  { %6502 = dma.done.wait [#allocation4], 256  }
0x1133   :  { %6503 = vsyncadd [#allocation4], 4294967040 }
0x1134   :  { %5428 = vsyncpa [#allocation3], 1 }
0x1135   :  { %5429 = vsyncpa [#allocation6], 1 }
0x1136   :  { %5430 = vsyncpa [#allocation9], 1 }
0x1137   :  { %5431 = vsyncpa [#allocation12], 1 }
0x1138   :  { %5432 = vsyncpa [#allocation15], 1 }
0x1139   :  { %5433 = vsyncpa [#allocation18], 1 }
0x113a   :  { %5434 = vsyncpa [#allocation4], 1 }

</bundles_post_ra>
